<compile_context>
chip_gen: v5e
topology: v5e:2x2
jax: 0.10.0
libtpu: 0.0.40
codegen_flags: <defaults>
</compile_context>

<pallas_src>
import jax
import jax.numpy as jnp
from jax import lax
from jax.experimental import pallas as pl
from jax.experimental.pallas import tpu as pltpu


_LPAD = 16  # left column pad of the scratch -> aligned interior staging store


def _round_up(x, m):
    return ((x + m - 1) // m) * m


def _pad_geometry(W):
    """(left pad, padded window width, total padded width) of the spad scratch."""
    wwin = _round_up(max(W, 1), 16)       # matmul rows per image row, tile-aligned
    wp = _LPAD + wwin + 16                # room for halo columns + slack, mult of 8
    return _LPAD, wwin, wp


def _vmem_capacity_bytes():
    try:
        return int(pltpu.get_tpu_info().vmem_capacity_bytes)
    except Exception:                     # conservative default (v7x per-TC VMEM)
        return 64 * 2 ** 20


def _step_vmem_bytes(bt, th, W, Cin, Cs, Cexp, x_bytes=4, out_bytes=4):
    """Rough per-grid-step VMEM footprint, incl. double buffers and live temps."""
    _, wwin, wp = _pad_geometry(W)
    px = bt * th * W
    est = 0
    est += 2 * px * Cin * x_bytes                    # input tile (double buffered)
    est += 2 * bt * 2 * W * Cin * x_bytes            # halo rows
    est += 2 * px * Cexp * out_bytes                 # output tile (double buffered)
    est += 2 * (Cin * Cs + 9 * Cs * Cexp) * 2        # bf16 weights
    est += 2 * (Cs + Cexp) * 4                       # f32 biases
    est += bt * (th + 2) * wp * Cs * 2               # bf16 spad scratch
    est += bt * th * wwin * Cexp * 4                 # f32 expand accumulator
    est += px * Cs * (4 + 2) + px * Cin * 2          # squeeze temps + bf16 cast
    return int(est * 1.15)


def _divisors(n):
    return [d for d in range(1, n + 1) if n % d == 0]


def _pick_tiles(N, H, W, Cin, Cs, Cexp, budget):
    """Largest (batch, row) tile fitting `budget`, preferring a grid of >=2 steps."""
    best_key, best = None, (1, 1)
    for bt in _divisors(N):
        for th in _divisors(H):
            est = _step_vmem_bytes(bt, th, W, Cin, Cs, Cexp)
            steps = (N // bt) * (H // th)
            fits = est <= budget
            px = bt * th
            key = (fits, steps >= 2, px if fits else -px, th if fits else -th)
            if best_key is None or key > best_key:
                best_key, best = key, (bt, th)
    return best


def _fire_kernel(x_ref, xh_ref, ws_ref, bs_ref, we_ref, be_ref, out_ref, spad_ref):
    # x_ref   : (Bt, TH, W, Cin)    f32  NHWC batch/row tile
    # xh_ref  : (Bt, 1, 2W, Cin)    f32  halo rows [row above | row below] the tile
    # ws_ref  : (Cin, Cs)           bf16 squeeze weights
    # bs_ref  : (1, Cs)             f32  squeeze bias
    # we_ref  : (9, Cs, E1+E3)      bf16 fused expand weights (tap-major; the
    #                                    expand1x1 kernel lives in tap 4)
    # be_ref  : (1, E1+E3)          f32  fused expand bias [b1 | b3]
    # out_ref : (Bt, TH, W, E1+E3)        fused, concatenated, ReLU'd output
    # spad_ref: (Bt, TH+2, WP, Cs)  bf16 padded squeezed-activation scratch
    Bt, TH, W, Cin = x_ref.shape
    Cs = ws_ref.shape[1]
    Cexp = we_ref.shape[2]
    WP = spad_ref.shape[2]
    Wwin = WP - _LPAD - 16                # padded window width (multiple of 16)

    h = pl.program_id(1)
    n_h = pl.num_programs(1)

    ws = ws_ref[...]                      # bf16
    bs = bs_ref[...]                      # f32

    # ---- squeeze 1x1 + ReLU over the tile rows: one bf16 MXU matmul,
    #      f32 accumulate, bias/ReLU in f32, stage as bf16 ----
    x = x_ref[...].astype(jnp.bfloat16).reshape(Bt * TH * W, Cin)
    s = jnp.dot(x, ws, preferred_element_type=jnp.float32) + bs
    s = jnp.maximum(s, 0.0).astype(jnp.bfloat16).reshape(Bt, TH, W, Cs)

    # ---- squeeze the two halo rows (row above / below the tile) ----
    xh = xh_ref[...].astype(jnp.bfloat16).reshape(Bt * 2 * W, Cin)
    sh = jnp.dot(xh, ws, preferred_element_type=jnp.float32) + bs
    sh = jnp.maximum(sh, 0.0).astype(jnp.bfloat16).reshape(Bt, 2, W, Cs)

    # ---- stage into the sublane-aligned, zero-padded scratch ----
    # columns: [LPAD-1] = left zero halo, [LPAD, LPAD+W) = interior,
    #          [LPAD+W, WP) = right zero halo + junk pad (kept zero).
    spad_ref[:, :, _LPAD - 1:_LPAD, :] = jnp.zeros((Bt, TH + 2, 1, Cs), jnp.bfloat16)
    spad_ref[:, :, _LPAD + W:, :] = jnp.zeros(
        (Bt, TH + 2, WP - _LPAD - W, Cs), jnp.bfloat16)
    spad_ref[:, 0:1, _LPAD:_LPAD + W, :] = sh[:, 0:1]
    spad_ref[:, TH + 1:TH + 2, _LPAD:_LPAD + W, :] = sh[:, 1:2]
    spad_ref[:, 1:TH + 1, _LPAD:_LPAD + W, :] = s

    # At the image border the halo must be the 3x3 conv's ZERO padding (not
    # relu(bias) of a zero input row), so overwrite it there.
    zero_row = jnp.zeros((Bt, 1, W, Cs), jnp.bfloat16)

    @pl.when(h == 0)
    def _():
        spad_ref[:, 0:1, _LPAD:_LPAD + W, :] = zero_row

    @pl.when(h == n_h - 1)
    def _():
        spad_ref[:, TH + 1:TH + 2, _LPAD:_LPAD + W, :] = zero_row

    # ---- expand: 9 shifted windows x fused (1x1 | 3x3) weights, accumulated
    #      in f32.  No lane-axis concat, no 9x-activation im2col temp. ----
    acc = None
    for dy in range(3):
        for dx in range(3):
            tap = dy * 3 + dx
            c0 = _LPAD - 1 + dx
            win = spad_ref[:, dy:dy + TH, c0:c0 + Wwin, :]
            win = win.reshape(Bt * TH * Wwin, Cs)        # relayout-free (Wwin%16==0)
            part = jnp.dot(win, we_ref[tap], preferred_element_type=jnp.float32)
            acc = part if acc is None else acc + part

    o = jnp.maximum(acc + be_ref[...], 0.0)
    o = o.reshape(Bt, TH, Wwin, Cexp)[:, :, :W, :]       # drop junk pad columns
    out_ref[...] = o.astype(out_ref.dtype)


def fire_forward_nhwc(x_nhwc, params):
    """Fire forward, NHWC in / NHWC out (hot path, no layout glue)."""
    ws, bs, we, be = params["ws"], params["bs"], params["we"], params["be"]
    N, H, W, Cin = x_nhwc.shape
    Cs = ws.shape[1]
    Cexp = we.shape[2]                                   # E1 + E3
    _, _, wp = _pad_geometry(W)

    cap = _vmem_capacity_bytes()
    budget = min(48 * 2 ** 20, (cap * 3) // 4)           # per-step working set
    Bt, TH = _pick_tiles(N, H, W, Cin, Cs, Cexp, budget)
    nH = H // TH
    est = _step_vmem_bytes(Bt, TH, W, Cin, Cs, Cexp)
    vmem_limit = int(min(cap - 8 * 2 ** 20, max(32 * 2 ** 20, (est * 3) // 2)))

    # Halo rows (input row just above / below each row tile), zero at the image
    # border; ~2/TH of the input in extra HBM traffic, buys non-overlapping
    # row tiles inside the kernel.
    xp = jnp.pad(x_nhwc, ((0, 0), (1, 1), (0, 0), (0, 0)))
    top = xp[:, 0:H:TH]                                  # rows h*TH - 1
    bot = xp[:, TH + 1::TH]                              # rows (h+1)*TH
    x_halo = jnp.concatenate([top, bot], axis=2)         # (N, nH, 2W, Cin)

    out_bytes = x_nhwc.dtype.itemsize
    flops = 2 * N * H * W * (Cin * Cs + 9 * Cs * Cexp)
    bytes_acc = (x_nhwc.size * x_nhwc.dtype.itemsize
                 + x_halo.size * x_halo.dtype.itemsize
                 + N * H * W * Cexp * out_bytes
                 + ws.size * ws.dtype.itemsize + we.size * we.dtype.itemsize
                 + bs.size * bs.dtype.itemsize + be.size * be.dtype.itemsize)

    grid_spec = pltpu.PrefetchScalarGridSpec(
        num_scalar_prefetch=0,
        grid=(N // Bt, nH),
        in_specs=[
            pl.BlockSpec((Bt, TH, W, Cin), lambda n, h: (n, h, 0, 0)),
            pl.BlockSpec((Bt, 1, 2 * W, Cin), lambda n, h: (n, h, 0, 0)),
            pl.BlockSpec((Cin, Cs), lambda n, h: (0, 0)),
            pl.BlockSpec((1, Cs), lambda n, h: (0, 0)),
            pl.BlockSpec((9, Cs, Cexp), lambda n, h: (0, 0, 0)),
            pl.BlockSpec((1, Cexp), lambda n, h: (0, 0)),
        ],
        out_specs=pl.BlockSpec((Bt, TH, W, Cexp), lambda n, h: (n, h, 0, 0)),
        scratch_shapes=[pltpu.VMEM((Bt, TH + 2, wp, Cs), jnp.bfloat16)],
    )

    return pl.pallas_call(
        _fire_kernel,
        out_shape=jax.ShapeDtypeStruct((N, H, W, Cexp), x_nhwc.dtype),
        grid_spec=grid_spec,
        compiler_params=pltpu.CompilerParams(
            dimension_semantics=("parallel", "parallel"),
            vmem_limit_bytes=vmem_limit,
        ),
        cost_estimate=pl.CostEstimate(
            flops=int(flops), transcendentals=0, bytes_accessed=int(bytes_acc)),
    )(x_nhwc, x_halo, ws, bs, we, be)


def fire_forward(x_nchw, params):
    """PyTorch NCHW interface: (N,Cin,H,W) -> (N,E1+E3,H,W).

    The transposes are interface glue only; NHWC end-to-end models should call
    fire_forward_nhwc directly and avoid the two extra HBM passes.
    """
    x_nhwc = jnp.transpose(x_nchw, (0, 2, 3, 1))
    out_nhwc = fire_forward_nhwc(x_nhwc, params)
    return jnp.transpose(out_nhwc, (0, 3, 1, 2))


def init_fire_params(key, inplanes, squeeze_planes, e1_planes, e3_planes):
    """Deterministic synthetic parameters (torch Conv2d shapes) + fused layouts."""
    Cs = squeeze_planes
    ks = jax.random.split(key, 6)
    ws_t = 0.1 * jax.random.normal(ks[0], (Cs, inplanes, 1, 1), jnp.float32)
    bs_t = 0.1 * jax.random.normal(ks[1], (Cs,), jnp.float32)
    w1_t = 0.1 * jax.random.normal(ks[2], (e1_planes, Cs, 1, 1), jnp.float32)
    b1_t = 0.1 * jax.random.normal(ks[3], (e1_planes,), jnp.float32)
    w3_t = 0.1 * jax.random.normal(ks[4], (e3_planes, Cs, 3, 3), jnp.float32)
    b3_t = 0.1 * jax.random.normal(ks[5], (e3_planes,), jnp.float32)

    # Fused expand weights, tap-major: we[t] is (Cs, E1+E3) for tap t = dy*3+dx.
    # The expand1x1 kernel is folded into the centre tap (t == 4); valid because
    # ReLU is applied per output channel after the (virtual) concat.
    w3_taps = jnp.transpose(w3_t, (2, 3, 1, 0)).reshape(9, Cs, e3_planes)
    w1_mat = jnp.transpose(w1_t[:, :, 0, 0], (1, 0))              # (Cs, E1)
    w1_taps = jnp.zeros((9, Cs, e1_planes), jnp.float32).at[4].set(w1_mat)
    we = jnp.concatenate([w1_taps, w3_taps], axis=2)              # (9, Cs, E1+E3)
    be = jnp.concatenate([b1_t, b3_t]).reshape(1, -1)             # (1, E1+E3)

    params = {
        "ws": jnp.transpose(ws_t[:, :, 0, 0], (1, 0)).astype(jnp.bfloat16),
        "bs": bs_t.reshape(1, -1).astype(jnp.float32),
        "we": we.astype(jnp.bfloat16),
        "be": be.astype(jnp.float32),
    }
    torch_weights = (ws_t, bs_t, w1_t, b1_t, w3_t, b3_t)
    return params, torch_weights


def fire_reference(x_nchw, torch_weights):
    """Pure-JAX f32 reference matching torch semantics (NCHW conv)."""
    ws_t, bs_t, w1_t, b1_t, w3_t, b3_t = torch_weights
    dn = lax.conv_dimension_numbers(x_nchw.shape, ws_t.shape, ("NCHW", "OIHW", "NCHW"))
    s = lax.conv_general_dilated(x_nchw, ws_t, (1, 1), "VALID", dimension_numbers=dn)
    s = jax.nn.relu(s + bs_t[None, :, None, None])
    o1 = lax.conv_general_dilated(s, w1_t, (1, 1), "VALID", dimension_numbers=dn)
    o1 = jax.nn.relu(o1 + b1_t[None, :, None, None])
    o3 = lax.conv_general_dilated(s, w3_t, (1, 1), ((1, 1), (1, 1)), dimension_numbers=dn)
    o3 = jax.nn.relu(o3 + b3_t[None, :, None, None])
    return jnp.concatenate([o1, o3], axis=1)


if __name__ == "__main__":
    inplanes, squeeze_planes, e1_planes, e3_planes = 4, 8, 16, 16
    H = W = 16

    key = jax.random.PRNGKey(0)
    kx1, kx2, kp = jax.random.split(key, 3)
    params, torch_weights = init_fire_params(kp, inplanes, squeeze_planes,
                                             e1_planes, e3_planes)

    # bf16 MXU operands with f32 accumulation -> loosen tolerance vs f32 ref.
    atol = rtol = 3e-2

    # Case 1: batch=2 -> the grid splits across the batch axis (2 steps).
    x1 = jax.random.normal(kx1, (2, inplanes, H, W), jnp.float32)
    out1 = jax.block_until_ready(fire_forward(x1, params))
    ref1 = jax.block_until_ready(fire_reference(x1, torch_weights))
    assert out1.shape == (2, e1_planes + e3_planes, H, W), out1.shape
    assert jnp.allclose(out1, ref1, atol=atol, rtol=rtol), \
        float(jnp.max(jnp.abs(out1 - ref1)))

    # Case 2: batch=1 -> the tile picker forces >=2 grid steps by tiling over H
    # (keeps both v7x TensorCores busy) and exercises the interior row-halo path.
    x2 = jax.random.normal(kx2, (1, inplanes, H, W), jnp.float32)
    out2 = jax.block_until_ready(fire_forward(x2, params))
    ref2 = jax.block_until_ready(fire_reference(x2, torch_weights))
    assert out2.shape == (1, e1_planes + e3_planes, H, W), out2.shape
    assert jnp.allclose(out2, ref2, atol=atol, rtol=rtol), \
        float(jnp.max(jnp.abs(out2 - ref2)))

    print("KERNEL_OK")
</pallas_src>

<mosaic_0001>
module attributes {stable_mosaic.version = 11 : i64} {
  func.func @_fire_kernel(%arg0: i32, %arg1: i32, %arg2: memref<1x16x16x4xf32, #tpu.memory_space<vmem>>, %arg3: memref<1x1x32x4xf32, #tpu.memory_space<vmem>>, %arg4: memref<4x8xbf16, #tpu.memory_space<vmem>>, %arg5: memref<1x8xf32, #tpu.memory_space<vmem>>, %arg6: memref<9x8x32xbf16, #tpu.memory_space<vmem>>, %arg7: memref<1x32xf32, #tpu.memory_space<vmem>>, %arg8: memref<1x16x16x32xf32, #tpu.memory_space<vmem>>, %arg9: memref<1x18x48x8xbf16, #tpu.memory_space<vmem>>) attributes {dimension_semantics = [#tpu.dimension_semantics<parallel>, #tpu.dimension_semantics<parallel>], iteration_bounds = array<i64: 2, 1>, scalar_prefetch = 0 : i64, scratch_operands = 1 : i64, tpu.core_type = #tpu.core_type<tc>, window_params = [{transform_indices = @transform_0, window_bounds = array<i64: 1, 16, 16, 4>}, {transform_indices = @transform_1, window_bounds = array<i64: 1, 1, 32, 4>}, {pipeline_mode = #tpu.pipeline_mode<synchronous>, transform_indices = @transform_2, window_bounds = array<i64: 4, 8>}, {pipeline_mode = #tpu.pipeline_mode<synchronous>, transform_indices = @transform_3, window_bounds = array<i64: 1, 8>}, {pipeline_mode = #tpu.pipeline_mode<synchronous>, transform_indices = @transform_4, window_bounds = array<i64: 9, 8, 32>}, {pipeline_mode = #tpu.pipeline_mode<synchronous>, transform_indices = @transform_5, window_bounds = array<i64: 1, 32>}, {transform_indices = @transform_6, window_bounds = array<i64: 1, 16, 16, 32>}]} {
    %c0 = arith.constant 0 : index
    %c0_0 = arith.constant 0 : index
    %0 = vector.load %arg4[%c0, %c0_0] : memref<4x8xbf16, #tpu.memory_space<vmem>>, vector<4x8xbf16>
    %c0_1 = arith.constant 0 : index
    %c0_2 = arith.constant 0 : index
    %1 = vector.load %arg5[%c0_1, %c0_2] : memref<1x8xf32, #tpu.memory_space<vmem>>, vector<1x8xf32>
    %c0_3 = arith.constant 0 : index
    %c0_4 = arith.constant 0 : index
    %c0_5 = arith.constant 0 : index
    %c0_6 = arith.constant 0 : index
    %2 = vector.load %arg2[%c0_3, %c0_4, %c0_5, %c0_6] : memref<1x16x16x4xf32, #tpu.memory_space<vmem>>, vector<1x16x16x4xf32>
    %3 = arith.truncf %2 : vector<1x16x16x4xf32> to vector<1x16x16x4xbf16>
    %4 = vector.shape_cast %3 : vector<1x16x16x4xbf16> to vector<256x4xbf16>
    %cst = arith.constant dense<0.000000e+00> : vector<256x8xf32>
    %5 = tpu.matmul %4, %0, %cst {dimension_numbers = #tpu.dot_dimension_numbers<[1], [0], [0], [1], [0, 0, 1, 1], [], []>} : vector<256x4xbf16>, vector<4x8xbf16>, vector<256x8xf32> -> vector<256x8xf32>
    %6 = vector.broadcast %1 : vector<1x8xf32> to vector<256x8xf32>
    %7 = arith.addf %5, %6 : vector<256x8xf32>
    %cst_7 = arith.constant 0.000000e+00 : f32
    %8 = vector.broadcast %cst_7 : f32 to vector<256x8xf32>
    %9 = arith.maximumf %7, %8 : vector<256x8xf32>
    %10 = arith.truncf %9 : vector<256x8xf32> to vector<256x8xbf16>
    %11 = vector.shape_cast %10 : vector<256x8xbf16> to vector<1x16x16x8xbf16>
    %c0_8 = arith.constant 0 : index
    %c0_9 = arith.constant 0 : index
    %c0_10 = arith.constant 0 : index
    %c0_11 = arith.constant 0 : index
    %12 = vector.load %arg3[%c0_8, %c0_9, %c0_10, %c0_11] : memref<1x1x32x4xf32, #tpu.memory_space<vmem>>, vector<1x1x32x4xf32>
    %13 = arith.truncf %12 : vector<1x1x32x4xf32> to vector<1x1x32x4xbf16>
    %14 = vector.shape_cast %13 : vector<1x1x32x4xbf16> to vector<32x4xbf16>
    %cst_12 = arith.constant dense<0.000000e+00> : vector<32x8xf32>
    %15 = tpu.matmul %14, %0, %cst_12 {dimension_numbers = #tpu.dot_dimension_numbers<[1], [0], [0], [1], [0, 0, 1, 1], [], []>} : vector<32x4xbf16>, vector<4x8xbf16>, vector<32x8xf32> -> vector<32x8xf32>
    %16 = vector.broadcast %1 : vector<1x8xf32> to vector<32x8xf32>
    %17 = arith.addf %15, %16 : vector<32x8xf32>
    %cst_13 = arith.constant 0.000000e+00 : f32
    %18 = vector.broadcast %cst_13 : f32 to vector<32x8xf32>
    %19 = arith.maximumf %17, %18 : vector<32x8xf32>
    %20 = arith.truncf %19 : vector<32x8xf32> to vector<32x8xbf16>
    %21 = vector.shape_cast %20 : vector<32x8xbf16> to vector<1x2x16x8xbf16>
    %cst_14 = arith.constant 0.000000e+00 : bf16
    %22 = vector.broadcast %cst_14 : bf16 to vector<1x18x1x8xbf16>
    %c0_15 = arith.constant 0 : index
    %c0_16 = arith.constant 0 : index
    %c15 = arith.constant 15 : index
    %c0_17 = arith.constant 0 : index
    %23 = vector.load %arg9[%c0_15, %c0_16, %c15, %c0_17] : memref<1x18x48x8xbf16, #tpu.memory_space<vmem>>, vector<1x18x1x8xbf16>
    tpu.vector_store %arg9[%c0_15, %c0_16, %c15, %c0_17], %22 {strides = array<i32>} : memref<1x18x48x8xbf16, #tpu.memory_space<vmem>>, vector<1x18x1x8xbf16>,
    %cst_18 = arith.constant 0.000000e+00 : bf16
    %24 = vector.broadcast %cst_18 : bf16 to vector<1x18x16x8xbf16>
    %c0_19 = arith.constant 0 : index
    %c0_20 = arith.constant 0 : index
    %c32 = arith.constant 32 : index
    %c0_21 = arith.constant 0 : index
    %25 = vector.load %arg9[%c0_19, %c0_20, %c32, %c0_21] : memref<1x18x48x8xbf16, #tpu.memory_space<vmem>>, vector<1x18x16x8xbf16>
    tpu.vector_store %arg9[%c0_19, %c0_20, %c32, %c0_21], %24 {strides = array<i32>} : memref<1x18x48x8xbf16, #tpu.memory_space<vmem>>, vector<1x18x16x8xbf16>,
    %26 = vector.extract_strided_slice %21 {offsets = [0, 0, 0, 0], sizes = [1, 1, 16, 8], strides = [1, 1, 1, 1]} : vector<1x2x16x8xbf16> to vector<1x1x16x8xbf16>
    %c0_22 = arith.constant 0 : index
    %c0_23 = arith.constant 0 : index
    %c16 = arith.constant 16 : index
    %c0_24 = arith.constant 0 : index
    %27 = vector.load %arg9[%c0_22, %c0_23, %c16, %c0_24] : memref<1x18x48x8xbf16, #tpu.memory_space<vmem>>, vector<1x1x16x8xbf16>
    tpu.vector_store %arg9[%c0_22, %c0_23, %c16, %c0_24], %26 {strides = array<i32>} : memref<1x18x48x8xbf16, #tpu.memory_space<vmem>>, vector<1x1x16x8xbf16>,
    %28 = vector.extract_strided_slice %21 {offsets = [0, 1, 0, 0], sizes = [1, 1, 16, 8], strides = [1, 1, 1, 1]} : vector<1x2x16x8xbf16> to vector<1x1x16x8xbf16>
    %c0_25 = arith.constant 0 : index
    %c17 = arith.constant 17 : index
    %c16_26 = arith.constant 16 : index
    %c0_27 = arith.constant 0 : index
    %29 = vector.load %arg9[%c0_25, %c17, %c16_26, %c0_27] : memref<1x18x48x8xbf16, #tpu.memory_space<vmem>>, vector<1x1x16x8xbf16>
    tpu.vector_store %arg9[%c0_25, %c17, %c16_26, %c0_27], %28 {strides = array<i32>} : memref<1x18x48x8xbf16, #tpu.memory_space<vmem>>, vector<1x1x16x8xbf16>,
    %c0_28 = arith.constant 0 : index
    %c1 = arith.constant 1 : index
    %c16_29 = arith.constant 16 : index
    %c0_30 = arith.constant 0 : index
    %30 = vector.load %arg9[%c0_28, %c1, %c16_29, %c0_30] : memref<1x18x48x8xbf16, #tpu.memory_space<vmem>>, vector<1x16x16x8xbf16>
    tpu.vector_store %arg9[%c0_28, %c1, %c16_29, %c0_30], %11 {strides = array<i32>} : memref<1x18x48x8xbf16, #tpu.memory_space<vmem>>, vector<1x16x16x8xbf16>,
    %cst_31 = arith.constant 0.000000e+00 : bf16
    %31 = vector.broadcast %cst_31 : bf16 to vector<1x1x16x8xbf16>
    %c0_i32 = arith.constant 0 : i32
    %32 = arith.cmpi eq, %arg1, %c0_i32 : i32
    %33 = arith.extui %32 : i1 to i32
    %c0_i32_32 = arith.constant 0 : i32
    %34 = arith.cmpi ne, %33, %c0_i32_32 : i32
    scf.if %34 {
      %c0_107 = arith.constant 0 : index
      %c0_108 = arith.constant 0 : index
      %c16_109 = arith.constant 16 : index
      %c0_110 = arith.constant 0 : index
      %98 = vector.load %arg9[%c0_107, %c0_108, %c16_109, %c0_110] : memref<1x18x48x8xbf16, #tpu.memory_space<vmem>>, vector<1x1x16x8xbf16>
      tpu.vector_store %arg9[%c0_107, %c0_108, %c16_109, %c0_110], %31 {strides = array<i32>} : memref<1x18x48x8xbf16, #tpu.memory_space<vmem>>, vector<1x1x16x8xbf16>,
    } else {
    }
    %c0_i32_33 = arith.constant 0 : i32
    %35 = arith.cmpi eq, %arg1, %c0_i32_33 : i32
    %36 = arith.extui %35 : i1 to i32
    %c0_i32_34 = arith.constant 0 : i32
    %37 = arith.cmpi ne, %36, %c0_i32_34 : i32
    scf.if %37 {
      %c0_107 = arith.constant 0 : index
      %c17_108 = arith.constant 17 : index
      %c16_109 = arith.constant 16 : index
      %c0_110 = arith.constant 0 : index
      %98 = vector.load %arg9[%c0_107, %c17_108, %c16_109, %c0_110] : memref<1x18x48x8xbf16, #tpu.memory_space<vmem>>, vector<1x1x16x8xbf16>
      tpu.vector_store %arg9[%c0_107, %c17_108, %c16_109, %c0_110], %31 {strides = array<i32>} : memref<1x18x48x8xbf16, #tpu.memory_space<vmem>>, vector<1x1x16x8xbf16>,
    } else {
    }
    %c0_35 = arith.constant 0 : index
    %c0_36 = arith.constant 0 : index
    %c15_37 = arith.constant 15 : index
    %c0_38 = arith.constant 0 : index
    %38 = vector.load %arg9[%c0_35, %c0_36, %c15_37, %c0_38] : memref<1x18x48x8xbf16, #tpu.memory_space<vmem>>, vector<1x16x16x8xbf16>
    %39 = vector.shape_cast %38 : vector<1x16x16x8xbf16> to vector<256x8xbf16>
    %c0_39 = arith.constant 0 : index
    %c0_40 = arith.constant 0 : index
    %c0_41 = arith.constant 0 : index
    %40 = vector.load %arg6[%c0_39, %c0_40, %c0_41] : memref<9x8x32xbf16, #tpu.memory_space<vmem>>, vector<1x8x32xbf16>
    %41 = vector.shape_cast %40 : vector<1x8x32xbf16> to vector<8x32xbf16>
    %cst_42 = arith.constant dense<0.000000e+00> : vector<256x32xf32>
    %42 = tpu.matmul %39, %41, %cst_42 {dimension_numbers = #tpu.dot_dimension_numbers<[1], [0], [0], [1], [0, 0, 1, 1], [], []>} : vector<256x8xbf16>, vector<8x32xbf16>, vector<256x32xf32> -> vector<256x32xf32>
    %c0_43 = arith.constant 0 : index
    %c0_44 = arith.constant 0 : index
    %c16_45 = arith.constant 16 : index
    %c0_46 = arith.constant 0 : index
    %43 = vector.load %arg9[%c0_43, %c0_44, %c16_45, %c0_46] : memref<1x18x48x8xbf16, #tpu.memory_space<vmem>>, vector<1x16x16x8xbf16>
    %44 = vector.shape_cast %43 : vector<1x16x16x8xbf16> to vector<256x8xbf16>
    %c1_47 = arith.constant 1 : index
    %c0_48 = arith.constant 0 : index
    %c0_49 = arith.constant 0 : index
    %45 = vector.load %arg6[%c1_47, %c0_48, %c0_49] : memref<9x8x32xbf16, #tpu.memory_space<vmem>>, vector<1x8x32xbf16>
    %46 = vector.shape_cast %45 : vector<1x8x32xbf16> to vector<8x32xbf16>
    %cst_50 = arith.constant dense<0.000000e+00> : vector<256x32xf32>
    %47 = tpu.matmul %44, %46, %cst_50 {dimension_numbers = #tpu.dot_dimension_numbers<[1], [0], [0], [1], [0, 0, 1, 1], [], []>} : vector<256x8xbf16>, vector<8x32xbf16>, vector<256x32xf32> -> vector<256x32xf32>
    %48 = arith.addf %42, %47 : vector<256x32xf32>
    %c0_51 = arith.constant 0 : index
    %c0_52 = arith.constant 0 : index
    %c17_53 = arith.constant 17 : index
    %c0_54 = arith.constant 0 : index
    %49 = vector.load %arg9[%c0_51, %c0_52, %c17_53, %c0_54] : memref<1x18x48x8xbf16, #tpu.memory_space<vmem>>, vector<1x16x16x8xbf16>
    %50 = vector.shape_cast %49 : vector<1x16x16x8xbf16> to vector<256x8xbf16>
    %c2 = arith.constant 2 : index
    %c0_55 = arith.constant 0 : index
    %c0_56 = arith.constant 0 : index
    %51 = vector.load %arg6[%c2, %c0_55, %c0_56] : memref<9x8x32xbf16, #tpu.memory_space<vmem>>, vector<1x8x32xbf16>
    %52 = vector.shape_cast %51 : vector<1x8x32xbf16> to vector<8x32xbf16>
    %cst_57 = arith.constant dense<0.000000e+00> : vector<256x32xf32>
    %53 = tpu.matmul %50, %52, %cst_57 {dimension_numbers = #tpu.dot_dimension_numbers<[1], [0], [0], [1], [0, 0, 1, 1], [], []>} : vector<256x8xbf16>, vector<8x32xbf16>, vector<256x32xf32> -> vector<256x32xf32>
    %54 = arith.addf %48, %53 : vector<256x32xf32>
    %c0_58 = arith.constant 0 : index
    %c1_59 = arith.constant 1 : index
    %c15_60 = arith.constant 15 : index
    %c0_61 = arith.constant 0 : index
    %55 = vector.load %arg9[%c0_58, %c1_59, %c15_60, %c0_61] : memref<1x18x48x8xbf16, #tpu.memory_space<vmem>>, vector<1x16x16x8xbf16>
    %56 = vector.shape_cast %55 : vector<1x16x16x8xbf16> to vector<256x8xbf16>
    %c3 = arith.constant 3 : index
    %c0_62 = arith.constant 0 : index
    %c0_63 = arith.constant 0 : index
    %57 = vector.load %arg6[%c3, %c0_62, %c0_63] : memref<9x8x32xbf16, #tpu.memory_space<vmem>>, vector<1x8x32xbf16>
    %58 = vector.shape_cast %57 : vector<1x8x32xbf16> to vector<8x32xbf16>
    %cst_64 = arith.constant dense<0.000000e+00> : vector<256x32xf32>
    %59 = tpu.matmul %56, %58, %cst_64 {dimension_numbers = #tpu.dot_dimension_numbers<[1], [0], [0], [1], [0, 0, 1, 1], [], []>} : vector<256x8xbf16>, vector<8x32xbf16>, vector<256x32xf32> -> vector<256x32xf32>
    %60 = arith.addf %54, %59 : vector<256x32xf32>
    %c0_65 = arith.constant 0 : index
    %c1_66 = arith.constant 1 : index
    %c16_67 = arith.constant 16 : index
    %c0_68 = arith.constant 0 : index
    %61 = vector.load %arg9[%c0_65, %c1_66, %c16_67, %c0_68] : memref<1x18x48x8xbf16, #tpu.memory_space<vmem>>, vector<1x16x16x8xbf16>
    %62 = vector.shape_cast %61 : vector<1x16x16x8xbf16> to vector<256x8xbf16>
    %c4 = arith.constant 4 : index
    %c0_69 = arith.constant 0 : index
    %c0_70 = arith.constant 0 : index
    %63 = vector.load %arg6[%c4, %c0_69, %c0_70] : memref<9x8x32xbf16, #tpu.memory_space<vmem>>, vector<1x8x32xbf16>
    %64 = vector.shape_cast %63 : vector<1x8x32xbf16> to vector<8x32xbf16>
    %cst_71 = arith.constant dense<0.000000e+00> : vector<256x32xf32>
    %65 = tpu.matmul %62, %64, %cst_71 {dimension_numbers = #tpu.dot_dimension_numbers<[1], [0], [0], [1], [0, 0, 1, 1], [], []>} : vector<256x8xbf16>, vector<8x32xbf16>, vector<256x32xf32> -> vector<256x32xf32>
    %66 = arith.addf %60, %65 : vector<256x32xf32>
    %c0_72 = arith.constant 0 : index
    %c1_73 = arith.constant 1 : index
    %c17_74 = arith.constant 17 : index
    %c0_75 = arith.constant 0 : index
    %67 = vector.load %arg9[%c0_72, %c1_73, %c17_74, %c0_75] : memref<1x18x48x8xbf16, #tpu.memory_space<vmem>>, vector<1x16x16x8xbf16>
    %68 = vector.shape_cast %67 : vector<1x16x16x8xbf16> to vector<256x8xbf16>
    %c5 = arith.constant 5 : index
    %c0_76 = arith.constant 0 : index
    %c0_77 = arith.constant 0 : index
    %69 = vector.load %arg6[%c5, %c0_76, %c0_77] : memref<9x8x32xbf16, #tpu.memory_space<vmem>>, vector<1x8x32xbf16>
    %70 = vector.shape_cast %69 : vector<1x8x32xbf16> to vector<8x32xbf16>
    %cst_78 = arith.constant dense<0.000000e+00> : vector<256x32xf32>
    %71 = tpu.matmul %68, %70, %cst_78 {dimension_numbers = #tpu.dot_dimension_numbers<[1], [0], [0], [1], [0, 0, 1, 1], [], []>} : vector<256x8xbf16>, vector<8x32xbf16>, vector<256x32xf32> -> vector<256x32xf32>
    %72 = arith.addf %66, %71 : vector<256x32xf32>
    %c0_79 = arith.constant 0 : index
    %c2_80 = arith.constant 2 : index
    %c15_81 = arith.constant 15 : index
    %c0_82 = arith.constant 0 : index
    %73 = vector.load %arg9[%c0_79, %c2_80, %c15_81, %c0_82] : memref<1x18x48x8xbf16, #tpu.memory_space<vmem>>, vector<1x16x16x8xbf16>
    %74 = vector.shape_cast %73 : vector<1x16x16x8xbf16> to vector<256x8xbf16>
    %c6 = arith.constant 6 : index
    %c0_83 = arith.constant 0 : index
    %c0_84 = arith.constant 0 : index
    %75 = vector.load %arg6[%c6, %c0_83, %c0_84] : memref<9x8x32xbf16, #tpu.memory_space<vmem>>, vector<1x8x32xbf16>
    %76 = vector.shape_cast %75 : vector<1x8x32xbf16> to vector<8x32xbf16>
    %cst_85 = arith.constant dense<0.000000e+00> : vector<256x32xf32>
    %77 = tpu.matmul %74, %76, %cst_85 {dimension_numbers = #tpu.dot_dimension_numbers<[1], [0], [0], [1], [0, 0, 1, 1], [], []>} : vector<256x8xbf16>, vector<8x32xbf16>, vector<256x32xf32> -> vector<256x32xf32>
    %78 = arith.addf %72, %77 : vector<256x32xf32>
    %c0_86 = arith.constant 0 : index
    %c2_87 = arith.constant 2 : index
    %c16_88 = arith.constant 16 : index
    %c0_89 = arith.constant 0 : index
    %79 = vector.load %arg9[%c0_86, %c2_87, %c16_88, %c0_89] : memref<1x18x48x8xbf16, #tpu.memory_space<vmem>>, vector<1x16x16x8xbf16>
    %80 = vector.shape_cast %79 : vector<1x16x16x8xbf16> to vector<256x8xbf16>
    %c7 = arith.constant 7 : index
    %c0_90 = arith.constant 0 : index
    %c0_91 = arith.constant 0 : index
    %81 = vector.load %arg6[%c7, %c0_90, %c0_91] : memref<9x8x32xbf16, #tpu.memory_space<vmem>>, vector<1x8x32xbf16>
    %82 = vector.shape_cast %81 : vector<1x8x32xbf16> to vector<8x32xbf16>
    %cst_92 = arith.constant dense<0.000000e+00> : vector<256x32xf32>
    %83 = tpu.matmul %80, %82, %cst_92 {dimension_numbers = #tpu.dot_dimension_numbers<[1], [0], [0], [1], [0, 0, 1, 1], [], []>} : vector<256x8xbf16>, vector<8x32xbf16>, vector<256x32xf32> -> vector<256x32xf32>
    %84 = arith.addf %78, %83 : vector<256x32xf32>
    %c0_93 = arith.constant 0 : index
    %c2_94 = arith.constant 2 : index
    %c17_95 = arith.constant 17 : index
    %c0_96 = arith.constant 0 : index
    %85 = vector.load %arg9[%c0_93, %c2_94, %c17_95, %c0_96] : memref<1x18x48x8xbf16, #tpu.memory_space<vmem>>, vector<1x16x16x8xbf16>
    %86 = vector.shape_cast %85 : vector<1x16x16x8xbf16> to vector<256x8xbf16>
    %c8 = arith.constant 8 : index
    %c0_97 = arith.constant 0 : index
    %c0_98 = arith.constant 0 : index
    %87 = vector.load %arg6[%c8, %c0_97, %c0_98] : memref<9x8x32xbf16, #tpu.memory_space<vmem>>, vector<1x8x32xbf16>
    %88 = vector.shape_cast %87 : vector<1x8x32xbf16> to vector<8x32xbf16>
    %cst_99 = arith.constant dense<0.000000e+00> : vector<256x32xf32>
    %89 = tpu.matmul %86, %88, %cst_99 {dimension_numbers = #tpu.dot_dimension_numbers<[1], [0], [0], [1], [0, 0, 1, 1], [], []>} : vector<256x8xbf16>, vector<8x32xbf16>, vector<256x32xf32> -> vector<256x32xf32>
    %90 = arith.addf %84, %89 : vector<256x32xf32>
    %c0_100 = arith.constant 0 : index
    %c0_101 = arith.constant 0 : index
    %91 = vector.load %arg7[%c0_100, %c0_101] : memref<1x32xf32, #tpu.memory_space<vmem>>, vector<1x32xf32>
    %92 = vector.broadcast %91 : vector<1x32xf32> to vector<256x32xf32>
    %93 = arith.addf %90, %92 : vector<256x32xf32>
    %cst_102 = arith.constant 0.000000e+00 : f32
    %94 = vector.broadcast %cst_102 : f32 to vector<256x32xf32>
    %95 = arith.maximumf %93, %94 : vector<256x32xf32>
    %96 = vector.shape_cast %95 : vector<256x32xf32> to vector<1x16x16x32xf32>
    %c0_103 = arith.constant 0 : index
    %c0_104 = arith.constant 0 : index
    %c0_105 = arith.constant 0 : index
    %c0_106 = arith.constant 0 : index
    %97 = vector.load %arg8[%c0_103, %c0_104, %c0_105, %c0_106] : memref<1x16x16x32xf32, #tpu.memory_space<vmem>>, vector<1x16x16x32xf32>
    tpu.vector_store %arg8[%c0_103, %c0_104, %c0_105, %c0_106], %96 {strides = array<i32>} : memref<1x16x16x32xf32, #tpu.memory_space<vmem>>, vector<1x16x16x32xf32>,
    return
  }
  func.func @transform_0(%arg0: i32, %arg1: i32) -> (i32, i32, i32, i32) {
    %c0_i32 = arith.constant 0 : i32
    %c0_i32_0 = arith.constant 0 : i32
    %c0_i32_1 = arith.constant 0 : i32
    return %arg0, %arg1, %c0_i32, %c0_i32_0 : i32, i32, i32, i32
  }
  func.func @transform_1(%arg0: i32, %arg1: i32) -> (i32, i32, i32, i32) {
    %c0_i32 = arith.constant 0 : i32
    %c0_i32_0 = arith.constant 0 : i32
    %c0_i32_1 = arith.constant 0 : i32
    return %arg0, %arg1, %c0_i32, %c0_i32_0 : i32, i32, i32, i32
  }
  func.func @transform_2(%arg0: i32, %arg1: i32) -> (i32, i32) {
    %c0_i32 = arith.constant 0 : i32
    %c0_i32_0 = arith.constant 0 : i32
    %c0_i32_1 = arith.constant 0 : i32
    return %c0_i32, %c0_i32_0 : i32, i32
  }
  func.func @transform_3(%arg0: i32, %arg1: i32) -> (i32, i32) {
    %c0_i32 = arith.constant 0 : i32
    %c0_i32_0 = arith.constant 0 : i32
    %c0_i32_1 = arith.constant 0 : i32
    return %c0_i32, %c0_i32_0 : i32, i32
  }
  func.func @transform_4(%arg0: i32, %arg1: i32) -> (i32, i32, i32) {
    %c0_i32 = arith.constant 0 : i32
    %c0_i32_0 = arith.constant 0 : i32
    %c0_i32_1 = arith.constant 0 : i32
    %c0_i32_2 = arith.constant 0 : i32
    return %c0_i32, %c0_i32_0, %c0_i32_1 : i32, i32, i32
  }
  func.func @transform_5(%arg0: i32, %arg1: i32) -> (i32, i32) {
    %c0_i32 = arith.constant 0 : i32
    %c0_i32_0 = arith.constant 0 : i32
    %c0_i32_1 = arith.constant 0 : i32
    return %c0_i32, %c0_i32_0 : i32, i32
  }
  func.func @transform_6(%arg0: i32, %arg1: i32) -> (i32, i32, i32, i32) {
    %c0_i32 = arith.constant 0 : i32
    %c0_i32_0 = arith.constant 0 : i32
    %c0_i32_1 = arith.constant 0 : i32
    return %arg0, %arg1, %c0_i32, %c0_i32_0 : i32, i32, i32, i32
  }
}

</mosaic_0001>

<bundles_post_ra>
// kernel: tpu_custom_call.1
= control target key start
LH: loop header
LB: loop body
LE: loop exit
PB: predicated region body
PF: predicated region fallthrough
CT: control target
= control target key end

     0   :  { %11 = vsyncpa [#allocation4], 0  ;;  %s8017_s0 = inlined_call_operand.vmem [shape: f32[2,16,16,4], index: 0, kind: input, shape index: {}]   ;;  %s8018_s1 = inlined_call_operand.vmem [shape: f32[2,1,32,4], index: 1, kind: input, shape index: {}]   ;;  %s8019_s2 = inlined_call_operand.vmem [shape: bf16[4,8], index: 2, kind: input, shape index: {}]   ;;  %s8020_s3 = inlined_call_operand.vmem [shape: f32[1,8], index: 3, kind: input, shape index: {}]   ;;  %s8021_s4 = inlined_call_operand.vmem [shape: bf16[9,8,32], index: 4, kind: input, shape index: {}]   ;;  %s8022_s5 = inlined_call_operand.vmem [shape: f32[1,32], index: 5, kind: input, shape index: {}]   ;;  %s8023_s6 = inlined_call_operand.hbm [shape: f32[2,16,16,32], index: 6, kind: output, shape index: {}]  }
   0x1   :  { %13 = vsyncpa [#allocation4 + $0x1], 0  ;;  %s6279_s21 = smov 0   ;;  %s6281_s22 = smov 0  }
   0x2   :  { %s6283_s23 = smov 0   ;;  %s6285_s24 = smov 0  }
   0x3   :  { %s6287_s25 = smov 0   ;;  %s6289_s26 = smov 0  }
   0x4 LB: > { %s5622_s27 = sadd.s32 4294967295, %s6239_s26   ;;  %s5623_s28 = sadd.s32 4294967294, %s6239_s26   ;;  %s6239_s26 = sphi %s6289_s26, %s19_s26   ;;  %s6235_s25 = sphi %s6287_s25, %s8111_s25   ;;  %s6231_s24 = sphi %s6285_s24, %s8110_s24   ;;  %s6227_s23 = sphi %s6283_s23, %s8109_s23   ;;  %s6223_s22 = sphi %s6281_s22, %s8108_s22   ;;  %s6219_s21 = sphi %s6279_s21, %s8107_s21  }
   0x5   : > { %s31_s29 = sadd.s32 1, %s6235_s25  ;;  %s180_s30 = sadd.s32 1, %s6227_s23 }
   0x6   : > { %p33_p0 = scmp.ge.s32.totalorder %s31_s29, 2  ;;  %p190_p1 = scmp.ne.s32.totalorder %s6227_s23, %s6223_s22 }
   0x7   : > { %p191_p2 = scmp.eq.s32.totalorder %s5622_s27, 1  ;;  %p196_p3 = scmp.ne.s32.totalorder %s6223_s22, %s6219_s21 }
   0x8   : > { %s8113_s29 = smov (%p33_p0, %s31_s29), 0  ;;  %p197_p5 = scmp.eq.s32.totalorder %s5623_s28, 1 }
   0x9   : > { %p6319_p4 = por %p191_p2, %p190_p1  ;;  %s175_s8 = ssub.s32 %s6235_s25, %s8113_s29 }
   0xa   : > { %p5626_p6 = scmp.ge.s32.totalorder %s6239_s26, 1  ;;  %p178_p7 = scmp.eq.s32.totalorder %s175_s8, 0 }
   0xb   : > { %p6326_p8 = por %p197_p5, %p196_p3  ;;  %p253_p9 = scmp.lt.s32.totalorder %s6239_s26, 3 }
   0xc   : > { %s6332_s10 = scalar_select %p178_p7, %s6227_s23, %s180_s30  }
   0xd   : > { %p254_p10 = pnand %p5626_p6, %p253_p9 }
   0xf   : > { %257 = sbr.rel (%p254_p10) target bundleno = 1067 (0x42b), region = 44 }
  0x14   : > { %v319_v0 = vld [vmem:[%s8019_s2] sm:$0x3]  ;;  %vm517_vm0 = vcmask 1041408   ;;  %p298_p11 = scmp.lt.s32.totalorder %s6231_s24, 1  ;;  %vm468_vm1 = vcmask 31744   ;;  %vm782_vm2 = vcmask 60416  }
  0x15   : > { %v519_v1 = vsel %vm517_vm0, %v319_v0, 0  ;;  %vm1400_vm3 = vcmask 1043456   ;;  %vm725_vm4 = vcmask 60419   ;;  %vm726_vm5 = vsmask.f32 7950  ;;  %s294_s16 = sand.u32 1, %s6223_s22  }
  0x16   : > { %528 = vmatpush.bf16.msra.mxu0 %v519_v1  ;;  %705 = vmatpush.bf16.msra.mxu1 %v519_v1  ;;  %s299_s13 = scalar_select %p298_p11, %s6231_s24, 1  ;;  %vm6460_vm6 = vmand %vm725_vm4, %vm726_vm5  ;;  %vm913_vm7 = vsmask.f32 256  ;;  %vm1351_vm8 = vcmask 64512   ;;  %vm914_vm9 = vsmask.f32 4368 }
  0x17   : > { %6098 = vmatpush.bf16.msra.mxu3 %v519_v1  ;;  %vm6486_vm10 = vmor %vm913_vm7, %vm914_vm9  ;;  %vm1729_vm11 = vsmask.f32 3328  ;;  %vm1730_vm12 = vsmask.f32 7440  ;;  %s5627_s19 = sshll.u32 %s294_s16, 8  ;;  %vm5467_vm14 = vcmask 261120  }
  0x18   : > { %s6047_s14 = sshll.u32 %s299_s13, 8  ;;  %s6048_s15 = sshll.u32 %s299_s13, 5  ;;  %vm6660_vm13 = vmor %vm1729_vm11, %vm1730_vm12 }
  0x19   : > { %s6342_s18 = scalar_lea.vmem %s8017_s0, %s6047_s14  ;;  %s6347_s27 = scalar_lea.vmem %s8018_s1, %s6048_s15 }
  0x1a   : > { %v321_v2 = vld [vmem:[%s6342_s18] sm:$0xff]  ;;  %v322_v3 = vld [vmem:[%s6342_s18 + $0x8] sm:$0xff]  ;;  %v323_v16 = vld [vmem:[%s6342_s18 + $0x10] sm:$0xff]  ;;  %s7740_s20 = scalar_lea.vmem [#allocation3], %s5627_s19 }
  0x1b   : > { %v674_v4 = vld [vmem:[%s6347_s27] sm:$0xff]  ;;  %v353_v5 = vpack.c.bf16 %v321_v2, %v321_v2  ;;  %v354_v6 = vpack.c.bf16 %v322_v3, %v322_v3  ;;  %v675_v7 = vld [vmem:[%s6347_s27 + $0x8] sm:$0xff]  ;;  %v324_v17 = vld [vmem:[%s6342_s18 + $0x18] sm:$0xff]  ;;  %v355_v18 = vpack.c.bf16 %v323_v16, %v323_v16  ;;  %s5516_s11 = sshll.u32 %s7740_s20, 4  ;;  %s5517_s11 = int_to_ptr.vmem [resolvable:$true] %s5516_s11 }
  0x1c   : > { %v678_v8 = vpack.c.bf16 %v674_v4, %v674_v4  ;;  %v679_v9 = vpack.c.bf16 %v675_v7, %v675_v7  ;;  %v356_v19 = vpack.c.bf16 %v324_v17, %v324_v17  ;;  %v339_v22 = vld [vmem:[%s6342_s18 + $0x90] sm:$0xff]  ;;  %v340_v23 = vld [vmem:[%s6342_s18 + $0x98] sm:$0xff]  ;;  %v325_v30 = vld [vmem:[%s6342_s18 + $0x20] sm:$0xff] }
  0x1d   : > { %v420_v10 = vunpack.c.l.b16 %v353_v5  ;;  %v421_v11 = vunpack.c.l.b16 %v354_v6  ;;  %v422_v20 = vunpack.c.l.b16 %v355_v18  ;;  %v371_v24 = vpack.c.bf16 %v339_v22, %v339_v22  ;;  %v326_v31 = vld [vmem:[%s6342_s18 + $0x28] sm:$0xff]  ;;  %v341_v36 = vld [vmem:[%s6342_s18 + $0xa0] sm:$0xff]  ;;  %v327_v44 = vld [vmem:[%s6342_s18 + $0x30] sm:$0xff] }
  0x1e   : > { %v686_v12 = vunpack.c.l.b16 %v678_v8  ;;  %v687_v13 = vunpack.c.l.b16 %v679_v9  ;;  %v423_v21 = vunpack.c.l.b16 %v356_v19  ;;  %v372_v25 = vpack.c.bf16 %v340_v23, %v340_v23  ;;  %v342_v37 = vld [vmem:[%s6342_s18 + $0xa8] sm:$0xff]  ;;  %v328_v45 = vld [vmem:[%s6342_s18 + $0x38] sm:$0xff]  ;;  %v343_v50 = vld [vmem:[%s6342_s18 + $0xb0] sm:$0xff] }
  0x1f   : > { %v452_v14 = vpack.c.b16 %v421_v11, %v420_v10  ;;  %v438_v27 = vunpack.c.l.b16 %v371_v24  ;;  %v357_v32 = vpack.c.bf16 %v325_v30, %v325_v30  ;;  %v358_v33 = vpack.c.bf16 %v326_v31, %v326_v31  ;;  %v344_v51 = vld [vmem:[%s6342_s18 + $0xb8] sm:$0xff]  ;;  %v329_v58 = vld [vmem:[%s6342_s18 + $0x40] sm:$0xff]  ;;  %v330_v59 = vld [vmem:[%s6342_s18 + $0x48] sm:$0xff] }
  0x20   : > { %v690_v15 = vpack.c.b16 %v687_v13, %v686_v12  ;;  %v453_v26 = vpack.c.b16 %v423_v21, %v422_v20  ;;  %v439_v28 = vunpack.c.l.b16 %v372_v25  ;;  %v373_v38 = vpack.c.bf16 %v341_v36, %v341_v36  ;;  %v345_v0 = vld [vmem:[%s6342_s18 + $0xc0] sm:$0xff]  ;;  %v346_v1 = vld [vmem:[%s6342_s18 + $0xc8] sm:$0xff]  ;;  %v331_v8 = vld [vmem:[%s6342_s18 + $0x50] sm:$0xff] }
  0x21   : > { %5632 = vmatmul.msk.bf16.vlgmr.msra.gmra.mxu0 %vm468_vm1, %v452_v14  ;;  %v424_v34 = vunpack.c.l.b16 %v357_v32  ;;  %v425_v35 = vunpack.c.l.b16 %v358_v33  ;;  %v374_v39 = vpack.c.bf16 %v342_v37, %v342_v37  ;;  %v359_v46 = vpack.c.bf16 %v327_v44, %v327_v44  ;;  %v332_v9 = vld [vmem:[%s6342_s18 + $0x58] sm:$0xff]  ;;  %v347_v14 = vld [vmem:[%s6342_s18 + $0xd0] sm:$0xff]  ;;  %v333_v22 = vld [vmem:[%s6342_s18 + $0x60] sm:$0xff] }
  0x22   : > { %5648 = vmatmul.msk.bf16.vlgmr.msra.gmra.mxu1 %vm468_vm1, %v690_v15  ;;  %v461_v29 = vpack.c.b16 %v439_v28, %v438_v27  ;;  %v440_v41 = vunpack.c.l.b16 %v373_v38  ;;  %v360_v47 = vpack.c.bf16 %v328_v45, %v328_v45  ;;  %v375_v52 = vpack.c.bf16 %v343_v50, %v343_v50  ;;  %v348_v15 = vld [vmem:[%s6342_s18 + $0xd8] sm:$0xff]  ;;  %v334_v23 = vld [vmem:[%s6342_s18 + $0x68] sm:$0xff]  ;;  %v349_v28 = vld [vmem:[%s6342_s18 + $0xe0] sm:$0xff] }
  0x23   : > { %v454_v40 = vpack.c.b16 %v425_v35, %v424_v34  ;;  %v441_v42 = vunpack.c.l.b16 %v374_v39  ;;  %v426_v48 = vunpack.c.l.b16 %v359_v46  ;;  %v376_v53 = vpack.c.bf16 %v344_v51, %v344_v51  ;;  %v676_v36 = vld [vmem:[%s6347_s27 + $0x10] sm:$0xff]  ;;  %v677_v37 = vld [vmem:[%s6347_s27 + $0x18] sm:$0xff]  ;;  %s6097_s27 = sshll.u32 %s6231_s24, 8  ;;  %s5501_s24 = scalar_lea.sflag [#allocation4], %s294_s16 }
  0x24   : > { %5641 = vmatmul.msk.bf16.vlgmr.msra.gmra.mxu3 %vm468_vm1, %v461_v29  ;;  %v427_v49 = vunpack.c.l.b16 %v360_v47  ;;  %v442_v55 = vunpack.c.l.b16 %v375_v52  ;;  %v361_v60 = vpack.c.bf16 %v329_v58, %v329_v58  ;;  %v362_v61 = vpack.c.bf16 %v330_v59, %v330_v59  ;;  %v350_v29 = vld [vmem:[%s6342_s18 + $0xe8] sm:$0xff]  ;;  %v335_v38 = vld [vmem:[%s6342_s18 + $0x70] sm:$0xff]  ;;  %v336_v39 = vld [vmem:[%s6342_s18 + $0x78] sm:$0xff]  ;;  %s5515_s8 = scalar_lea.hbm %s8023_s6, %s6097_s27 }
  0x25   : > { %v462_v43 = vpack.c.b16 %v441_v42, %v440_v41  ;;  %v443_v56 = vunpack.c.l.b16 %v376_v53  ;;  %v377_v2 = vpack.c.bf16 %v345_v0, %v345_v0  ;;  %v378_v3 = vpack.c.bf16 %v346_v1, %v346_v1  ;;  %v352_v50 = vld [vmem:[%s6342_s18 + $0xf8] sm:$0xff]  ;;  %v338_v58 = vld [vmem:[%s6342_s18 + $0x88] sm:$0xff]  ;;  %v5666_v59 = vld [vmem:[%s8021_s4 + $0x4] sm:$0xf]  ;;  %s5518_s12 = sshll.u32 %s5515_s8, 4  ;;  %s5519_s12 = int_to_ptr.hbm [resolvable:$true] %s5518_s12 }
  0x26   : > { %v455_v54 = vpack.c.b16 %v427_v49, %v426_v48  ;;  %v428_v62 = vunpack.c.l.b16 %v361_v60  ;;  %v429_v63 = vunpack.c.l.b16 %v362_v61  ;;  %v363_v10 = vpack.c.bf16 %v331_v8, %v331_v8  ;;  %v351_v49 = vld [vmem:[%s6342_s18 + $0xf0] sm:$0xff]  ;;  %s6175_s13 = sshra.s32 %s5519_s12, 4  ;;  %s6176_s13 = int_to_ptr.hbm [resolvable:$true] %s6175_s13 }
  0x27   : > { %v463_v57 = vpack.c.b16 %v443_v56, %v442_v55  ;;  %v444_v5 = vunpack.c.l.b16 %v377_v2  ;;  %v445_v6 = vunpack.c.l.b16 %v378_v3  ;;  %v364_v11 = vpack.c.bf16 %v332_v9, %v332_v9  ;;  %v6415_v2 = vld [vmem:[%s8020_s3] ss:$0 sm:$0xff]  ;;  %v5796_v3 = vld [vmem:[%s8021_s4 + $0xc] sm:$0xf]  ;;  %s6177_s14 = scalar_lea.hbm %s6176_s13, 256  ;;  %p6182_p1 = scmp.lt.s32.totalorder %s6176_s13, %s8023_s6 }
  0x28   : > { %v456_v4 = vpack.c.b16 %v429_v63, %v428_v62  ;;  %v430_v12 = vunpack.c.l.b16 %v363_v10  ;;  %v379_v16 = vpack.c.bf16 %v347_v14, %v347_v14  ;;  %v380_v17 = vpack.c.bf16 %v348_v15, %v348_v15  ;;  %p6178_p12 = scmp.ne.s32.totalorder %s6176_s13, %s6177_s14 }
  0x29   : > { %v464_v7 = vpack.c.b16 %v445_v6, %v444_v5  ;;  %v431_v13 = vunpack.c.l.b16 %v364_v11  ;;  %v365_v24 = vpack.c.bf16 %v333_v22, %v333_v22  ;;  %v366_v25 = vpack.c.bf16 %v334_v23, %v334_v23  ;;  %v1268_v6 = vld [vmem:[%s8021_s4] sm:$0xf]  ;;  %v731_v23 = vld [vmem:[#allocation2 + $0x1c] sm:$0x8] }
  0x2a   : > { %v446_v19 = vunpack.c.l.b16 %v379_v16  ;;  %v447_v20 = vunpack.c.l.b16 %v380_v17  ;;  %v381_v30 = vpack.c.bf16 %v349_v28, %v349_v28  ;;  %v382_v32 = vpack.c.bf16 %v350_v29, %v350_v29  ;;  %v734_v28 = vld [vmem:[#allocation2 + $0x34] sm:$0x8]  ;;  %p6179_p13 = pnand %p6178_p12, %p6319_p4 }
  0x2b   : > { %v457_v18 = vpack.c.b16 %v431_v13, %v430_v12  ;;  %v433_v27 = vunpack.c.l.b16 %v366_v25  ;;  %v681_v41 = vpack.c.bf16 %v677_v37, %v677_v37  ;;  %v367_v44 = vpack.c.bf16 %v335_v38, %v335_v38  ;;  %v728_v25 = vld [vmem:[#allocation2 + $0x4] sm:$0x8] }
  0x2c   : > { %v465_v21 = vpack.c.b16 %v447_v20, %v446_v19  ;;  %v448_v33 = vunpack.c.l.b16 %v381_v30  ;;  %v449_v34 = vunpack.c.l.b16 %v382_v32  ;;  %v368_v45 = vpack.c.bf16 %v336_v39, %v336_v39  ;;  %v737_v39 = vld [vmem:[#allocation2 + $0x4c] sm:$0x8]  ;;  %p6180_p0 = pneg %p6179_p13 }
  0x2d   : > { %v434_v47 = vunpack.c.l.b16 %v367_v44  ;;  %v383_v51 = vpack.c.bf16 %v351_v49, %v351_v49  ;;  %v384_v52 = vpack.c.bf16 %v352_v50, %v352_v50  ;;  %v1402_v60 = vsel %vm1400_vm3, %v5666_v59, 0 }
  0x2e   : > { %v466_v35 = vpack.c.b16 %v449_v34, %v448_v33  ;;  %v435_v48 = vunpack.c.l.b16 %v368_v45  ;;  %v370_v62 = vpack.c.bf16 %v338_v58, %v338_v58  ;;  %1411 = vmatpush.bf16.msrb.mxu1 %v1402_v60  ;;  %6099 = vmatpush.bf16.msra.mxu2 %v1402_v60  ;;  %v6241_v63 = vmov 0  }
  0x2f   : > { %v451_v55 = vunpack.c.l.b16 %v384_v52  ;;  %783 = vst.msk [vmem:[#allocation2 + $0x10] sm:$0xf] %vm782_vm2, %v6241_v63  ;;  %v2837_v5 = vsel %vm1400_vm3, %v5796_v3, 0  ;;  %v1590_v8 = vsel %vm1400_vm3, %v1268_v6, 0  ;;  %v8027_v22 = vmov 0 }
  0x30   : > { %v459_v53 = vpack.c.b16 %v435_v48, %v434_v47  ;;  %785 = vst.msk [vmem:[#allocation2 + $0x28] sm:$0xf] %vm782_vm2, %v6241_v63  ;;  %v437_v1 = vunpack.c.l.b16 %v370_v62  ;;  %2846 = vmatpush.bf16.msrb.mxu0 %v2837_v5  ;;  %1599 = vmatpush.bf16.msrb.mxu3 %v1590_v8  ;;  %v8028_v22 = vsel %vm6460_vm6, 4294967295, %v8027_v22  ;;  %v732_v29 = vsel %vm6460_vm6, 0, %v731_v23 }
  0x31   : > { %5633 = vmatmul.msk.bf16.gmra.mxu0 %vm468_vm1, %v453_v26  ;;  %v432_v26 = vunpack.c.l.b16 %v365_v24  ;;  %787 = vst.msk [vmem:[#allocation2 + $0x40] sm:$0xf] %vm782_vm2, %v6241_v63  ;;  %v729_v32 = vsel %vm6460_vm6, 0, %v728_v25 }
  0x32   : > { %789 = vst.msk [vmem:[#allocation2 + $0x58] sm:$0xf] %vm782_vm2, %v6241_v63 }
  0x33   : > { %v458_v31 = vpack.c.b16 %v433_v27, %v432_v26  ;;  %791 = vst.msk [vmem:[#allocation2 + $0x70] sm:$0xf] %vm782_vm2, %v6241_v63 }
  0x34   : > { %5642 = vmatmul.msk.bf16.gmra.mxu3 %vm468_vm1, %v462_v43  ;;  %v689_v43 = vunpack.c.l.b16 %v681_v41  ;;  %793 = vst.msk [vmem:[#allocation2 + $0x88] sm:$0xf] %vm782_vm2, %v6241_v63  ;;  %v738_v41 = vsel %vm6460_vm6, 0, %v737_v39 }
  0x35   : > { %795 = vst.msk [vmem:[#allocation2 + $0xa0] sm:$0xf] %vm782_vm2, %v6241_v63 }
  0x36   : > { %797 = vst.msk [vmem:[#allocation2 + $0xb8] sm:$0xf] %vm782_vm2, %v6241_v63 }
  0x37   : > { %799 = vst.msk [vmem:[#allocation2 + $0xd0] sm:$0xf] %vm782_vm2, %v6241_v63 }
  0x38   : > { %801 = vst.msk [vmem:[#allocation2 + $0xe8] sm:$0xf] %vm782_vm2, %v6241_v63 }
  0x39   : > { %803 = vst.msk [vmem:[#allocation2 + $0x100] sm:$0xf] %vm782_vm2, %v6241_v63 }
  0x3a   : > { %805 = vst.msk [vmem:[#allocation2 + $0x118] sm:$0xf] %vm782_vm2, %v6241_v63 }
  0x3b   : > { %807 = vst.msk [vmem:[#allocation2 + $0x130] sm:$0xf] %vm782_vm2, %v6241_v63 }
  0x3c   : > { %809 = vst.msk [vmem:[#allocation2 + $0x148] sm:$0xf] %vm782_vm2, %v6241_v63 }
  0x3d   : > { %811 = vst.msk [vmem:[#allocation2 + $0x160] sm:$0xf] %vm782_vm2, %v6241_v63 }
  0x3e   : > { %813 = vst.msk [vmem:[#allocation2 + $0x178] sm:$0xf] %vm782_vm2, %v6241_v63 }
  0x3f   : > { %8029 = vst [vmem:[#allocation6_spill] sm:$0xff] %v8028_v22 }
  0x40   : > { %815 = vst.msk [vmem:[#allocation2 + $0x190] sm:$0xf] %vm782_vm2, %v6241_v63 }
  0x41   : > { %5634 = vmatmul.msk.bf16.gmra.mxu0 %vm468_vm1, %v454_v40  ;;  %v680_v40 = vpack.c.bf16 %v676_v36, %v676_v36  ;;  %817 = vst.msk [vmem:[#allocation2 + $0x1a8] sm:$0xf] %vm782_vm2, %v6241_v63 }
  0x42   : > { %733 = vst [vmem:[#allocation2 + $0x1c] sm:$0x8] %v732_v29 }
  0x43   : > { %v688_v42 = vunpack.c.l.b16 %v680_v40  ;;  %730 = vst [vmem:[#allocation2 + $0x4] sm:$0x8] %v729_v32 }
  0x44   : > { %5643 = vmatmul.msk.bf16.gmra.mxu3 %vm468_vm1, %v463_v57  ;;  %v337_v57 = vld [vmem:[%s6342_s18 + $0x80] sm:$0xff]  ;;  %739 = vst [vmem:[#allocation2 + $0x4c] sm:$0x8] %v738_v41  ;;  %s6181_s18 = scalar_lea.hbm %s8023_s6, 512 }
  0x45   : > { %v691_v46 = vpack.c.b16 %v689_v43, %v688_v42  ;;  %v369_v61 = vpack.c.bf16 %v337_v57, %v337_v57  ;;  %p6183_p2 = scmp.lt.s32.totalorder %s6181_s18, %s6177_s14 }
  0x47   : > { %5649 = vmatmul.msk.bf16.gmra.mxu1 %vm468_vm1, %v691_v46  ;;  %v436_v0 = vunpack.c.l.b16 %v369_v61  ;;  %p6184_p3 = por %p6183_p2, %p6182_p1 }
  0x49   : > { %p6185_p5 = pnand %p6184_p3, %p6180_p0 }
  0x4a   : > { %v865_v60 = vld [vmem:[#allocation2 + $0x4] sm:$0x8] }
  0x51   : > { %5635 = vmatmul.msk.bf16.gmra.mxu0 %vm468_vm1, %v455_v54  ;;  %v450_v54 = vunpack.c.l.b16 %v383_v51 }
  0x53   : > { %v467_v56 = vpack.c.b16 %v451_v55, %v450_v54  ;;  %v2338_v54 = vld [vmem:[#allocation2 + $0x1c] sm:$0x8] }
  0x54   : > { %5644 = vmatmul.msk.bf16.gmra.mxu3 %vm468_vm1, %v464_v7  ;;  %v2387_v58 = vshrl.u32 %v2338_v54, 16  ;;  %v740_v54 = vld [vmem:[#allocation2 + $0x64] sm:$0x8] }
  0x61   : > { %5636 = vmatmul.msk.bf16.gmra.mxu0 %vm468_vm1, %v456_v4  ;;  %v460_v4 = vpack.c.b16 %v437_v1, %v436_v0  ;;  %v4771_v1 = vld [vmem:[#allocation2 + $0x100] sm:$0x1] }
  0x64   : > { %5645 = vmatmul.msk.bf16.gmra.mxu3 %vm468_vm1, %v465_v21 }
  0x71   : > { %5637 = vmatmul.msk.bf16.gmra.mxu0 %vm468_vm1, %v457_v18 }
  0x74   : > { %5646 = vmatmul.msk.bf16.gmra.mxu3 %vm468_vm1, %v466_v35  ;;  %v735_v35 = vsel %vm6460_vm6, 0, %v734_v28 }
  0x75   : > { %736 = vst [vmem:[#allocation2 + $0x34] sm:$0x8] %v735_v35 }
  0x81   : > { %5638 = vmatmul.msk.bf16.gmra.mxu0 %vm468_vm1, %v458_v31 }
  0x84   : > { %5647 = vmatmul.msk.bf16.gmra.mxu3 %vm468_vm1, %v467_v56 }
  0x91   : > { %5639 = vmatmul.msk.bf16.gmra.mxu0 %vm468_vm1, %v459_v53 }
  0x9e   : > { %v530_v7 = vpop.f32.mrf.mxu0 }
  0x9f   : > { %v531_v9 = vadd.f32 %v6415_v2, %v530_v7  ;;  %v707_v10 = vpop.f32.mrf.mxu1  ;;  %v5780_v7 = vrot.slane %v2387_v58, 11 }
  0xa0   : > { %v708_v11 = vadd.f32 %v6415_v2, %v707_v10 }
  0xa1   : > { %v610_v12 = vmax.f32 %v531_v9, 0.0  ;;  %5640 = vmatmul.msk.bf16.gmra.mxu0 %vm468_vm1, %v460_v4  ;;  %v917_v4 = vshrl.u32 %v865_v60, 16 }
  0xa2   : > { %v717_v13 = vmax.f32 %v708_v11, 0.0 }
  0xa3   : > { %v642_v14 = vpack.c.bf16 %v610_v12, %v610_v12  ;;  %v5650_v10 = vrot.slane %v917_v4, 11 }
  0xa4   : > { %v721_v15 = vpack.c.bf16 %v717_v13, %v717_v13 }
  0xa5   : > { %825 = vst.msk [vmem:[#allocation2 + $0x20] sm:$0xf] %vm782_vm2, %v642_v14 }
  0xa6   : > { %819 = vst.msk [vmem:[#allocation2 + $0x8] sm:$0xf] %vm782_vm2, %v721_v15  ;;  %v532_v16 = vpop.f32.mrf.mxu0 }
  0xa7   : > { %861 = vst.msk [vmem:[#allocation2 + $0x8] sm:$0xf] %vm782_vm2, %v6241_v63  ;;  %v533_v17 = vadd.f32 %v6415_v2, %v532_v16  ;;  %v709_v18 = vpop.f32.mrf.mxu1  ;;  %v575_v47 = vpop.f32.mrf.mxu3 }
  0xa8   : > { %v710_v19 = vadd.f32 %v6415_v2, %v709_v18 }
  0xa9   : > { %v611_v20 = vmax.f32 %v533_v17, 0.0  ;;  %v576_v17 = vadd.f32 %v6415_v2, %v575_v47 }
  0xaa   : > { %v718_v21 = vmax.f32 %v710_v19, 0.0 }
  0xab   : > { %v643_v24 = vpack.c.bf16 %v611_v20, %v611_v20 }
  0xac   : > { %v722_v26 = vpack.c.bf16 %v718_v21, %v718_v21  ;;  %v2339_v27 = vld [vmem:[#allocation2 + $0x20] sm:$0xf] }
  0xad   : > { %826 = vst.msk [vmem:[#allocation2 + $0x24] sm:$0xf] %vm782_vm2, %v643_v24  ;;  %v2392_v31 = vshrl.u32 %v2339_v27, 16  ;;  %v2395_v43 = vshll.u32 %v2339_v27, 16  ;;  %v869_v12 = vld [vmem:[#allocation2 + $0x20] sm:$0xf] }
  0xae   : > { %820 = vst.msk [vmem:[#allocation2 + $0xc] sm:$0xf] %vm782_vm2, %v722_v26  ;;  %v535_v30 = vpop.f32.mrf.mxu0  ;;  %v866_v33 = vld [vmem:[#allocation2 + $0x8] sm:$0xf]  ;;  %v2341_v27 = vld [vmem:[#allocation2 + $0x34] sm:$0x8] }
  0xaf   : > { %862 = vst.msk [vmem:[#allocation2 + $0xc] sm:$0xf] %vm782_vm2, %v6241_v63  ;;  %v536_v34 = vadd.f32 %v6415_v2, %v535_v30  ;;  %v922_v36 = vshrl.u32 %v866_v33, 16  ;;  %v2394_v38 = vrot.slane %v2392_v31, 7  ;;  %v925_v45 = vshll.u32 %v866_v33, 16  ;;  %v577_v23 = vpop.f32.mrf.mxu3 }
  0xb0   : > { %v944_v28 = vshrl.u32 %v869_v12, 16  ;;  %v868_v31 = vld [vmem:[#allocation2 + $0x1c] sm:$0x8]  ;;  %v947_v47 = vshll.u32 %v869_v12, 16 }
  0xb1   : > { %v612_v37 = vmax.f32 %v536_v34, 0.0  ;;  %v924_v44 = vrot.slane %v922_v36, 7  ;;  %v2397_v50 = vor.u32 %v2395_v43, %v2394_v38  ;;  %v2399_v59 = vrot.slane %v2394_v38, 4 }
  0xb2   : > { %v628_v34 = vmax.f32 %v576_v17, 0.0  ;;  %v2409_v36 = vshrl.u32 %v2341_v27, 16  ;;  %v578_v38 = vadd.f32 %v6415_v2, %v577_v23  ;;  %v939_v39 = vshrl.u32 %v868_v31, 16  ;;  %v871_v23 = vld [vmem:[#allocation2 + $0x34] sm:$0x8] }
  0xb3   : > { %v644_v40 = vpack.c.bf16 %v612_v37, %v612_v37  ;;  %v927_v61 = vor.u32 %v925_v45, %v924_v44  ;;  %v929_v62 = vrot.slane %v924_v44, 4  ;;  %v2398_v13 = vsel %vm6486_vm10, %v5780_v7, %v2397_v50 }
  0xb4   : > { %v2340_v42 = vld [vmem:[#allocation2 + $0x24] sm:$0xf]  ;;  %v2740_v18 = vunpack.c.l.b16 %v2398_v13  ;;  %v629_v45 = vmax.f32 %v578_v38, 0.0  ;;  %v961_v38 = vshrl.u32 %v871_v23, 16 }
  0xb5   : > { %827 = vst.msk [vmem:[#allocation2 + $0x38] sm:$0xf] %vm782_vm2, %v644_v40  ;;  %v2401_v46 = vshrl.u32 %v2340_v42, 16  ;;  %v2404_v51 = vshll.u32 %v2340_v42, 16  ;;  %v870_v6 = vld [vmem:[#allocation2 + $0x24] sm:$0xf]  ;;  %v928_v19 = vsel %vm6486_vm10, %v5650_v10, %v927_v61  ;;  %v660_v42 = vpack.c.bf16 %v628_v34, %v628_v34 }
  0xb6   : > { %v537_v48 = vpop.f32.mrf.mxu0  ;;  %v6049_v49 = vld [vmem:[#allocation2 + $0x8] sm:$0xff]  ;;  %v953_v16 = vshrl.u32 %v870_v6, 16  ;;  %v1493_v25 = vunpack.c.l.b16 %v928_v19  ;;  %v946_v40 = vrot.slane %v944_v28, 7  ;;  %v956_v41 = vshll.u32 %v870_v6, 16 }
  0xb7   : > { %v867_v52 = vld [vmem:[#allocation2 + $0xc] sm:$0xf]  ;;  %v538_v53 = vadd.f32 %v6415_v2, %v537_v48  ;;  %v2403_v55 = vrot.slane %v2401_v46, 7  ;;  %5731 = vmatmul.msk.bf16.vlgmr.msrb.gmra.mxu1 %vm1351_vm8, %v6049_v49  ;;  %843 = vst.msk [vmem:[#allocation2 + $0xf8] sm:$0xf] %vm782_vm2, %v660_v42  ;;  %v5781_v49 = vrot.slane %v2409_v36, 11 }
  0xb8   : > { %v931_v56 = vshrl.u32 %v867_v52, 16  ;;  %v934_v57 = vshll.u32 %v867_v52, 16  ;;  %v955_v33 = vrot.slane %v953_v16, 7  ;;  %v661_v52 = vpack.c.bf16 %v629_v45, %v629_v45  ;;  %v2344_v28 = vld [vmem:[#allocation2 + $0x4c] sm:$0x8] }
  0xb9   : > { %v613_v0 = vmax.f32 %v538_v53, 0.0  ;;  %v2406_v3 = vor.u32 %v2404_v51, %v2403_v55  ;;  %v580_v53 = vpop.f32.mrf.mxu3  ;;  %v949_v58 = vor.u32 %v947_v47, %v946_v40  ;;  %v2431_v36 = vshrl.u32 %v2344_v28, 16 }
  0xba   : > { %v933_v5 = vrot.slane %v931_v56, 7  ;;  %v958_v48 = vor.u32 %v956_v41, %v955_v33  ;;  %v6050_v56 = vld [vmem:[#allocation2 + $0x20] sm:$0xff]  ;;  %844 = vst.msk [vmem:[#allocation2 + $0xfc] sm:$0xf] %vm782_vm2, %v661_v52 }
  0xbb   : > { %v645_v8 = vpack.c.bf16 %v613_v0, %v613_v0  ;;  %v2407_v9 = vsel %vm6486_vm10, %v2399_v59, %v2406_v3  ;;  %v951_v59 = vrot.slane %v946_v40, 4  ;;  %v581_v0 = vadd.f32 %v6415_v2, %v580_v53 }
  0xbc   : > { %v936_v11 = vor.u32 %v934_v57, %v933_v5  ;;  %v2741_v14 = vunpack.c.l.b16 %v2407_v9  ;;  %v2342_v15 = vld [vmem:[#allocation2 + $0x38] sm:$0xf]  ;;  %v5651_v57 = vrot.slane %v939_v39, 11  ;;  %v741_v5 = vsel %vm6460_vm6, 0, %v740_v54  ;;  %v743_v39 = vld [vmem:[#allocation2 + $0x7c] sm:$0x8] }
  0xbd   : > { %828 = vst.msk [vmem:[#allocation2 + $0x3c] sm:$0xf] %vm782_vm2, %v645_v8  ;;  %v2414_v21 = vshrl.u32 %v2342_v15, 16  ;;  %v2417_v44 = vshll.u32 %v2342_v15, 16  ;;  %v959_v4 = vsel %vm6486_vm10, %v951_v59, %v958_v48  ;;  %v630_v10 = vmax.f32 %v581_v0, 0.0 }
  0xbe   : > { %v937_v20 = vsel %vm6486_vm10, %v929_v62, %v936_v11  ;;  %v540_v24 = vpop.f32.mrf.mxu0  ;;  %v2772_v30 = vpack.c.b16 %v2741_v14, %v2740_v18  ;;  %742 = vst [vmem:[#allocation2 + $0x64] sm:$0x8] %v741_v5  ;;  %v950_v13 = vsel %vm6486_vm10, %v5651_v57, %v949_v58  ;;  %v872_v14 = vld [vmem:[#allocation2 + $0x38] sm:$0xf]  ;;  %v1496_v18 = vunpack.c.l.b16 %v959_v4 }
  0xbf   : > { %v1494_v26 = vunpack.c.l.b16 %v937_v20  ;;  %v541_v29 = vadd.f32 %v6415_v2, %v540_v24  ;;  %v2416_v37 = vrot.slane %v2414_v21, 7  ;;  %v662_v15 = vpack.c.bf16 %v630_v10, %v630_v10 }
  0xc0   : > { %5797 = vmatmul.msk.bf16.vlgmr.msrb.gmra.mxu0 %vm1351_vm8, %v2772_v30  ;;  %v1495_v27 = vunpack.c.l.b16 %v950_v13  ;;  %v5782_v48 = vrot.slane %v2431_v36, 11  ;;  %v746_v36 = vld [vmem:[#allocation2 + $0x94] sm:$0x8] }
  0xc1   : > { %v1525_v32 = vpack.c.b16 %v1494_v26, %v1493_v25  ;;  %v614_v35 = vmax.f32 %v541_v29, 0.0  ;;  %v2419_v50 = vor.u32 %v2417_v44, %v2416_v37  ;;  %v2421_v3 = vrot.slane %v2416_v37, 4  ;;  %v582_v24 = vpop.f32.mrf.mxu3  ;;  %845 = vst.msk [vmem:[#allocation2 + $0x110] sm:$0xf] %vm782_vm2, %v662_v15 }
  0xc2   : > { %v966_v29 = vshrl.u32 %v872_v14, 16  ;;  %v583_v30 = vadd.f32 %v6415_v2, %v582_v24 }
  0xc3   : > { %5747 = vmatmul.msk.bf16.vlgmr.msrb.gmra.mxu3 %vm1351_vm8, %v1525_v32  ;;  %v646_v43 = vpack.c.bf16 %v614_v35, %v614_v35  ;;  %v2420_v7 = vsel %vm6486_vm10, %v5781_v49, %v2419_v50  ;;  %v1526_v32 = vpack.c.b16 %v1496_v18, %v1495_v27 }
  0xc4   : > { %v2343_v46 = vld [vmem:[#allocation2 + $0x3c] sm:$0xf]  ;;  %v2742_v16 = vunpack.c.l.b16 %v2420_v7  ;;  %v631_v34 = vmax.f32 %v583_v30, 0.0  ;;  %v968_v40 = vrot.slane %v966_v29, 7 }
  0xc5   : > { %829 = vst.msk [vmem:[#allocation2 + $0x50] sm:$0xf] %vm782_vm2, %v646_v43  ;;  %v2423_v51 = vshrl.u32 %v2343_v46, 16  ;;  %v2426_v62 = vshll.u32 %v2343_v46, 16  ;;  %v873_v9 = vld [vmem:[#allocation2 + $0x3c] sm:$0xf] }
  0xc6   : > { %v542_v55 = vpop.f32.mrf.mxu0  ;;  %v975_v20 = vshrl.u32 %v873_v9, 16  ;;  %v978_v41 = vshll.u32 %v873_v9, 16  ;;  %v663_v42 = vpack.c.bf16 %v631_v34, %v631_v34  ;;  %v744_v43 = vsel %vm6460_vm6, 0, %v743_v39  ;;  %v6051_v54 = vld [vmem:[#allocation2 + $0x38] sm:$0xff]  ;;  %v2347_v24 = vld [vmem:[#allocation2 + $0x64] sm:$0x8] }
  0xc7   : > { %v543_v60 = vadd.f32 %v6415_v2, %v542_v55  ;;  %v2425_v61 = vrot.slane %v2423_v51, 7  ;;  %5732 = vmatmul.msk.bf16.gmra.mxu1 %vm1351_vm8, %v6050_v56  ;;  %745 = vst [vmem:[#allocation2 + $0x7c] sm:$0x8] %v744_v43  ;;  %v969_v51 = vshll.u32 %v872_v14, 16  ;;  %v5652_v55 = vrot.slane %v961_v38, 11 }
  0xc8   : > { %v977_v33 = vrot.slane %v975_v20, 7  ;;  %846 = vst.msk [vmem:[#allocation2 + $0x114] sm:$0xf] %vm782_vm2, %v663_v42  ;;  %v973_v56 = vrot.slane %v968_v40, 4 }
  0xc9   : > { %v615_v6 = vmax.f32 %v543_v60, 0.0  ;;  %v2428_v8 = vor.u32 %v2426_v62, %v2425_v61  ;;  %v585_v52 = vpop.f32.mrf.mxu3  ;;  %v971_v61 = vor.u32 %v969_v51, %v968_v40  ;;  %v747_v40 = vsel %vm6460_vm6, 0, %v746_v36 }
  0xca   : > { %v980_v47 = vor.u32 %v978_v41, %v977_v33  ;;  %v586_v57 = vadd.f32 %v6415_v2, %v585_v52  ;;  %v2453_v33 = vshrl.u32 %v2347_v24, 16  ;;  %748 = vst [vmem:[#allocation2 + $0x94] sm:$0x8] %v747_v40 }
  0xcb   : > { %v647_v11 = vpack.c.bf16 %v615_v6, %v615_v6  ;;  %v2429_v12 = vsel %vm6486_vm10, %v2421_v3, %v2428_v8 }
  0xcc   : > { %v2743_v17 = vunpack.c.l.b16 %v2429_v12  ;;  %v2345_v19 = vld [vmem:[#allocation2 + $0x50] sm:$0xf]  ;;  %v981_v62 = vsel %vm6486_vm10, %v973_v56, %v980_v47  ;;  %v632_v0 = vmax.f32 %v586_v57, 0.0 }
  0xcd   : > { %830 = vst.msk [vmem:[#allocation2 + $0x54] sm:$0xf] %vm782_vm2, %v647_v11  ;;  %v2436_v21 = vshrl.u32 %v2345_v19, 16  ;;  %v2439_v45 = vshll.u32 %v2345_v19, 16  ;;  %v972_v11 = vsel %vm6486_vm10, %v5652_v55, %v971_v61  ;;  %v875_v12 = vld [vmem:[#allocation2 + $0x50] sm:$0xf]  ;;  %v1498_v15 = vunpack.c.l.b16 %v981_v62 }
  0xce   : > { %v545_v25 = vpop.f32.mrf.mxu0  ;;  %v2773_v26 = vpack.c.b16 %v2743_v17, %v2742_v16  ;;  %v664_v8 = vpack.c.bf16 %v632_v0, %v632_v0  ;;  %v1497_v23 = vunpack.c.l.b16 %v972_v11 }
  0xcf   : > { %v546_v31 = vadd.f32 %v6415_v2, %v545_v25  ;;  %v2438_v37 = vrot.slane %v2436_v21, 7  ;;  %v874_v25 = vld [vmem:[#allocation2 + $0x4c] sm:$0x8] }
  0xd0   : > { %5798 = vmatmul.msk.bf16.gmra.mxu0 %vm1351_vm8, %v2773_v26  ;;  %847 = vst.msk [vmem:[#allocation2 + $0x128] sm:$0xf] %vm782_vm2, %v664_v8  ;;  %v988_v26 = vshrl.u32 %v875_v12, 16  ;;  %v1527_v29 = vpack.c.b16 %v1498_v15, %v1497_v23  ;;  %v2350_v15 = vld [vmem:[#allocation2 + $0x7c] sm:$0x8] }
  0xd1   : > { %v616_v35 = vmax.f32 %v546_v31, 0.0  ;;  %v2441_v49 = vor.u32 %v2439_v45, %v2438_v37  ;;  %v2443_v5 = vrot.slane %v2438_v37, 4  ;;  %v587_v19 = vpop.f32.mrf.mxu3  ;;  %v5783_v45 = vrot.slane %v2453_v33, 11  ;;  %v749_v33 = vld [vmem:[#allocation2 + $0xac] sm:$0x8] }
  0xd2   : > { %v588_v27 = vadd.f32 %v6415_v2, %v587_v19  ;;  %v990_v37 = vrot.slane %v988_v26, 7 }
  0xd3   : > { %5748 = vmatmul.msk.bf16.gmra.mxu3 %vm1351_vm8, %v1526_v32  ;;  %v648_v44 = vpack.c.bf16 %v616_v35, %v616_v35  ;;  %v2442_v4 = vsel %vm6486_vm10, %v5782_v48, %v2441_v49  ;;  %v983_v35 = vshrl.u32 %v874_v25, 16  ;;  %v991_v48 = vshll.u32 %v875_v12, 16 }
  0xd4   : > { %v2346_v46 = vld [vmem:[#allocation2 + $0x54] sm:$0xf]  ;;  %v2744_v13 = vunpack.c.l.b16 %v2442_v4  ;;  %v633_v31 = vmax.f32 %v588_v27, 0.0  ;;  %v2475_v27 = vshrl.u32 %v2350_v15, 16 }
  0xd5   : > { %831 = vst.msk [vmem:[#allocation2 + $0x68] sm:$0xf] %vm782_vm2, %v648_v44  ;;  %v2445_v50 = vshrl.u32 %v2346_v46, 16  ;;  %v2448_v60 = vshll.u32 %v2346_v46, 16  ;;  %v876_v7 = vld [vmem:[#allocation2 + $0x54] sm:$0xf] }
  0xd6   : > { %v547_v53 = vpop.f32.mrf.mxu0  ;;  %v997_v17 = vshrl.u32 %v876_v7, 16  ;;  %v1000_v38 = vshll.u32 %v876_v7, 16  ;;  %v665_v39 = vpack.c.bf16 %v633_v31, %v633_v31  ;;  %v6052_v51 = vld [vmem:[#allocation2 + $0x50] sm:$0xff]  ;;  %v5653_v52 = vrot.slane %v983_v35, 11 }
  0xd7   : > { %v548_v58 = vadd.f32 %v6415_v2, %v547_v53  ;;  %v2447_v59 = vrot.slane %v2445_v50, 7  ;;  %5733 = vmatmul.msk.bf16.gmra.mxu1 %vm1351_vm8, %v6051_v54  ;;  %v995_v53 = vrot.slane %v990_v37, 4 }
  0xd8   : > { %v999_v30 = vrot.slane %v997_v17, 7  ;;  %848 = vst.msk [vmem:[#allocation2 + $0x12c] sm:$0xf] %vm782_vm2, %v665_v39 }
  0xd9   : > { %v617_v3 = vmax.f32 %v548_v58, 0.0  ;;  %v2450_v6 = vor.u32 %v2448_v60, %v2447_v59  ;;  %v590_v49 = vpop.f32.mrf.mxu3  ;;  %v993_v58 = vor.u32 %v991_v48, %v990_v37  ;;  %v750_v37 = vsel %vm6460_vm6, 0, %v749_v33 }
  0xda   : > { %v1002_v44 = vor.u32 %v1000_v38, %v999_v30  ;;  %v591_v54 = vadd.f32 %v6415_v2, %v590_v49  ;;  %751 = vst [vmem:[#allocation2 + $0xac] sm:$0x8] %v750_v37 }
  0xdb   : > { %v649_v9 = vpack.c.bf16 %v617_v3, %v617_v3  ;;  %v2451_v10 = vsel %vm6486_vm10, %v2443_v5, %v2450_v6  ;;  %v994_v8 = vsel %vm6486_vm10, %v5653_v52, %v993_v58 }
  0xdc   : > { %v2745_v14 = vunpack.c.l.b16 %v2451_v10  ;;  %v2348_v16 = vld [vmem:[#allocation2 + $0x68] sm:$0xf]  ;;  %v1003_v59 = vsel %vm6486_vm10, %v995_v53, %v1002_v44  ;;  %v634_v60 = vmax.f32 %v591_v54, 0.0 }
  0xdd   : > { %832 = vst.msk [vmem:[#allocation2 + $0x6c] sm:$0xf] %vm782_vm2, %v649_v9  ;;  %v2458_v18 = vshrl.u32 %v2348_v16, 16  ;;  %v2461_v42 = vshll.u32 %v2348_v16, 16  ;;  %v878_v9 = vld [vmem:[#allocation2 + $0x68] sm:$0xf]  ;;  %v1500_v12 = vunpack.c.l.b16 %v1003_v59 }
  0xde   : > { %v550_v20 = vpop.f32.mrf.mxu0  ;;  %v2774_v21 = vpack.c.b16 %v2745_v14, %v2744_v13  ;;  %v666_v5 = vpack.c.bf16 %v634_v60, %v634_v60  ;;  %v1010_v23 = vshrl.u32 %v878_v9, 16  ;;  %v880_v60 = vld [vmem:[#allocation2 + $0x7c] sm:$0x8] }
  0xdf   : > { %v551_v28 = vadd.f32 %v6415_v2, %v550_v20  ;;  %v2460_v34 = vrot.slane %v2458_v18, 7  ;;  %v1499_v20 = vunpack.c.l.b16 %v994_v8 }
  0xe0   : > { %5799 = vmatmul.msk.bf16.gmra.mxu0 %vm1351_vm8, %v2774_v21  ;;  %849 = vst.msk [vmem:[#allocation2 + $0x140] sm:$0xf] %vm782_vm2, %v666_v5  ;;  %v877_v21 = vld [vmem:[#allocation2 + $0x64] sm:$0x8] }
  0xe1   : > { %v618_v32 = vmax.f32 %v551_v28, 0.0  ;;  %v2463_v46 = vor.u32 %v2461_v42, %v2460_v34  ;;  %v2465_v0 = vrot.slane %v2460_v34, 4  ;;  %v592_v17 = vpop.f32.mrf.mxu3  ;;  %v1528_v26 = vpack.c.b16 %v1500_v12, %v1499_v20 }
  0xe2   : > { %v593_v24 = vadd.f32 %v6415_v2, %v592_v17  ;;  %v1012_v34 = vrot.slane %v1010_v23, 7 }
  0xe3   : > { %5749 = vmatmul.msk.bf16.gmra.mxu3 %vm1351_vm8, %v1527_v29  ;;  %v650_v41 = vpack.c.bf16 %v618_v32, %v618_v32  ;;  %v2464_v62 = vsel %vm6486_vm10, %v5783_v45, %v2463_v46  ;;  %v1005_v32 = vshrl.u32 %v877_v21, 16  ;;  %v1013_v45 = vshll.u32 %v878_v9, 16 }
  0xe4   : > { %v2349_v43 = vld [vmem:[#allocation2 + $0x6c] sm:$0xf]  ;;  %v2746_v10 = vunpack.c.l.b16 %v2464_v62  ;;  %v635_v29 = vmax.f32 %v593_v24, 0.0 }
  0xe5   : > { %833 = vst.msk [vmem:[#allocation2 + $0x80] sm:$0xf] %vm782_vm2, %v650_v41  ;;  %v2467_v47 = vshrl.u32 %v2349_v43, 16  ;;  %v2470_v57 = vshll.u32 %v2349_v43, 16  ;;  %v879_v4 = vld [vmem:[#allocation2 + $0x6c] sm:$0xf] }
  0xe6   : > { %v552_v50 = vpop.f32.mrf.mxu0  ;;  %v1019_v14 = vshrl.u32 %v879_v4, 16  ;;  %v1022_v35 = vshll.u32 %v879_v4, 16  ;;  %v667_v36 = vpack.c.bf16 %v635_v29, %v635_v29  ;;  %v5784_v41 = vrot.slane %v2475_v27, 11  ;;  %v6053_v49 = vld [vmem:[#allocation2 + $0x68] sm:$0xff] }
  0xe7   : > { %v553_v55 = vadd.f32 %v6415_v2, %v552_v50  ;;  %v2469_v56 = vrot.slane %v2467_v47, 7  ;;  %5734 = vmatmul.msk.bf16.gmra.mxu1 %vm1351_vm8, %v6052_v51  ;;  %v5654_v50 = vrot.slane %v1005_v32, 11  ;;  %v1017_v51 = vrot.slane %v1012_v34, 4 }
  0xe8   : > { %v1021_v28 = vrot.slane %v1019_v14, 7  ;;  %850 = vst.msk [vmem:[#allocation2 + $0x144] sm:$0xf] %vm782_vm2, %v667_v36 }
  0xe9   : > { %v619_v61 = vmax.f32 %v553_v55, 0.0  ;;  %v2472_v3 = vor.u32 %v2470_v57, %v2469_v56  ;;  %v595_v47 = vpop.f32.mrf.mxu3  ;;  %v1015_v57 = vor.u32 %v1013_v45, %v1012_v34 }
  0xea   : > { %v1024_v42 = vor.u32 %v1022_v35, %v1021_v28  ;;  %v596_v53 = vadd.f32 %v6415_v2, %v595_v47 }
  0xeb   : > { %v651_v6 = vpack.c.bf16 %v619_v61, %v619_v61  ;;  %v2473_v7 = vsel %vm6486_vm10, %v2465_v0, %v2472_v3  ;;  %v1016_v9 = vsel %vm6486_vm10, %v5654_v50, %v1015_v57  ;;  %v712_v50 = vpop.f32.mrf.mxu1  ;;  %v5763_v57 = vld [vmem:[%s8021_s4 + $0x8] sm:$0xf] }
  0xec   : > { %v2747_v11 = vunpack.c.l.b16 %v2473_v7  ;;  %v2351_v13 = vld [vmem:[#allocation2 + $0x80] sm:$0xf]  ;;  %v1025_v59 = vsel %vm6486_vm10, %v1017_v51, %v1024_v42  ;;  %v636_v62 = vmax.f32 %v596_v53, 0.0  ;;  %v1501_v24 = vunpack.c.l.b16 %v1016_v9 }
  0xed   : > { %834 = vst.msk [vmem:[#allocation2 + $0x84] sm:$0xf] %vm782_vm2, %v651_v6  ;;  %v2480_v16 = vshrl.u32 %v2351_v13, 16  ;;  %v2483_v39 = vshll.u32 %v2351_v13, 16  ;;  %v881_v46 = vld [vmem:[#allocation2 + $0x80] sm:$0xf]  ;;  %v1502_v14 = vunpack.c.l.b16 %v1025_v59 }
  0xee   : > { %v555_v18 = vpop.f32.mrf.mxu0  ;;  %v2775_v19 = vpack.c.b16 %v2747_v11, %v2746_v10  ;;  %v1032_v61 = vshrl.u32 %v881_v46, 16  ;;  %v668_v6 = vpack.c.bf16 %v636_v62, %v636_v62  ;;  %v2353_v10 = vld [vmem:[#allocation2 + $0x94] sm:$0x8]  ;;  %v1027_v11 = vshrl.u32 %v880_v60, 16 }
  0xef   : > { %v556_v25 = vadd.f32 %v6415_v2, %v555_v18  ;;  %v2482_v31 = vrot.slane %v2480_v16, 7  ;;  %v1035_v28 = vshll.u32 %v881_v46, 16  ;;  %v2215_v62 = vsel %vm1400_vm3, %v5763_v57, 0 }
  0xf0   : > { %5800 = vmatmul.msk.bf16.gmra.mxu0 %vm1351_vm8, %v2775_v19  ;;  %v1034_v16 = vrot.slane %v1032_v61, 7  ;;  %851 = vst.msk [vmem:[#allocation2 + $0x158] sm:$0xf] %vm782_vm2, %v668_v6  ;;  %v5813_v19 = vld [vmem:[%s8021_s4 + $0x10] sm:$0xf]  ;;  %v5655_v32 = vrot.slane %v1027_v11, 11  ;;  %2224 = vmatpush.bf16.msra.mxu1 %v2215_v62 }
  0xf1   : > { %v620_v30 = vmax.f32 %v556_v25, 0.0  ;;  %v2485_v43 = vor.u32 %v2483_v39, %v2482_v31  ;;  %v2487_v58 = vrot.slane %v2482_v31, 4  ;;  %v597_v20 = vpop.f32.mrf.mxu3  ;;  %v3091_v25 = vsel %vm1400_vm3, %v5813_v19, 0  ;;  %v1682_v11 = vld [vmem:[#allocation2 + $0xc] sm:$0xf] }
  0xf2   : > { %3100 = vmatpush.bf16.msrb.mxu2 %v3091_v25  ;;  %v2497_v31 = vshrl.u32 %v2353_v10, 16  ;;  %v1037_v36 = vor.u32 %v1035_v28, %v1034_v16  ;;  %v1746_v25 = vshrl.u32 %v1682_v11, 16  ;;  %v883_v28 = vld [vmem:[#allocation2 + $0x94] sm:$0x8] }
  0xf3   : > { %5750 = vmatmul.msk.bf16.gmra.mxu3 %vm1351_vm8, %v1528_v26  ;;  %v652_v38 = vpack.c.bf16 %v620_v30, %v620_v30  ;;  %v2486_v3 = vsel %vm6486_vm10, %v5784_v41, %v2485_v43  ;;  %v598_v26 = vadd.f32 %v6415_v2, %v597_v20  ;;  %v1529_v30 = vpack.c.b16 %v1502_v14, %v1501_v24 }
  0xf4   : > { %v2352_v40 = vld [vmem:[#allocation2 + $0x84] sm:$0xf]  ;;  %v2748_v12 = vunpack.c.l.b16 %v2486_v3  ;;  %v1039_v43 = vrot.slane %v1034_v16, 4  ;;  %v5785_v45 = vrot.slane %v2497_v31, 11  ;;  %v1742_v24 = vshll.u32 %v1682_v11, 16 }
  0xf5   : > { %835 = vst.msk [vmem:[#allocation2 + $0x98] sm:$0xf] %vm782_vm2, %v652_v38  ;;  %v2489_v44 = vshrl.u32 %v2352_v40, 16  ;;  %v882_v52 = vld [vmem:[#allocation2 + $0x84] sm:$0xf]  ;;  %v2492_v56 = vshll.u32 %v2352_v40, 16 }
  0xf6   : > { %v557_v48 = vpop.f32.mrf.mxu0  ;;  %v1041_v5 = vshrl.u32 %v882_v52, 16  ;;  %v1044_v29 = vshll.u32 %v882_v52, 16  ;;  %v637_v33 = vmax.f32 %v598_v26, 0.0  ;;  %v752_v38 = vld [vmem:[#allocation2 + $0xc4] sm:$0x8] }
  0xf7   : > { %v558_v54 = vadd.f32 %v6415_v2, %v557_v48  ;;  %v2491_v55 = vrot.slane %v2489_v44, 7  ;;  %5735 = vmatmul.msk.bf16.gmra.mxu1 %vm1351_vm8, %v6053_v49  ;;  %v753_v40 = vsel %vm6460_vm6, 0, %v752_v38  ;;  %v1038_v48 = vsel %vm6486_vm10, %v5655_v32, %v1037_v36  ;;  %v6054_v52 = vld [vmem:[#allocation2 + $0x80] sm:$0xff]  ;;  %v2356_v32 = vld [vmem:[#allocation2 + $0xac] sm:$0x8] }
  0xf8   : > { %v1043_v18 = vrot.slane %v1041_v5, 7  ;;  %v669_v39 = vpack.c.bf16 %v637_v33, %v637_v33  ;;  %754 = vst [vmem:[#allocation2 + $0xc4] sm:$0x8] %v753_v40 }
  0xf9   : > { %v621_v0 = vmax.f32 %v558_v54, 0.0  ;;  %v2494_v4 = vor.u32 %v2492_v56, %v2491_v55  ;;  %v600_v55 = vpop.f32.mrf.mxu3  ;;  %v713_v56 = vadd.f32 %v6415_v2, %v712_v50 }
  0xfa   : > { %v1046_v37 = vor.u32 %v1044_v29, %v1043_v18  ;;  %852 = vst.msk [vmem:[#allocation2 + $0x15c] sm:$0xf] %vm782_vm2, %v669_v39  ;;  %v601_v61 = vadd.f32 %v6415_v2, %v600_v55  ;;  %v714_v29 = vpop.f32.mrf.mxu1 }
  0xfb   : > { %v653_v7 = vpack.c.bf16 %v621_v0, %v621_v0  ;;  %v2495_v8 = vsel %vm6486_vm10, %v2487_v58, %v2494_v4  ;;  %v1681_v0 = vld [vmem:[#allocation2 + $0x8] sm:$0xf]  ;;  %v1503_v4 = vunpack.c.l.b16 %v1038_v48  ;;  %v719_v6 = vmax.f32 %v713_v56, 0.0  ;;  %v1683_v48 = vld [vmem:[#allocation2 + $0x10] sm:$0x1] }
  0xfc   : > { %v2749_v13 = vunpack.c.l.b16 %v2495_v8  ;;  %v2354_v15 = vld [vmem:[#allocation2 + $0x98] sm:$0xf]  ;;  %v1047_v49 = vsel %vm6486_vm10, %v1039_v43, %v1046_v37  ;;  %v638_v10 = vmax.f32 %v601_v61, 0.0  ;;  %v1736_v19 = vshll.u32 %v1681_v0, 16 }
  0xfd   : > { %836 = vst.msk [vmem:[#allocation2 + $0x9c] sm:$0xf] %vm782_vm2, %v653_v7  ;;  %v2502_v17 = vshrl.u32 %v2354_v15, 16  ;;  %v2505_v42 = vshll.u32 %v2354_v15, 16  ;;  %v6601_v54 = vld [vmem:[#allocation2 + $0x98] sm:$0xf]  ;;  %v1504_v5 = vunpack.c.l.b16 %v1047_v49  ;;  %v723_v14 = vpack.c.bf16 %v719_v6, %v719_v6 }
  0xfe   : > { %v560_v21 = vpop.f32.mrf.mxu0  ;;  %v2776_v23 = vpack.c.b16 %v2749_v13, %v2748_v12  ;;  %v1054_v12 = vshrl.u32 %v6601_v54, 16  ;;  %v1733_v15 = vshrl.u32 %v1681_v0, 16  ;;  %v670_v18 = vpack.c.bf16 %v638_v10, %v638_v10 }
  0xff   : > { %v561_v27 = vadd.f32 %v6415_v2, %v560_v21  ;;  %v2504_v35 = vrot.slane %v2502_v17, 7  ;;  %822 = vst.msk [vmem:[#allocation2 + $0x1a0] sm:$0xf] %vm782_vm2, %v723_v14  ;;  %v1530_v26 = vpack.c.b16 %v1504_v5, %v1503_v4  ;;  %v715_v36 = vadd.f32 %v6415_v2, %v714_v29 }
 0x100   : > { %5801 = vmatmul.msk.bf16.gmra.mxu0 %vm1351_vm8, %v2776_v23  ;;  %v1056_v33 = vrot.slane %v1054_v12, 7  ;;  %853 = vst.msk [vmem:[#allocation2 + $0x170] sm:$0xf] %vm782_vm2, %v670_v18  ;;  %v1735_v39 = vrot.slane %v1733_v15, 4  ;;  %v1738_v40 = vrot.slane %v1736_v19, 5  ;;  %v1049_v49 = vshrl.u32 %v883_v28, 16 }
 0x101   : > { %v622_v34 = vmax.f32 %v561_v27, 0.0  ;;  %v2507_v46 = vor.u32 %v2505_v42, %v2504_v35  ;;  %v2509_v3 = vrot.slane %v2504_v35, 4  ;;  %v602_v35 = vpop.f32.mrf.mxu3  ;;  %863 = vst.msk [vmem:[#allocation2 + $0x1a0] sm:$0xf] %vm782_vm2, %v6241_v63  ;;  %v1748_v42 = vrot.slane %v1746_v25, 4 }
 0x102   : > { %v603_v43 = vadd.f32 %v6415_v2, %v602_v35  ;;  %v1057_v56 = vshll.u32 %v6601_v54, 16  ;;  %v1061_v57 = vrot.slane %v1056_v33, 4  ;;  %v1752_v62 = vshll.u32 %v1683_v48, 16  ;;  %v6642_v12 = vld [vmem:[%s8020_s3] ss:$0 sm:$0xff] }
 0x103   : > { %5751 = vmatmul.msk.bf16.gmra.mxu3 %vm1351_vm8, %v1529_v30  ;;  %v654_v41 = vpack.c.bf16 %v622_v34, %v622_v34  ;;  %v2508_v8 = vsel %vm6486_vm10, %v5785_v45, %v2507_v46  ;;  %v2519_v46 = vshrl.u32 %v2356_v32, 16 }
 0x104   : > { %v2355_v44 = vld [vmem:[#allocation2 + $0x9c] sm:$0xf]  ;;  %v2750_v20 = vunpack.c.l.b16 %v2508_v8  ;;  %v1059_v8 = vor.u32 %v1057_v56, %v1056_v33 }
 0x105   : > { %837 = vst.msk [vmem:[#allocation2 + $0xb0] sm:$0xf] %vm782_vm2, %v654_v41  ;;  %v2511_v47 = vshrl.u32 %v2355_v44, 16  ;;  %v2514_v53 = vshll.u32 %v2355_v44, 16  ;;  %v885_v60 = vld [vmem:[#allocation2 + $0x9c] sm:$0xf] }
 0x106   : > { %v562_v51 = vpop.f32.mrf.mxu0  ;;  %v1063_v13 = vshrl.u32 %v885_v60, 16  ;;  %v1066_v38 = vshll.u32 %v885_v60, 16  ;;  %v6623_v41 = vrot.slane %v1742_v24, 5  ;;  %v720_v44 = vmax.f32 %v715_v36, 0.0  ;;  %v6055_v54 = vld [vmem:[#allocation2 + $0x98] sm:$0xff] }
 0x107   : > { %v563_v58 = vadd.f32 %v6415_v2, %v562_v51  ;;  %v2513_v59 = vrot.slane %v2511_v47, 7  ;;  %5736 = vmatmul.msk.bf16.gmra.mxu1 %vm1351_vm8, %v6054_v52  ;;  %v639_v51 = vmax.f32 %v603_v43, 0.0  ;;  %v1739_v60 = vor.u32 %v1738_v40, %v1735_v39 }
 0x108   : > { %v1065_v34 = vrot.slane %v1063_v13, 7  ;;  %v724_v52 = vpack.c.bf16 %v720_v44, %v720_v44  ;;  %v1749_v61 = vor.u32 %v1748_v42, %v6623_v41 }
 0x109   : > { %v623_v7 = vmax.f32 %v563_v58, 0.0  ;;  %v2516_v9 = vor.u32 %v2514_v53, %v2513_v59  ;;  %v671_v0 = vpack.c.bf16 %v639_v51, %v639_v51  ;;  %v605_v10 = vpop.f32.mrf.mxu3  ;;  %v1740_v19 = vrot.slane %v1739_v60, 4 }
 0x10a   : > { %v1068_v50 = vor.u32 %v1066_v38, %v1065_v34  ;;  %823 = vst.msk [vmem:[#allocation2 + $0x1a4] sm:$0xf] %vm782_vm2, %v724_v52 }
 0x10b   : > { %v655_v16 = vpack.c.bf16 %v623_v7, %v623_v7  ;;  %v2517_v17 = vsel %vm6486_vm10, %v2509_v3, %v2516_v9  ;;  %v5786_v3 = vrot.slane %v2519_v46, 11  ;;  %v5656_v7 = vrot.slane %v1049_v49, 11  ;;  %854 = vst.msk [vmem:[#allocation2 + $0x174] sm:$0xf] %vm782_vm2, %v671_v0  ;;  %v2359_v46 = vld [vmem:[#allocation2 + $0xc4] sm:$0x8] }
 0x10c   : > { %v2751_v21 = vunpack.c.l.b16 %v2517_v17  ;;  %v2357_v23 = vld [vmem:[#allocation2 + $0xb0] sm:$0xf]  ;;  %v1069_v9 = vsel %vm6486_vm10, %v1061_v57, %v1068_v50  ;;  %864 = vst.msk [vmem:[#allocation2 + $0x1a4] sm:$0xf] %vm782_vm2, %v6241_v63  ;;  %v1685_v17 = vld [vmem:[#allocation2 + $0x24] sm:$0xf]  ;;  %v1745_v44 = vsel %vm6660_vm13, %v1740_v19, %v6623_v41 }
 0x10d   : > { %838 = vst.msk [vmem:[#allocation2 + $0xb4] sm:$0xf] %vm782_vm2, %v655_v16  ;;  %v2524_v27 = vshrl.u32 %v2357_v23, 16  ;;  %v2527_v55 = vshll.u32 %v2357_v23, 16  ;;  %v606_v16 = vadd.f32 %v6642_v12, %v605_v10  ;;  %v1060_v28 = vsel %vm6486_vm10, %v5656_v7, %v1059_v8  ;;  %v6656_v34 = vld [vmem:[#allocation2 + $0xb0] sm:$0xf] }
 0x10e   : > { %v565_v30 = vpop.f32.mrf.mxu0  ;;  %v2777_v31 = vpack.c.b16 %v2751_v21, %v2750_v20  ;;  %v1750_v20 = vrot.slane %v1749_v61, 4  ;;  %v1754_v21 = vrot.slane %v1752_v62, 5  ;;  %v1766_v29 = vshll.u32 %v1685_v17, 16  ;;  %v886_v57 = vld [vmem:[#allocation2 + $0xac] sm:$0x8] }
 0x10f   : > { %v566_v37 = vadd.f32 %v6415_v2, %v565_v30  ;;  %v2526_v47 = vrot.slane %v2524_v27, 7  ;;  %v6629_v2 = vld [vmem:[#allocation2 + $0x20] sm:$0xf]  ;;  %v640_v27 = vmax.f32 %v606_v16, 0.0  ;;  %v1770_v30 = vshrl.u32 %v1685_v17, 16 }
 0x110   : > { %5802 = vmatmul.msk.bf16.gmra.mxu0 %vm1351_vm8, %v2777_v31  ;;  %v1757_v11 = vshrl.u32 %v6629_v2, 16  ;;  %v1760_v63 = vshll.u32 %v6629_v2, 16  ;;  %v1506_v33 = vunpack.c.l.b16 %v1069_v9  ;;  %v1505_v43 = vunpack.c.l.b16 %v1060_v28  ;;  %v1686_v61 = vld [vmem:[#allocation2 + $0x28] sm:$0x1]  ;;  %v1688_v19 = vld [vmem:[#allocation2 + $0x3c] sm:$0xf] }
 0x111   : > { %v624_v45 = vmax.f32 %v566_v37, 0.0  ;;  %v2529_v4 = vor.u32 %v2527_v55, %v2526_v47  ;;  %v2531_v18 = vrot.slane %v2526_v47, 4  ;;  %v672_v35 = vpack.c.bf16 %v640_v27, %v640_v27  ;;  %v607_v52 = vpop.f32.mrf.mxu3 }
 0x112   : > { %v6664_v42 = vrot.slane %v1757_v11, 4  ;;  %v1076_v50 = vshrl.u32 %v6656_v34, 16  ;;  %v6674_v51 = vrot.slane %v1766_v29, 5  ;;  %v1531_v56 = vpack.c.b16 %v1506_v33, %v1505_v43 }
 0x113   : > { %5752 = vmatmul.msk.bf16.gmra.mxu3 %vm1351_vm8, %v1530_v26  ;;  %v656_v53 = vpack.c.bf16 %v624_v45, %v624_v45  ;;  %v2530_v24 = vsel %vm6486_vm10, %v5786_v3, %v2529_v4  ;;  %v1755_v45 = vsel %vm6660_vm13, %v1750_v20, %v1754_v21  ;;  %855 = vst.msk [vmem:[#allocation2 + $0x188] sm:$0xf] %vm782_vm2, %v672_v35  ;;  %v1772_v41 = vrot.slane %v1770_v30, 4  ;;  %v1687_v35 = vld [vmem:[#allocation2 + $0x38] sm:$0xf] }
 0x114   : > { %v6056_v58 = vld [vmem:[#allocation2 + $0xb0] sm:$0xff]  ;;  %v2752_v36 = vunpack.c.l.b16 %v2530_v24  ;;  %v608_v2 = vadd.f32 %v6642_v12, %v607_v52  ;;  %v2541_v3 = vshrl.u32 %v2359_v46, 16  ;;  %v1762_v8 = vrot.slane %v1760_v63, 5 }
 0x115   : > { %v2358_v59 = vld [vmem:[#allocation2 + $0xb4] sm:$0xf]  ;;  %839 = vst.msk [vmem:[#allocation2 + $0xc8] sm:$0xf] %vm782_vm2, %v656_v53  ;;  %5738 = vmatmul.msk.bf16.vlgmr.msra.gmra.mxu2 %vm1351_vm8, %v6056_v58  ;;  %v755_v53 = vld [vmem:[#allocation2 + $0xdc] sm:$0x8]  ;;  %v2118_v58 = vunpack.c.l.b16 %v1745_v44  ;;  %v1773_v17 = vor.u32 %v1772_v41, %v6674_v51 }
 0x116   : > { %v2533_v5 = vshrl.u32 %v2358_v59, 16  ;;  %v567_v6 = vpop.f32.mrf.mxu0  ;;  %v2536_v15 = vshll.u32 %v2358_v59, 16  ;;  %v888_v26 = vld [vmem:[#allocation2 + $0xb4] sm:$0xf]  ;;  %v2119_v59 = vunpack.c.l.b16 %v1755_v45  ;;  %v756_v62 = vsel %vm6460_vm6, 0, %v755_v53 }
 0x117   : > { %v568_v13 = vadd.f32 %v6642_v12, %v567_v6  ;;  %5737 = vmatmul.msk.bf16.gmra.mxu1 %vm1351_vm8, %v6055_v54  ;;  %v1085_v40 = vshrl.u32 %v888_v26, 16  ;;  %757 = vst [vmem:[#allocation2 + $0xdc] sm:$0x8] %v756_v62  ;;  %v1071_v6 = vshrl.u32 %v886_v57, 16  ;;  %v1078_v54 = vrot.slane %v1076_v50, 7 }
 0x118   : > { %v2535_v14 = vrot.slane %v2533_v5, 7  ;;  %v641_v5 = vmax.f32 %v608_v2, 0.0  ;;  %v1088_v7 = vshll.u32 %v888_v26, 16  ;;  %v5787_v20 = vrot.slane %v2541_v3, 11  ;;  %v758_v3 = vld [vmem:[#allocation2 + $0xf4] sm:$0x8] }
 0x119   : > { %v625_v23 = vmax.f32 %v568_v13, 0.0  ;;  %v1087_v60 = vrot.slane %v1085_v40, 7  ;;  %v1079_v24 = vshll.u32 %v6656_v34, 16  ;;  %v5657_v26 = vrot.slane %v1071_v6, 11 }
 0x11a   : > { %v2538_v25 = vor.u32 %v2536_v15, %v2535_v14  ;;  %v673_v11 = vpack.c.bf16 %v641_v5, %v641_v5  ;;  %v2150_v14 = vpack.c.b16 %v2119_v59, %v2118_v58  ;;  %v1083_v27 = vrot.slane %v1078_v54, 4  ;;  %v1689_v5 = vld [vmem:[#allocation2 + $0x40] sm:$0x1] }
 0x11b   : > { %v657_v31 = vpack.c.bf16 %v625_v23, %v625_v23  ;;  %v1090_v16 = vor.u32 %v1088_v7, %v1087_v60  ;;  %v1763_v28 = vor.u32 %v1762_v8, %v6664_v42  ;;  %v1774_v33 = vrot.slane %v1773_v17, 4  ;;  %v889_v8 = vld [vmem:[#allocation2 + $0xc4] sm:$0x8] }
 0x11c   : > { %v2539_v32 = vsel %vm6486_vm10, %v2531_v18, %v2538_v25  ;;  %v2360_v39 = vld [vmem:[#allocation2 + $0xc8] sm:$0xf]  ;;  %v1776_v18 = vshll.u32 %v1686_v61, 16  ;;  %856 = vst.msk [vmem:[#allocation2 + $0x18c] sm:$0xf] %vm782_vm2, %v673_v11  ;;  %v1794_v44 = vshrl.u32 %v1688_v19, 16 }
 0x11d   : > { %v2753_v37 = vunpack.c.l.b16 %v2539_v32  ;;  %840 = vst.msk [vmem:[#allocation2 + $0xcc] sm:$0xf] %vm782_vm2, %v657_v31  ;;  %v2546_v47 = vshrl.u32 %v2360_v39, 16  ;;  %v2549_v10 = vshll.u32 %v2360_v39, 16  ;;  %v1081_v31 = vor.u32 %v1079_v24, %v1078_v54 }
 0x11e   : > { %v570_v48 = vpop.f32.mrf.mxu0  ;;  %v1091_v32 = vsel %vm6486_vm10, %v1083_v27, %v1090_v16  ;;  %v1778_v34 = vrot.slane %v1776_v18, 5  ;;  %v1764_v43 = vrot.slane %v1763_v28, 4  ;;  %v2362_v61 = vld [vmem:[#allocation2 + $0xdc] sm:$0x8]  ;;  %v759_v6 = vsel %vm6460_vm6, 0, %v758_v3 }
 0x11f   : > { %v2778_v49 = vpack.c.b16 %v2753_v37, %v2752_v36  ;;  %v571_v55 = vadd.f32 %v6642_v12, %v570_v48  ;;  %v2548_v4 = vrot.slane %v2546_v47, 7  ;;  %v1790_v36 = vshll.u32 %v1688_v19, 16  ;;  %v890_v48 = vld [vmem:[#allocation2 + $0xc8] sm:$0xf]  ;;  %760 = vst [vmem:[#allocation2 + $0xf4] sm:$0x8] %v759_v6 }
 0x120   : > { %v1082_v47 = vsel %vm6486_vm10, %v5657_v26, %v1081_v31  ;;  %v1508_v53 = vunpack.c.l.b16 %v1091_v32  ;;  %v1779_v57 = vsel %vm6660_vm13, %v1774_v33, %v1778_v34  ;;  %v1098_v62 = vshrl.u32 %v890_v48, 16  ;;  %v1691_v33 = vld [vmem:[#allocation2 + $0x54] sm:$0xf] }
 0x121   : > { %v626_v0 = vmax.f32 %v571_v55, 0.0  ;;  %5803 = vmatmul.msk.bf16.gmra.mxu0 %vm1351_vm8, %v2778_v49  ;;  %v2551_v21 = vor.u32 %v2549_v10, %v2548_v4  ;;  %v2553_v40 = vrot.slane %v2548_v4, 4  ;;  %v1781_v49 = vshrl.u32 %v1687_v35, 16 }
 0x122   : > { %v6701_v58 = vrot.slane %v1790_v36, 5  ;;  %v1507_v60 = vunpack.c.l.b16 %v1082_v47  ;;  %v1769_v4 = vsel %vm6660_vm13, %v1764_v43, %v6674_v51  ;;  %v2121_v7 = vunpack.c.l.b16 %v1779_v57 }
 0x123   : > { %5753 = vmatmul.msk.bf16.gmra.mxu3 %vm1351_vm8, %v1531_v56  ;;  %v658_v9 = vpack.c.bf16 %v626_v0, %v626_v0  ;;  %v2552_v39 = vsel %vm6486_vm10, %v5787_v20, %v2551_v21  ;;  %v1784_v56 = vshll.u32 %v1687_v35, 16  ;;  %v1796_v0 = vrot.slane %v1794_v44, 4  ;;  %v2367_v44 = vld [vmem:[#allocation2 + $0xfc] sm:$0xf] }
 0x124   : > { %v6057_v13 = vld [vmem:[#allocation2 + $0xc8] sm:$0xff]  ;;  %v2754_v50 = vunpack.c.l.b16 %v2552_v39  ;;  %v1532_v54 = vpack.c.b16 %v1508_v53, %v1507_v60  ;;  %v2563_v11 = vshrl.u32 %v2362_v61, 16  ;;  %v2120_v16 = vunpack.c.l.b16 %v1769_v4 }
 0x125   : > { %v2361_v15 = vld [vmem:[#allocation2 + $0xcc] sm:$0xf]  ;;  %841 = vst.msk [vmem:[#allocation2 + $0xe0] sm:$0xf] %vm782_vm2, %v658_v9  ;;  %5739 = vmatmul.msk.bf16.gmra.mxu2 %vm1351_vm8, %v6057_v13  ;;  %v1783_v9 = vrot.slane %v1781_v49, 4  ;;  %v1786_v10 = vrot.slane %v1784_v56, 5  ;;  %v1797_v17 = vor.u32 %v1796_v0, %v6701_v58 }
 0x126   : > { %v2555_v23 = vshrl.u32 %v2361_v15, 16  ;;  %v572_v25 = vpop.f32.mrf.mxu0  ;;  %v2558_v30 = vshll.u32 %v2361_v15, 16  ;;  %v1690_v15 = vld [vmem:[#allocation2 + $0x50] sm:$0xf]  ;;  %v1100_v51 = vrot.slane %v1098_v62, 7  ;;  %v1800_v18 = vshll.u32 %v1689_v5, 16 }
 0x127   : > { %v573_v63 = vadd.f32 %v6642_v12, %v572_v25  ;;  %5764 = vmatmul.msk.bf16.vlgmr.msra.gmra.mxu1 %vm1351_vm8, %v2150_v14  ;;  %v891_v12 = vld [vmem:[#allocation2 + $0xcc] sm:$0xf]  ;;  %v1093_v20 = vshrl.u32 %v889_v8, 16  ;;  %v2151_v24 = vpack.c.b16 %v2121_v7, %v2120_v16  ;;  %v1101_v26 = vshll.u32 %v890_v48, 16 }
 0x128   : > { %v2557_v29 = vrot.slane %v2555_v23, 7  ;;  %v1107_v2 = vshrl.u32 %v891_v12, 16  ;;  %v1110_v21 = vshll.u32 %v891_v12, 16  ;;  %v1787_v27 = vor.u32 %v1786_v10, %v1783_v9  ;;  %v2366_v12 = vld [vmem:[#allocation2 + $0xf8] sm:$0xf] }
 0x129   : > { %v627_v37 = vmax.f32 %v573_v63, 0.0  ;;  %v1805_v28 = vshrl.u32 %v1690_v15, 16  ;;  %v1103_v34 = vor.u32 %v1101_v26, %v1100_v51  ;;  %v1798_v35 = vrot.slane %v1797_v17, 4  ;;  %v761_v16 = vld [vmem:[#allocation2 + $0x10c] sm:$0x8] }
 0x12a   : > { %v2560_v42 = vor.u32 %v2558_v30, %v2557_v29  ;;  %v1109_v14 = vrot.slane %v1107_v2, 7  ;;  %v5788_v29 = vrot.slane %v2563_v11, 11  ;;  %v1802_v36 = vrot.slane %v1800_v18, 5 }
 0x12b   : > { %v659_v45 = vpack.c.bf16 %v627_v37, %v627_v37  ;;  %v1808_v37 = vshll.u32 %v1690_v15, 16  ;;  %v1105_v43 = vrot.slane %v1100_v51, 4  ;;  %v1788_v53 = vrot.slane %v1787_v27, 4 }
 0x12c   : > { %v2561_v46 = vsel %vm6486_vm10, %v2553_v40, %v2560_v42  ;;  %v2363_v55 = vld [vmem:[#allocation2 + $0xe0] sm:$0xf]  ;;  %v1112_v32 = vor.u32 %v1110_v21, %v1109_v14  ;;  %v5658_v42 = vrot.slane %v1093_v20, 11  ;;  %v2590_v2 = vshrl.u32 %v2366_v12, 16  ;;  %v1692_v14 = vld [vmem:[#allocation2 + $0x58] sm:$0x1] }
 0x12d   : > { %v2755_v52 = vunpack.c.l.b16 %v2561_v46  ;;  %842 = vst.msk [vmem:[#allocation2 + $0xe4] sm:$0xf] %vm782_vm2, %v659_v45  ;;  %v2568_v41 = vshrl.u32 %v2363_v55, 16  ;;  %v2571_v19 = vshll.u32 %v2363_v55, 16  ;;  %v1814_v45 = vshll.u32 %v1691_v33, 16 }
 0x12e   : > { %v1818_v46 = vshrl.u32 %v1691_v33, 16  ;;  %v1807_v55 = vrot.slane %v1805_v28, 4  ;;  %v1810_v56 = vrot.slane %v1808_v37, 5  ;;  %v893_v60 = vld [vmem:[#allocation2 + $0xe0] sm:$0xf]  ;;  %v1793_v5 = vsel %vm6660_vm13, %v1788_v53, %v6701_v58 }
 0x12f   : > { %v2779_v59 = vpack.c.b16 %v2755_v52, %v2754_v50  ;;  %v2570_v13 = vrot.slane %v2568_v41, 7  ;;  %v1113_v50 = vsel %vm6486_vm10, %v1105_v43, %v1112_v32  ;;  %v1104_v41 = vsel %vm6486_vm10, %v5658_v42, %v1103_v34 }
 0x130   : > { %v1510_v0 = vunpack.c.l.b16 %v1113_v50  ;;  %v1803_v6 = vsel %vm6660_vm13, %v1798_v35, %v1802_v36  ;;  %v6730_v7 = vrot.slane %v1814_v45, 5  ;;  %v1820_v8 = vrot.slane %v1818_v46, 4  ;;  %v6059_v35 = vld [vmem:[#allocation2 + $0xf8] sm:$0xff]  ;;  %v2369_v46 = vld [vmem:[#allocation2 + $0x110] sm:$0xf] }
 0x131   : > { %5804 = vmatmul.msk.bf16.gmra.mxu0 %vm1351_vm8, %v2779_v59  ;;  %v2573_v30 = vor.u32 %v2571_v19, %v2570_v13  ;;  %v2575_v48 = vrot.slane %v2570_v13, 4  ;;  %v2599_v59 = vshrl.u32 %v2367_v44, 16  ;;  %v1509_v11 = vunpack.c.l.b16 %v1104_v41  ;;  %v892_v19 = vld [vmem:[#allocation2 + $0xdc] sm:$0x8] }
 0x132   : > { %v1120_v13 = vshrl.u32 %v893_v60, 16  ;;  %v1811_v15 = vor.u32 %v1810_v56, %v1807_v55  ;;  %v2592_v51 = vrot.slane %v2590_v2, 7  ;;  %v2602_v18 = vshll.u32 %v2367_v44, 16  ;;  %v1693_v55 = vld [vmem:[#allocation2 + $0x68] sm:$0xf] }
 0x133   : > { %5754 = vmatmul.msk.bf16.gmra.mxu3 %vm1351_vm8, %v1532_v54  ;;  %v2574_v47 = vsel %vm6486_vm10, %v5788_v29, %v2573_v30  ;;  %v2365_v54 = vld [vmem:[#allocation2 + $0xf4] sm:$0x8]  ;;  %v2601_v17 = vrot.slane %v2599_v59, 7  ;;  %v762_v58 = vsel %vm6460_vm6, 0, %v761_v16  ;;  %v1533_v20 = vpack.c.b16 %v1510_v0, %v1509_v11  ;;  %v1694_v56 = vld [vmem:[#allocation2 + $0x6c] sm:$0xf] }
 0x134   : > { %v6058_v23 = vld [vmem:[#allocation2 + $0xe0] sm:$0xff]  ;;  %v6711_v63 = vpop.f32.mrf.mxu1  ;;  %v2756_v61 = vunpack.c.l.b16 %v2574_v47  ;;  %v2585_v21 = vshrl.u32 %v2365_v54, 16  ;;  %763 = vst [vmem:[#allocation2 + $0x10c] sm:$0x8] %v762_v58  ;;  %v1821_v26 = vor.u32 %v1820_v8, %v6730_v7  ;;  %v1824_v27 = vshll.u32 %v1692_v14, 16 }
 0x135   : > { %v2364_v25 = vld [vmem:[#allocation2 + $0xe4] sm:$0xf]  ;;  %5740 = vmatmul.msk.bf16.gmra.mxu2 %vm1351_vm8, %v6058_v23  ;;  %v2593_v23 = vshll.u32 %v2366_v12, 16  ;;  %v1115_v28 = vshrl.u32 %v892_v19, 16  ;;  %v1122_v29 = vrot.slane %v1120_v13, 7  ;;  %v2597_v32 = vrot.slane %v2592_v51, 4 }
 0x136   : > { %v2577_v31 = vshrl.u32 %v2364_v25, 16  ;;  %v2580_v40 = vshll.u32 %v2364_v25, 16  ;;  %v894_v52 = vld [vmem:[#allocation2 + $0xe4] sm:$0xf]  ;;  %v2123_v25 = vunpack.c.l.b16 %v1803_v6  ;;  %v2604_v33 = vor.u32 %v2602_v18, %v2601_v17  ;;  %v2370_v47 = vld [vmem:[#allocation2 + $0x114] sm:$0xf] }
 0x137   : > { %5765 = vmatmul.msk.bf16.gmra.mxu1 %vm1351_vm8, %v2151_v24  ;;  %v1129_v3 = vshrl.u32 %v894_v52, 16  ;;  %v1132_v30 = vshll.u32 %v894_v52, 16  ;;  %v1812_v34 = vrot.slane %v1811_v15, 4  ;;  %v5789_v36 = vrot.slane %v2585_v21, 11  ;;  %v897_v8 = vld [vmem:[#allocation2 + $0xfc] sm:$0xf] }
 0x138   : > { %v2579_v39 = vrot.slane %v2577_v31, 7  ;;  %v2122_v31 = vunpack.c.l.b16 %v1793_v5  ;;  %v2595_v37 = vor.u32 %v2593_v23, %v2592_v51  ;;  %v1822_v44 = vrot.slane %v1821_v26, 4  ;;  %v895_v18 = vld [vmem:[#allocation2 + $0xf4] sm:$0x8] }
 0x139   : > { %v1131_v24 = vrot.slane %v1129_v3, 7  ;;  %v1826_v45 = vrot.slane %v1824_v27, 5  ;;  %v5659_v50 = vrot.slane %v1115_v28, 11  ;;  %v1127_v53 = vrot.slane %v1122_v29, 4 }
 0x13a   : > { %v2582_v49 = vor.u32 %v2580_v40, %v2579_v39  ;;  %v1123_v39 = vshll.u32 %v893_v60, 16  ;;  %v2152_v12 = vpack.c.b16 %v2123_v25, %v2122_v31  ;;  %v1817_v41 = vsel %vm6660_vm13, %v1812_v34, %v6730_v7  ;;  %v896_v7 = vld [vmem:[#allocation2 + $0xf8] sm:$0xf]  ;;  %v1695_v34 = vld [vmem:[#allocation2 + $0x70] sm:$0x1] }
 0x13b   : > { %v1134_v40 = vor.u32 %v1132_v30, %v1131_v24  ;;  %v2612_v59 = vshrl.u32 %v2369_v46, 16  ;;  %v2621_v60 = vshrl.u32 %v2370_v47, 16  ;;  %v1842_v0 = vshrl.u32 %v1694_v56, 16  ;;  %v2368_v54 = vld [vmem:[#allocation2 + $0x10c] sm:$0x8] }
 0x13c   : > { %v2583_v57 = vsel %vm6486_vm10, %v2575_v48, %v2582_v49  ;;  %v6723_v4 = vpop.f32.mrf.mxu1  ;;  %v1125_v52 = vor.u32 %v1123_v39, %v1122_v29  ;;  %v1827_v5 = vsel %vm6660_vm13, %v1822_v44, %v1826_v45  ;;  %v6761_v6 = vunpack.c.l.b16 %v1817_v41  ;;  %v764_v30 = vld [vmem:[#allocation2 + $0x124] sm:$0x8] }
 0x13d   : > { %v2757_v62 = vunpack.c.l.b16 %v2583_v57  ;;  %v6732_v9 = vpop.f32.mrf.mxu0  ;;  %v2605_v57 = vsel %vm6486_vm10, %v2597_v32, %v2604_v33  ;;  %v1135_v2 = vsel %vm6486_vm10, %v1127_v53, %v1134_v40  ;;  %v1832_v14 = vshll.u32 %v1693_v55, 16 }
 0x13e   : > { %v1126_v3 = vsel %vm6486_vm10, %v5659_v50, %v1125_v52  ;;  %v2759_v11 = vunpack.c.l.b16 %v2605_v57  ;;  %v1512_v13 = vunpack.c.l.b16 %v1135_v2  ;;  %v2614_v15 = vrot.slane %v2612_v59, 7  ;;  %v6060_v52 = vld [vmem:[#allocation2 + $0x110] sm:$0xff] }
 0x13f   : > { %v2780_v10 = vpack.c.b16 %v2757_v62, %v2756_v61  ;;  %v1829_v61 = vshrl.u32 %v1693_v55, 16  ;;  %v1838_v62 = vshll.u32 %v1694_v56, 16  ;;  %v2615_v16 = vshll.u32 %v2369_v46, 16 }
 0x140   : > { %v2623_v51 = vrot.slane %v2621_v60, 7  ;;  %v2624_v17 = vshll.u32 %v2370_v47, 16  ;;  %v2607_v21 = vshrl.u32 %v2368_v54, 16  ;;  %v1142_v23 = vshrl.u32 %v896_v7, 16  ;;  %v2373_v54 = vld [vmem:[#allocation2 + $0x12c] sm:$0xf] }
 0x141   : > { %5805 = vmatmul.msk.bf16.gmra.mxu0 %vm1351_vm8, %v2780_v10  ;;  %v1151_v24 = vshrl.u32 %v897_v8, 16  ;;  %v2125_v27 = vunpack.c.l.b16 %v1827_v5  ;;  %v6770_v28 = vrot.slane %v1838_v62, 5  ;;  %v1844_v29 = vrot.slane %v1842_v0, 4 }
 0x142   : > { %v1137_v33 = vshrl.u32 %v895_v18, 16  ;;  %v2626_v39 = vor.u32 %v2624_v17, %v2623_v51  ;;  %v1145_v40 = vshll.u32 %v896_v7, 16  ;;  %v1154_v44 = vshll.u32 %v897_v8, 16  ;;  %v1696_v7 = vld [vmem:[#allocation2 + $0x80] sm:$0xf] }
 0x143   : > { %5755 = vmatmul.msk.bf16.gmra.mxu3 %vm1351_vm8, %v1533_v20  ;;  %v1511_v20 = vunpack.c.l.b16 %v1126_v3  ;;  %v1831_v45 = vrot.slane %v1829_v61, 4  ;;  %v1834_v46 = vrot.slane %v1832_v14, 5  ;;  %v1845_v47 = vor.u32 %v1844_v29, %v6770_v28  ;;  %v1697_v14 = vld [vmem:[#allocation2 + $0x84] sm:$0xf] }
 0x144   : > { %v6739_v43 = vpop.f32.mrf.mxu1  ;;  %v1848_v50 = vshll.u32 %v1695_v34, 16  ;;  %v2153_v53 = vpack.c.b16 %v2125_v27, %v6761_v6  ;;  %v5660_v56 = vrot.slane %v1137_v33, 11  ;;  %v2372_v6 = vld [vmem:[#allocation2 + $0x128] sm:$0xf]  ;;  %v2643_v51 = vshrl.u32 %v2373_v54, 16 }
 0x145   : > { %v6744_v49 = vpop.f32.mrf.mxu0  ;;  %5741 = vmatmul.msk.bf16.gmra.mxu2 %vm1351_vm8, %v6059_v35  ;;  %v1534_v32 = vpack.c.b16 %v1512_v13, %v1511_v20  ;;  %v765_v35 = vsel %vm6460_vm6, 0, %v764_v30  ;;  %v1835_v0 = vor.u32 %v1834_v46, %v1831_v45  ;;  %v1846_v3 = vrot.slane %v1845_v47, 4  ;;  %v900_v13 = vld [vmem:[#allocation2 + $0x114] sm:$0xf]  ;;  %v898_v20 = vld [vmem:[#allocation2 + $0x10c] sm:$0x8] }
 0x146   : > { %v1601_v42 = vpop.f32.mrf.mxu3  ;;  %766 = vst [vmem:[#allocation2 + $0x124] sm:$0x8] %v765_v35  ;;  %v1850_v5 = vrot.slane %v1848_v50, 5  ;;  %v1862_v27 = vshll.u32 %v1697_v14, 16  ;;  %v1866_v33 = vshrl.u32 %v1697_v14, 16  ;;  %v1176_v45 = vshll.u32 %v900_v13, 16 }
 0x147   : > { %v6742_v48 = vadd.f32 %v1601_v42, %v6711_v63  ;;  %5766 = vmatmul.msk.bf16.gmra.mxu1 %vm1351_vm8, %v2152_v12  ;;  %v2596_v63 = vsel %vm6486_vm10, %v5789_v36, %v2595_v37  ;;  %v2617_v36 = vor.u32 %v2615_v16, %v2614_v15  ;;  %v2619_v37 = vrot.slane %v2614_v15, 4  ;;  %v767_v46 = vld [vmem:[#allocation2 + $0x13c] sm:$0x8] }
 0x148   : > { %v2758_v10 = vunpack.c.l.b16 %v2596_v63  ;;  %v1144_v42 = vrot.slane %v1142_v23, 7  ;;  %v1153_v12 = vrot.slane %v1151_v24, 7  ;;  %v2634_v16 = vshrl.u32 %v2372_v6, 16 }
 0x149   : > { %v2627_v55 = vsel %vm6486_vm10, %v2619_v37, %v2626_v39  ;;  %v1836_v17 = vrot.slane %v1835_v0, 4  ;;  %v1851_v18 = vsel %vm6660_vm13, %v1846_v3, %v1850_v5  ;;  %v1173_v23 = vshrl.u32 %v900_v13, 16 }
 0x14a   : > { %v2781_v31 = vpack.c.b16 %v2759_v11, %v2758_v10  ;;  %v1147_v2 = vor.u32 %v1145_v40, %v1144_v42  ;;  %v1149_v59 = vrot.slane %v1144_v42, 4  ;;  %v1156_v60 = vor.u32 %v1154_v44, %v1153_v12  ;;  %v899_v11 = vld [vmem:[#allocation2 + $0x110] sm:$0xf] }
 0x14b   : > { %v2761_v10 = vunpack.c.l.b16 %v2627_v55  ;;  %v1856_v24 = vshll.u32 %v1696_v7, 16  ;;  %v2637_v37 = vshll.u32 %v2372_v6, 16  ;;  %v2645_v39 = vrot.slane %v2643_v51, 7  ;;  %v1698_v6 = vld [vmem:[#allocation2 + $0x88] sm:$0x1] }
 0x14c   : > { %v6763_v58 = vpop.f32.mrf.mxu1  ;;  %v1157_v15 = vsel %vm6486_vm10, %v1149_v59, %v1156_v60  ;;  %v2646_v40 = vshll.u32 %v2373_v54, 16  ;;  %v1159_v12 = vshrl.u32 %v898_v20, 16  ;;  %v1167_v44 = vshll.u32 %v899_v11, 16 }
 0x14d   : > { %v6768_v26 = vpop.f32.mrf.mxu0  ;;  %v1868_v59 = vrot.slane %v1866_v33, 4  ;;  %v902_v33 = vld [vmem:[#allocation2 + $0x128] sm:$0xf] }
 0x14e   : > { %v1603_v19 = vpop.f32.mrf.mxu3  ;;  %v2648_v3 = vor.u32 %v2646_v40, %v2645_v39  ;;  %v5661_v5 = vrot.slane %v1159_v12, 11  ;;  %v903_v12 = vld [vmem:[#allocation2 + $0x12c] sm:$0xf] }
 0x14f   : > { %v6766_v25 = vadd.f32 %v1603_v19, %v6723_v4  ;;  %v5790_v4 = vrot.slane %v2607_v21, 11  ;;  %v1853_v19 = vshrl.u32 %v1696_v7, 16  ;;  %v1164_v21 = vshrl.u32 %v899_v11, 16 }
 0x151   : > { %5806 = vmatmul.msk.bf16.gmra.mxu0 %vm1351_vm8, %v2781_v31  ;;  %v2618_v63 = vsel %vm6486_vm10, %v5790_v4, %v2617_v36  ;;  %v1514_v31 = vunpack.c.l.b16 %v1157_v15  ;;  %v2636_v36 = vrot.slane %v2634_v16, 7  ;;  %v1166_v50 = vrot.slane %v1164_v21, 7  ;;  %v1700_v16 = vld [vmem:[#allocation2 + $0x9c] sm:$0xf] }
 0x152   : > { %v2760_v8 = vunpack.c.l.b16 %v2618_v63  ;;  %v1858_v63 = vrot.slane %v1856_v24, 5  ;;  %v1872_v15 = vshll.u32 %v1698_v6, 16 }
 0x153   : > { %5756 = vmatmul.msk.bf16.gmra.mxu3 %vm1351_vm8, %v1534_v32  ;;  %v2371_v32 = vld [vmem:[#allocation2 + $0x124] sm:$0x8]  ;;  %v2639_v60 = vor.u32 %v2637_v37, %v2636_v36  ;;  %v2641_v0 = vrot.slane %v2636_v36, 4  ;;  %v1169_v7 = vor.u32 %v1167_v44, %v1166_v50 }
 0x154   : > { %v6780_v41 = vpop.f32.mrf.mxu1  ;;  %v2782_v29 = vpack.c.b16 %v2761_v10, %v2760_v8  ;;  %v2629_v47 = vshrl.u32 %v2371_v32, 16  ;;  %v1171_v8 = vrot.slane %v1166_v50, 4  ;;  %v6061_v10 = vld [vmem:[#allocation2 + $0x128] sm:$0xff]  ;;  %v1874_v32 = vrot.slane %v1872_v15, 5 }
 0x155   : > { %v6787_v62 = vpop.f32.mrf.mxu0  ;;  %5742 = vmatmul.msk.bf16.gmra.mxu2 %vm1351_vm8, %v6060_v52  ;;  %v1175_v52 = vrot.slane %v1173_v23, 7  ;;  %v2649_v21 = vsel %vm6486_vm10, %v2641_v0, %v2648_v3  ;;  %v1170_v23 = vsel %vm6486_vm10, %v5661_v5, %v1169_v7 }
 0x156   : > { %v1606_v57 = vpop.f32.mrf.mxu3  ;;  %v5791_v54 = vrot.slane %v2629_v47, 11  ;;  %v2763_v37 = vunpack.c.l.b16 %v2649_v21  ;;  %v1515_v39 = vunpack.c.l.b16 %v1170_v23  ;;  %v1186_v47 = vshrl.u32 %v902_v33, 16 }
 0x157   : > { %v6785_v61 = vadd.f32 %v1606_v57, %v6739_v43  ;;  %5767 = vmatmul.msk.bf16.gmra.mxu1 %vm1351_vm8, %v2153_v53  ;;  %v1148_v43 = vsel %vm6486_vm10, %v5660_v56, %v1147_v2  ;;  %v768_v53 = vsel %vm6460_vm6, 0, %v767_v46  ;;  %v1841_v56 = vsel %vm6660_vm13, %v1836_v17, %v6770_v28 }
 0x158   : > { %v1513_v30 = vunpack.c.l.b16 %v1148_v43  ;;  %v1855_v57 = vrot.slane %v1853_v19, 4  ;;  %769 = vst [vmem:[#allocation2 + $0x13c] sm:$0x8] %v768_v53  ;;  %v6810_v2 = vrot.slane %v1862_v27, 5  ;;  %v1178_v28 = vor.u32 %v1176_v45, %v1175_v52  ;;  %v2375_v27 = vld [vmem:[#allocation2 + $0x140] sm:$0xf] }
 0x159   : > { %v2126_v11 = vunpack.c.l.b16 %v1841_v56  ;;  %v2640_v20 = vsel %vm6486_vm10, %v5791_v54, %v2639_v60  ;;  %v2656_v45 = vshrl.u32 %v2375_v27, 16  ;;  %v1195_v60 = vshrl.u32 %v903_v12, 16 }
 0x15a   : > { %v1535_v55 = vpack.c.b16 %v1514_v31, %v1513_v30  ;;  %v1869_v43 = vor.u32 %v1868_v59, %v6810_v2  ;;  %v1859_v19 = vor.u32 %v1858_v63, %v1855_v57  ;;  %v1179_v24 = vsel %vm6486_vm10, %v1171_v8, %v1178_v28  ;;  %v901_v59 = vld [vmem:[#allocation2 + $0x124] sm:$0x8]  ;;  %v1701_v8 = vld [vmem:[#allocation2 + $0xa0] sm:$0x1]  ;;  %v770_v28 = vld [vmem:[#allocation2 + $0x154] sm:$0x8] }
 0x15b   : > { %v1886_v30 = vshll.u32 %v1700_v16, 16  ;;  %v2762_v36 = vunpack.c.l.b16 %v2640_v20  ;;  %v1516_v40 = vunpack.c.l.b16 %v1179_v24  ;;  %v2659_v7 = vshll.u32 %v2375_v27, 16 }
 0x15c   : > { %v6797_v35 = vpop.f32.mrf.mxu1  ;;  %v1870_v31 = vrot.slane %v1869_v43, 4  ;;  %v1860_v44 = vrot.slane %v1859_v19, 4  ;;  %v1702_v43 = vld [vmem:[#allocation2 + $0xb0] sm:$0xf]  ;;  %v1189_v19 = vshll.u32 %v902_v33, 16  ;;  %v1198_v20 = vshll.u32 %v903_v12, 16 }
 0x15d   : > { %v6802_v42 = vpop.f32.mrf.mxu0  ;;  %v6831_v53 = vrot.slane %v1886_v30, 5  ;;  %v2783_v6 = vpack.c.b16 %v2763_v37, %v2762_v36  ;;  %v1536_v54 = vpack.c.b16 %v1516_v40, %v1515_v39  ;;  %v1896_v27 = vshll.u32 %v1701_v8, 16 }
 0x15e   : > { %v1608_v34 = vpop.f32.mrf.mxu3  ;;  %v1865_v57 = vsel %vm6660_vm13, %v1860_v44, %v6810_v2 }
 0x15f   : > { %v6800_v4 = vadd.f32 %v1608_v34, %v6763_v58  ;;  %v2127_v58 = vunpack.c.l.b16 %v1851_v18  ;;  %v1890_v34 = vshrl.u32 %v1700_v16, 16  ;;  %v2374_v63 = vld [vmem:[#allocation2 + $0x13c] sm:$0x8]  ;;  %v1181_v16 = vshrl.u32 %v901_v59, 16 }
 0x160   : > { %v2651_v15 = vshrl.u32 %v2374_v63, 16  ;;  %v1898_v63 = vrot.slane %v1896_v27, 5  ;;  %v2379_v59 = vld [vmem:[#allocation2 + $0x15c] sm:$0xf] }
 0x161   : > { %5807 = vmatmul.msk.bf16.gmra.mxu0 %vm1351_vm8, %v2782_v29  ;;  %v2154_v18 = vpack.c.b16 %v2127_v58, %v2126_v11  ;;  %v2376_v29 = vld [vmem:[#allocation2 + $0x144] sm:$0xf]  ;;  %v1875_v58 = vsel %vm6660_vm13, %v1870_v31, %v1874_v32  ;;  %v1892_v0 = vrot.slane %v1890_v34, 4  ;;  %v1901_v32 = vshrl.u32 %v1702_v43, 16 }
 0x162   : > { %v2665_v46 = vshrl.u32 %v2376_v29, 16  ;;  %v2668_v2 = vshll.u32 %v2376_v29, 16  ;;  %v2129_v24 = vunpack.c.l.b16 %v1875_v58  ;;  %v2128_v29 = vunpack.c.l.b16 %v1865_v57  ;;  %v6062_v34 = vld [vmem:[#allocation2 + $0x140] sm:$0xff] }
 0x163   : > { %5757 = vmatmul.msk.bf16.gmra.mxu3 %vm1351_vm8, %v1535_v55  ;;  %v5792_v36 = vrot.slane %v2651_v15, 11  ;;  %v5662_v37 = vrot.slane %v1181_v16, 11  ;;  %v904_v15 = vld [vmem:[#allocation2 + $0x13c] sm:$0x8] }
 0x164   : > { %v6813_v14 = vpop.f32.mrf.mxu1  ;;  %v2667_v11 = vrot.slane %v2665_v46, 7  ;;  %v2155_v57 = vpack.c.b16 %v2129_v24, %v2128_v29 }
 0x165   : > { %v6819_v17 = vpop.f32.mrf.mxu0  ;;  %5743 = vmatmul.msk.bf16.gmra.mxu2 %vm1351_vm8, %v6061_v10  ;;  %v2658_v10 = vrot.slane %v2656_v45, 7 }
 0x166   : > { %v1611_v13 = vpop.f32.mrf.mxu3  ;;  %v2670_v33 = vor.u32 %v2668_v2, %v2667_v11  ;;  %v2687_v2 = vshrl.u32 %v2379_v59, 16 }
 0x167   : > { %v6817_v51 = vadd.f32 %v1611_v13, %v6780_v41  ;;  %v1699_v41 = vld [vmem:[#allocation2 + $0x98] sm:$0xf]  ;;  %5768 = vmatmul.msk.bf16.gmra.mxu1 %vm1351_vm8, %v2154_v18  ;;  %v771_v13 = vsel %vm6460_vm6, 0, %v770_v28  ;;  %v1188_v18 = vrot.slane %v1186_v47, 7  ;;  %v2661_v30 = vor.u32 %v2659_v7, %v2658_v10 }
 0x168   : > { %v1877_v50 = vshrl.u32 %v1699_v41, 16  ;;  %v1880_v52 = vshll.u32 %v1699_v41, 16  ;;  %772 = vst [vmem:[#allocation2 + $0x154] sm:$0x8] %v771_v13  ;;  %v1893_v41 = vor.u32 %v1892_v0, %v6831_v53  ;;  %v2663_v31 = vrot.slane %v2658_v10, 4 }
 0x169   : > { %v1191_v39 = vor.u32 %v1189_v19, %v1188_v18  ;;  %v1193_v12 = vrot.slane %v1188_v18, 4  ;;  %v2378_v47 = vld [vmem:[#allocation2 + $0x158] sm:$0xf]  ;;  %v905_v0 = vld [vmem:[#allocation2 + $0x140] sm:$0xf]  ;;  %v2662_v7 = vsel %vm6486_vm10, %v5792_v36, %v2661_v30  ;;  %v2690_v30 = vshll.u32 %v2379_v59, 16 }
 0x16a   : > { %v1879_v21 = vrot.slane %v1877_v50, 4  ;;  %v1882_v23 = vrot.slane %v1880_v52, 5  ;;  %v1904_v50 = vshll.u32 %v1702_v43, 16  ;;  %v1894_v58 = vrot.slane %v1893_v41, 4 }
 0x16b   : > { %v1192_v8 = vsel %vm6486_vm10, %v5662_v37, %v1191_v39  ;;  %v2678_v28 = vshrl.u32 %v2378_v47, 16  ;;  %v1208_v16 = vshrl.u32 %v905_v0, 16  ;;  %v2681_v29 = vshll.u32 %v2378_v47, 16  ;;  %v1704_v39 = vld [vmem:[#allocation2 + $0xb8] sm:$0x1] }
 0x16c   : > { %v6833_v56 = vpop.f32.mrf.mxu1  ;;  %v1883_v46 = vor.u32 %v1882_v23, %v1879_v21  ;;  %v6869_v13 = vrot.slane %v1904_v50, 5  ;;  %v1899_v43 = vsel %vm6660_vm13, %v1894_v58, %v1898_v63  ;;  %v1517_v21 = vunpack.c.l.b16 %v1192_v8 }
 0x16d   : > { %v6843_v5 = vpop.f32.mrf.mxu0  ;;  %v2680_v27 = vrot.slane %v2678_v28, 7  ;;  %v1203_v36 = vshrl.u32 %v904_v15, 16  ;;  %v2131_v63 = vunpack.c.l.b16 %v1899_v43  ;;  %v5894_v15 = vld [vmem:[%s8021_s4 + $0x14] sm:$0xf] }
 0x16e   : > { %v1613_v55 = vpop.f32.mrf.mxu3  ;;  %v1884_v11 = vrot.slane %v1883_v46, 4  ;;  %v1210_v46 = vrot.slane %v1208_v16, 7  ;;  %v6063_v16 = vld [vmem:[#allocation2 + $0x158] sm:$0xff] }
 0x16f   : > { %v6841_v3 = vadd.f32 %v1613_v55, %v6797_v35  ;;  %v1197_v35 = vrot.slane %v1195_v60, 7  ;;  %v1703_v60 = vld [vmem:[#allocation2 + $0xb4] sm:$0xf]  ;;  %v5663_v28 = vrot.slane %v1203_v36, 11  ;;  %v6915_v36 = vld [vmem:[#allocation2 + $0x170] sm:$0xf] }
 0x170   : > { %v1910_v19 = vshll.u32 %v1703_v60, 16  ;;  %v2377_v23 = vld [vmem:[#allocation2 + $0x154] sm:$0x8]  ;;  %v1914_v24 = vshrl.u32 %v1703_v60, 16  ;;  %v1889_v47 = vsel %vm6660_vm13, %v1884_v11, %v6831_v53  ;;  %v1215_v11 = vrot.slane %v1210_v46, 4 }
 0x171   : > { %5808 = vmatmul.msk.bf16.gmra.mxu0 %vm1351_vm8, %v2783_v6  ;;  %v1200_v45 = vor.u32 %v1198_v20, %v1197_v35  ;;  %v906_v6 = vld [vmem:[#allocation2 + $0x144] sm:$0xf]  ;;  %v2764_v35 = vunpack.c.l.b16 %v2662_v7  ;;  %v2683_v7 = vor.u32 %v2681_v29, %v2680_v27  ;;  %v2130_v43 = vunpack.c.l.b16 %v1889_v47 }
 0x172   : > { %v1217_v18 = vshrl.u32 %v906_v6, 16  ;;  %v1220_v37 = vshll.u32 %v906_v6, 16  ;;  %v1920_v6 = vshll.u32 %v1704_v39, 16 }
 0x173   : > { %5758 = vmatmul.msk.bf16.gmra.mxu3 %vm1351_vm8, %v1536_v54  ;;  %v6858_v54 = vrot.slane %v1901_v32, 4  ;;  %v1201_v10 = vsel %vm6486_vm10, %v1193_v12, %v1200_v45  ;;  %v2673_v45 = vshrl.u32 %v2377_v23, 16  ;;  %v2156_v23 = vpack.c.b16 %v2131_v63, %v2130_v43 }
 0x174   : > { %v6850_v44 = vpop.f32.mrf.mxu1  ;;  %v1518_v41 = vunpack.c.l.b16 %v1201_v10  ;;  %v1219_v50 = vrot.slane %v1217_v18, 7 }
 0x175   : > { %v6855_v55 = vpop.f32.mrf.mxu0  ;;  %5744 = vmatmul.msk.bf16.gmra.mxu2 %vm1351_vm8, %v6062_v34  ;;  %v2689_v34 = vrot.slane %v2687_v2, 7  ;;  %v5793_v10 = vrot.slane %v2673_v45, 11 }
 0x176   : > { %v1616_v40 = vpop.f32.mrf.mxu3  ;;  %v1537_v60 = vpack.c.b16 %v1518_v41, %v1517_v21  ;;  %v1222_v2 = vor.u32 %v1220_v37, %v1219_v50  ;;  %v1907_v41 = vor.u32 %v6869_v13, %v6858_v54  ;;  %v6025_v54 = vld [vmem:[%s8021_s4 + $0x20] sm:$0xf]  ;;  %v1706_v13 = vld [vmem:[#allocation2 + $0xcc] sm:$0xf]  ;;  %v908_v50 = vld [vmem:[#allocation2 + $0x158] sm:$0xf] }
 0x177   : > { %v6853_v52 = vadd.f32 %v1616_v40, %v6813_v14  ;;  %5769 = vmatmul.msk.bf16.gmra.mxu1 %vm1351_vm8, %v2155_v57  ;;  %v2671_v14 = vsel %vm6486_vm10, %v2663_v31, %v2670_v33  ;;  %v1211_v33 = vshll.u32 %v905_v0, 16  ;;  %v773_v57 = vld [vmem:[#allocation2 + $0x16c] sm:$0x8]  ;;  %v6885_v0 = vrot.slane %v1910_v19, 5 }
 0x178   : > { %v2765_v20 = vunpack.c.l.b16 %v2671_v14  ;;  %v774_v59 = vsel %vm6460_vm6, 0, %v773_v57  ;;  %v2685_v14 = vrot.slane %v2680_v27, 4  ;;  %v2692_v8 = vor.u32 %v2690_v30, %v2689_v34 }
 0x179   : > { %775 = vst [vmem:[#allocation2 + $0x16c] sm:$0x8] %v774_v59  ;;  %v1213_v53 = vor.u32 %v1211_v33, %v1210_v46  ;;  %v3745_v19 = vsel %vm1400_vm3, %v5894_v15, 0  ;;  %v6900_v27 = vrot.slane %v1920_v6, 5  ;;  %v2684_v30 = vsel %vm6486_vm10, %v5793_v10, %v2683_v7  ;;  %v5944_v6 = vld [vmem:[%s8021_s4 + $0x1c] sm:$0xf] }
 0x17a   : > { %v2784_v58 = vpack.c.b16 %v2765_v20, %v2764_v35  ;;  %v1705_v35 = vld [vmem:[#allocation2 + $0xc8] sm:$0xf]  ;;  %3754 = vmatpush.bf16.msra.mxu3 %v3745_v19  ;;  %v1223_v34 = vsel %vm6486_vm10, %v1215_v11, %v1222_v2  ;;  %v5276_v33 = vsel %vm1400_vm3, %v6025_v54, 0  ;;  %v2766_v47 = vunpack.c.l.b16 %v2684_v30  ;;  %v907_v2 = vld [vmem:[#allocation2 + $0x154] sm:$0x8] }
 0x17b   : > { %v1925_v37 = vshrl.u32 %v1705_v35, 16  ;;  %5285 = vmatpush.bf16.msra.mxu2 %v5276_v33  ;;  %v1928_v57 = vshll.u32 %v1705_v35, 16  ;;  %v1520_v59 = vunpack.c.l.b16 %v1223_v34  ;;  %v1908_v7 = vrot.slane %v1907_v41, 4  ;;  %v776_v54 = vld [vmem:[#allocation2 + $0x184] sm:$0x8] }
 0x17c   : > { %v6873_v32 = vpop.f32.mrf.mxu1  ;;  %v1230_v10 = vshrl.u32 %v908_v50, 16  ;;  %v1938_v41 = vshrl.u32 %v1706_v13, 16  ;;  %v1225_v33 = vshrl.u32 %v907_v2, 16 }
 0x17d   : > { %v6878_v12 = vpop.f32.mrf.mxu0  ;;  %v1913_v11 = vsel %vm6660_vm13, %v1908_v7, %v6885_v0  ;;  %v1927_v15 = vrot.slane %v1925_v37, 4 }
 0x17e   : > { %v1618_v31 = vpop.f32.mrf.mxu3  ;;  %8034 = vst [vmem:[#allocation7_spill] sm:$0xff] %v6878_v12  ;;  %v1232_v37 = vrot.slane %v1230_v10, 7 }
 0x17f   : > { %v6876_v40 = vadd.f32 %v1618_v31, %v6833_v56  ;;  %v1916_v56 = vrot.slane %v1914_v24, 4  ;;  %v2693_v24 = vsel %vm6486_vm10, %v2685_v14, %v2692_v8  ;;  %v1214_v31 = vsel %vm6486_vm10, %v5663_v28, %v1213_v53 }
 0x180   : > { %v2767_v45 = vunpack.c.l.b16 %v2693_v24  ;;  %v1519_v63 = vunpack.c.l.b16 %v1214_v31  ;;  %v2700_v14 = vshrl.u32 %v6915_v36, 16  ;;  %v4622_v28 = vsel %vm1400_vm3, %v5944_v6, 0  ;;  %v2380_v24 = vld [vmem:[#allocation2 + $0x16c] sm:$0x8] }
 0x181   : > { %5809 = vmatmul.msk.bf16.gmra.mxu0 %vm1351_vm8, %v2784_v58  ;;  %v1917_v18 = vor.u32 %v1916_v56, %v6885_v0  ;;  %v5927_v58 = vld [vmem:[%s8021_s4 + $0x18] sm:$0xf]  ;;  %v1934_v53 = vshll.u32 %v1706_v13, 16  ;;  %v1940_v13 = vrot.slane %v1938_v41, 4  ;;  %v1237_v10 = vrot.slane %v1232_v37, 4 }
 0x182   : > { %v4368_v56 = vsel %vm1400_vm3, %v5927_v58, 0  ;;  %4631 = vmatpush.bf16.msra.mxu0 %v4622_v28  ;;  %v2785_v35 = vpack.c.b16 %v2767_v45, %v2766_v47  ;;  %v2702_v31 = vrot.slane %v2700_v14, 7  ;;  %v777_v45 = vsel %vm6460_vm6, 0, %v776_v54 }
 0x183   : > { %5759 = vmatmul.msk.bf16.gmra.mxu3 %vm1351_vm8, %v1537_v60  ;;  %v1918_v46 = vrot.slane %v1917_v18, 4  ;;  %v909_v60 = vld [vmem:[#allocation2 + $0x15c] sm:$0xf]  ;;  %4377 = vmatpush.bf16.msrb.mxu1 %v4368_v56  ;;  %v2695_v58 = vshrl.u32 %v2380_v24, 16  ;;  %v2703_v47 = vshll.u32 %v6915_v36, 16  ;;  %v5664_v14 = vrot.slane %v1225_v33, 11 }
 0x184   : > { %v6894_v21 = vpop.f32.mrf.mxu1  ;;  %v1239_v43 = vshrl.u32 %v909_v60, 16  ;;  %778 = vst [vmem:[#allocation2 + $0x184] sm:$0x8] %v777_v45  ;;  %v2707_v6 = vrot.slane %v2702_v31, 4 }
 0x185   : > { %5745 = vmatmul.msk.bf16.gmra.mxu2 %vm1351_vm8, %v6063_v16  ;;  %v6918_v39 = vpop.f32.mrf.mxu0  ;;  %v1930_v16 = vrot.slane %v1928_v57, 5  ;;  %v1233_v57 = vshll.u32 %v908_v50, 16  ;;  %v2705_v28 = vor.u32 %v2703_v47, %v2702_v31  ;;  %v911_v47 = vld [vmem:[#allocation2 + $0x170] sm:$0xf] }
 0x186   : > { %v1621_v20 = vpop.f32.mrf.mxu3  ;;  %8035 = vst [vmem:[#allocation8_spill] sm:$0xff] %v6918_v39 }
 0x187   : > { %v6903_v29 = vadd.f32 %v1621_v20, %v6850_v44  ;;  %v2382_v44 = vld [vmem:[#allocation2 + $0x174] sm:$0xf]  ;;  %5770 = vmatmul.msk.bf16.gmra.mxu1 %vm1351_vm8, %v2156_v23  ;;  %v1538_v20 = vpack.c.b16 %v1520_v59, %v1519_v63  ;;  %v1923_v23 = vsel %vm6660_vm13, %v1918_v46, %v6900_v27  ;;  %v1241_v63 = vrot.slane %v1239_v43, 7  ;;  %v1707_v59 = vld [vmem:[#allocation2 + $0xd0] sm:$0x1] }
 0x188   : > { %v2709_v8 = vshrl.u32 %v2382_v44, 16  ;;  %v2712_v34 = vshll.u32 %v2382_v44, 16  ;;  %v1242_v27 = vshll.u32 %v909_v60, 16  ;;  %v2132_v44 = vunpack.c.l.b16 %v1913_v11  ;;  %v2385_v11 = vld [vmem:[#allocation2 + $0x18c] sm:$0xf] }
 0x189   : > { %v2133_v50 = vunpack.c.l.b16 %v1923_v23  ;;  %v1931_v56 = vor.u32 %v1930_v16, %v1927_v15  ;;  %v1235_v36 = vor.u32 %v1233_v57, %v1232_v37  ;;  %v5794_v60 = vrot.slane %v2695_v58, 11  ;;  %v1708_v57 = vld [vmem:[#allocation2 + $0xe0] sm:$0xf] }
 0x18a   : > { %v2711_v0 = vrot.slane %v2709_v8, 7  ;;  %v6064_v8 = vld [vmem:[#allocation2 + $0x170] sm:$0xff]  ;;  %v1244_v2 = vor.u32 %v1242_v27, %v1241_v63 }
 0x18b   : > { %v2157_v15 = vpack.c.b16 %v2133_v50, %v2132_v44  ;;  %v1236_v24 = vsel %vm6486_vm10, %v5664_v14, %v1235_v36  ;;  %v1932_v41 = vrot.slane %v1931_v56, 4  ;;  %v2706_v31 = vsel %vm6486_vm10, %v5794_v60, %v2705_v28  ;;  %v2383_v58 = vld [vmem:[#allocation2 + $0x184] sm:$0x8]  ;;  %v912_v63 = vld [vmem:[#allocation2 + $0x174] sm:$0xf] }
 0x18c   : > { %v6933_v19 = vpop.f32.mrf.mxu1  ;;  %v2714_v7 = vor.u32 %v2712_v34, %v2711_v0  ;;  %v1245_v0 = vsel %vm6486_vm10, %v1237_v10, %v1244_v2  ;;  %v2731_v34 = vshrl.u32 %v2385_v11, 16  ;;  %v2768_v27 = vunpack.c.l.b16 %v2706_v31 }
 0x18d   : > { %v6947_v46 = vpop.f32.mrf.mxu0  ;;  %v1521_v44 = vunpack.c.l.b16 %v1236_v24  ;;  %v1522_v50 = vunpack.c.l.b16 %v1245_v0  ;;  %v2734_v36 = vshll.u32 %v2385_v11, 16  ;;  %v2717_v10 = vshrl.u32 %v2383_v58, 16 }
 0x18e   : > { %v1623_v18 = vpop.f32.mrf.mxu3  ;;  %8036 = vst [vmem:[#allocation9_spill] sm:$0xff] %v6947_v46  ;;  %v2715_v16 = vsel %vm6486_vm10, %v2707_v6, %v2714_v7  ;;  %v2733_v14 = vrot.slane %v2731_v34, 7  ;;  %v1261_v2 = vshrl.u32 %v912_v63, 16  ;;  %v1255_v34 = vshll.u32 %v911_v47, 16 }
 0x18f   : > { %v6939_v30 = vadd.f32 %v1623_v18, %v6873_v32  ;;  %v6945_v32 = vrot.slane %v1934_v53, 5  ;;  %v5795_v22 = vrot.slane %v2717_v10, 11 }
 0x191   : > { %5810 = vmatmul.msk.bf16.gmra.mxu0 %vm1351_vm8, %v2785_v35  ;;  %v1941_v18 = vor.u32 %v1940_v13, %v6945_v32  ;;  %v1944_v35 = vshll.u32 %v1707_v59, 16  ;;  %v1937_v45 = vsel %vm6660_vm13, %v1932_v41, %v6945_v32  ;;  %v2769_v13 = vunpack.c.l.b16 %v2715_v16  ;;  %v1709_v59 = vld [vmem:[#allocation2 + $0xe4] sm:$0xf] }
 0x192   : > { %v1252_v32 = vshrl.u32 %v911_v47, 16  ;;  %v1962_v16 = vshrl.u32 %v1709_v59, 16  ;;  %v1539_v41 = vpack.c.b16 %v1522_v50, %v1521_v44 }
 0x193   : > { %5760 = vmatmul.msk.bf16.gmra.mxu3 %vm1351_vm8, %v1538_v20  ;;  %v2384_v20 = vld [vmem:[#allocation2 + $0x188] sm:$0xf]  ;;  %v1942_v33 = vrot.slane %v1941_v18, 4  ;;  %v1946_v37 = vrot.slane %v1944_v35, 5  ;;  %v1952_v35 = vshll.u32 %v1708_v57, 16  ;;  %v2786_v24 = vpack.c.b16 %v2769_v13, %v2768_v27 }
 0x194   : > { %v6950_v43 = vpop.f32.mrf.mxu1  ;;  %v2725_v7 = vshll.u32 %v2384_v20, 16 }
 0x195   : > { %5746 = vmatmul.msk.bf16.gmra.mxu2 %vm1351_vm8, %v6064_v8  ;;  %v6971_v56 = vpop.f32.mrf.mxu0  ;;  %v910_v8 = vld [vmem:[#allocation2 + $0x16c] sm:$0x8]  ;;  %v1954_v44 = vrot.slane %v1952_v35, 5 }
 0x196   : > { %v1626_v53 = vpop.f32.mrf.mxu3  ;;  %8037 = vst [vmem:[#allocation10_spill] sm:$0xff] %v6971_v56  ;;  %v1247_v11 = vshrl.u32 %v910_v8, 16 }
 0x197   : > { %v6954_v23 = vadd.f32 %v1626_v53, %v6894_v21  ;;  %5771 = vmatmul.msk.bf16.gmra.mxu1 %vm1351_vm8, %v2157_v15  ;;  %v2722_v21 = vshrl.u32 %v2384_v20, 16  ;;  %v1949_v53 = vshrl.u32 %v1708_v57, 16  ;;  %v1958_v15 = vshll.u32 %v1709_v59, 16 }
 0x198   : > { %v6966_v54 = vpop.f32.mrf.mxu2  ;;  %v1947_v20 = vsel %vm6660_vm13, %v1942_v33, %v1946_v37  ;;  %v1264_v57 = vshll.u32 %v912_v63, 16  ;;  %v1964_v33 = vrot.slane %v1962_v16, 4  ;;  %v6065_v37 = vld [vmem:[#allocation2 + $0x20] sm:$0xff]  ;;  %v2134_v59 = vunpack.c.l.b16 %v1937_v45 }
 0x199   : > { %v2724_v6 = vrot.slane %v2722_v21, 7  ;;  %v2736_v21 = vor.u32 %v2734_v36, %v2733_v14  ;;  %v2135_v27 = vunpack.c.l.b16 %v1947_v20  ;;  %v1951_v13 = vrot.slane %v1949_v53, 4  ;;  %v3215_v14 = vld [vmem:[#allocation2 + $0x24] sm:$0xf]  ;;  %v3214_v20 = vld [vmem:[#allocation2 + $0x20] sm:$0xf] }
 0x19a   : > { %v6984_v50 = vrot.slane %v1958_v15, 5 }
 0x19b   : > { %v2727_v31 = vor.u32 %v2725_v7, %v2724_v6  ;;  %v2729_v0 = vrot.slane %v2724_v6, 4  ;;  %v5665_v6 = vrot.slane %v1247_v11, 11  ;;  %v1710_v7 = vld [vmem:[#allocation2 + $0xe8] sm:$0x1]  ;;  %v2158_v15 = vpack.c.b16 %v2135_v27, %v2134_v59 }
 0x19c   : > { %v6973_v28 = vpop.f32.mrf.mxu1  ;;  %v1955_v16 = vor.u32 %v1954_v44, %v1951_v13 }
 0x19d   : > { %v2737_v47 = vsel %vm6486_vm10, %v2729_v0, %v2736_v21  ;;  %v2728_v63 = vsel %vm6486_vm10, %v5795_v22, %v2727_v31  ;;  %v3272_v22 = vshll.u32 %v3215_v14, 16  ;;  %v3276_v0 = vshrl.u32 %v3215_v14, 16 }
 0x19e   : > { %v1628_v60 = vpop.f32.mrf.mxu3  ;;  %v6990_v53 = vpop.f32.mrf.mxu0  ;;  %v2770_v11 = vunpack.c.l.b16 %v2728_v63  ;;  %v2771_v31 = vunpack.c.l.b16 %v2737_v47  ;;  %v1956_v27 = vrot.slane %v1955_v16, 4 }
 0x19f   : > { %v6976_v18 = vadd.f32 %v1628_v60, %v6933_v19  ;;  %v1254_v19 = vrot.slane %v1252_v32, 7  ;;  %v1263_v60 = vrot.slane %v1261_v2, 7  ;;  %8038 = vst [vmem:[#allocation11_spill] sm:$0xff] %v6990_v53 }
 0x1a0   : > { %v6981_v58 = vpop.f32.mrf.mxu2 }
 0x1a1   : > { %5811 = vmatmul.msk.bf16.gmra.mxu0 %vm1351_vm8, %v2786_v24  ;;  %v1257_v10 = vor.u32 %v1255_v34, %v1254_v19  ;;  %v1259_v32 = vrot.slane %v1254_v19, 4  ;;  %v1266_v2 = vor.u32 %v1264_v57, %v1263_v60  ;;  %v1965_v24 = vor.u32 %v1964_v33, %v6984_v50  ;;  %v1711_v60 = vld [vmem:[#allocation2 + $0xf8] sm:$0xf]  ;;  %v1712_v57 = vld [vmem:[#allocation2 + $0xfc] sm:$0xf] }
 0x1a2   : > { %v3263_v34 = vshrl.u32 %v3214_v20, 16  ;;  %v3266_v19 = vshll.u32 %v3214_v20, 16  ;;  %v3274_v33 = vrot.slane %v3272_v22, 5  ;;  %v1973_v63 = vshrl.u32 %v1711_v60, 16 }
 0x1a3   : > { %5761 = vmatmul.msk.bf16.gmra.mxu3 %vm1351_vm8, %v1539_v41  ;;  %v1968_v41 = vshll.u32 %v1710_v7, 16  ;;  %v1966_v13 = vrot.slane %v1965_v24, 4  ;;  %v3278_v7 = vrot.slane %v3276_v0, 4 }
 0x1a4   : > { %v2226_v8 = vpop.f32.mrf.mxu1  ;;  %v3265_v16 = vrot.slane %v3263_v34, 4  ;;  %v3268_v24 = vrot.slane %v3266_v19, 5 }
 0x1a5   : > { %v6996_v45 = vadd.f32 %v2226_v8, %v6742_v48  ;;  %5878 = vmatmul.msk.bf16.vlgmr.msrb.gmra.mxu2 %vm1351_vm8, %v6065_v37  ;;  %v1258_v48 = vsel %vm6486_vm10, %v5665_v6, %v1257_v10  ;;  %v1970_v44 = vrot.slane %v1968_v41, 5  ;;  %v2787_v37 = vpack.c.b16 %v2771_v31, %v2770_v11  ;;  %v3216_v8 = vld [vmem:[#allocation2 + $0x28] sm:$0x1] }
 0x1a6   : > { %v1631_v36 = vpop.f32.mrf.mxu3  ;;  %v1523_v59 = vunpack.c.l.b16 %v1258_v48  ;;  %v1976_v6 = vshll.u32 %v1711_v60, 16  ;;  %v1982_v10 = vshll.u32 %v1712_v57, 16  ;;  %v7015_v20 = vpop.f32.mrf.mxu0  ;;  %v1961_v11 = vsel %vm6660_vm13, %v1956_v27, %v6984_v50 }
 0x1a7   : > { %v6993_v35 = vadd.f32 %v1631_v36, %v6950_v43  ;;  %5772 = vmatmul.msk.bf16.gmra.mxu1 %vm1351_vm8, %v2158_v15  ;;  %v1267_v43 = vsel %vm6486_vm10, %v1259_v32, %v1266_v2  ;;  %v1986_v15 = vshrl.u32 %v1712_v57, 16  ;;  %v1971_v41 = vsel %vm6660_vm13, %v1966_v13, %v1970_v44  ;;  %8039 = vst [vmem:[#allocation12_spill] sm:$0xff] %v7015_v20  ;;  %v1713_v57 = vld [vmem:[#allocation2 + $0x100] sm:$0x1]  ;;  %v6066_v13 = vld [vmem:[#allocation2 + $0x38] sm:$0xff] }
 0x1a8   : > { %v7001_v21 = vpop.f32.mrf.mxu2  ;;  %v1524_v47 = vunpack.c.l.b16 %v1267_v43  ;;  %v3279_v31 = vor.u32 %v3278_v7, %v3274_v33  ;;  %v3282_v0 = vshll.u32 %v3216_v8, 16  ;;  %v1978_v48 = vrot.slane %v1976_v6, 5 }
 0x1a9   : > { %v1984_v43 = vrot.slane %v1982_v10, 5  ;;  %v1988_v34 = vrot.slane %v1986_v15, 4  ;;  %v2137_v19 = vunpack.c.l.b16 %v1971_v41  ;;  %v3269_v60 = vor.u32 %v3268_v24, %v3265_v16  ;;  %v3217_v16 = vld [vmem:[#allocation2 + $0x38] sm:$0xf] }
 0x1aa   : > { %v1540_v22 = vpack.c.b16 %v1524_v47, %v1523_v59  ;;  %v2136_v44 = vunpack.c.l.b16 %v1961_v11  ;;  %v3284_v59 = vrot.slane %v3282_v0, 5  ;;  %v3280_v27 = vrot.slane %v3279_v31, 4 }
 0x1ab   : > { %v3270_v10 = vrot.slane %v3269_v60, 4 }
 0x1ac   : > { %v2228_v36 = vpop.f32.mrf.mxu1  ;;  %v2159_v6 = vpack.c.b16 %v2137_v19, %v2136_v44  ;;  %v1715_v19 = vld [vmem:[#allocation2 + $0x114] sm:$0xf] }
 0x1ad   : > { %v7011_v2 = vadd.f32 %v2228_v36, %v6766_v25  ;;  %v1975_v25 = vrot.slane %v1973_v63, 4  ;;  %v3218_v36 = vld [vmem:[#allocation2 + $0x3c] sm:$0xf]  ;;  %v3275_v15 = vsel %vm6660_vm13, %v3270_v10, %v3274_v33  ;;  %v2010_v10 = vshrl.u32 %v1715_v19, 16 }
 0x1ae   : > { %v1633_v14 = vpop.f32.mrf.mxu3  ;;  %v3296_v24 = vshll.u32 %v3218_v36, 16  ;;  %v3300_v41 = vshrl.u32 %v3218_v36, 16  ;;  %v7038_v0 = vpop.f32.mrf.mxu0  ;;  %v3648_v60 = vunpack.c.l.b16 %v3275_v15  ;;  %v3219_v36 = vld [vmem:[#allocation2 + $0x40] sm:$0x1]  ;;  %v6081_v15 = vld [vmem:[#allocation2 + $0x38] sm:$0xff] }
 0x1af   : > { %v7008_v32 = vadd.f32 %v1633_v14, %v6973_v28  ;;  %v1979_v7 = vor.u32 %v1978_v48, %v1975_v25  ;;  %v1989_v14 = vor.u32 %v1988_v34, %v1984_v43  ;;  %8040 = vst [vmem:[#allocation13_spill] sm:$0xff] %v7038_v0  ;;  %v1714_v25 = vld [vmem:[#allocation2 + $0x110] sm:$0xf]  ;;  %v3287_v48 = vshrl.u32 %v3217_v16, 16 }
 0x1b0   : > { %v7021_v28 = vpop.f32.mrf.mxu2  ;;  %v3290_v34 = vshll.u32 %v3217_v16, 16  ;;  %v3298_v33 = vrot.slane %v3296_v24, 5 }
 0x1b1   : > { %5812 = vmatmul.msk.bf16.gmra.mxu0 %vm1351_vm8, %v2787_v37  ;;  %v1992_v37 = vshll.u32 %v1713_v57, 16  ;;  %v1980_v11 = vrot.slane %v1979_v7, 4  ;;  %v2000_v7 = vshll.u32 %v1714_v25, 16  ;;  %v3289_v16 = vrot.slane %v3287_v48, 4  ;;  %v6067_v48 = vld [vmem:[#allocation2 + $0x50] sm:$0xff] }
 0x1b2   : > { %v3292_v24 = vrot.slane %v3290_v34, 5 }
 0x1b3   : > { %5762 = vmatmul.msk.bf16.gmra.mxu3 %vm1351_vm8, %v1540_v22  ;;  %v1994_v31 = vrot.slane %v1992_v37, 5 }
 0x1b4   : > { %v2231_v50 = vpop.f32.mrf.mxu1 }
 0x1b5   : > { %v7028_v63 = vadd.f32 %v2231_v50, %v6785_v61  ;;  %5879 = vmatmul.msk.bf16.gmra.mxu2 %vm1351_vm8, %v6066_v13  ;;  %v1990_v61 = vrot.slane %v1989_v14, 4  ;;  %v3302_v13 = vrot.slane %v3300_v41, 4  ;;  %v1985_v50 = vsel %vm6660_vm13, %v1980_v11, %v1984_v43 }
 0x1b6   : > { %v1636_v47 = vpop.f32.mrf.mxu3  ;;  %v7054_v0 = vpop.f32.mrf.mxu0 }
 0x1b7   : > { %v7025_v8 = vadd.f32 %v1636_v47, %v6966_v54  ;;  %5773 = vmatmul.msk.bf16.gmra.mxu1 %vm1351_vm8, %v2159_v6  ;;  %v3285_v54 = vsel %vm6660_vm13, %v3280_v27, %v3284_v59  ;;  %v1995_v59 = vsel %vm6660_vm13, %v1990_v61, %v1994_v31  ;;  %v1997_v27 = vshrl.u32 %v1714_v25, 16  ;;  %8041 = vst [vmem:[#allocation14_spill] sm:$0xff] %v7054_v0 }
 0x1b8   : > { %v7034_v22 = vpop.f32.mrf.mxu2  ;;  %v3649_v57 = vunpack.c.l.b16 %v3285_v54  ;;  %v2006_v6 = vshll.u32 %v1715_v19, 16  ;;  %v2138_v54 = vunpack.c.l.b16 %v1985_v50  ;;  %v2139_v11 = vunpack.c.l.b16 %v1995_v59  ;;  %v3220_v59 = vld [vmem:[#allocation2 + $0x50] sm:$0xf] }
 0x1b9   : > { %v3303_v61 = vor.u32 %v3302_v13, %v3298_v33  ;;  %v3306_v31 = vshll.u32 %v3219_v36, 16  ;;  %v2002_v25 = vrot.slane %v2000_v7, 5  ;;  %v3293_v19 = vor.u32 %v3292_v24, %v3289_v16 }
 0x1ba   : > { %v3680_v41 = vpack.c.b16 %v3649_v57, %v3648_v60  ;;  %v2160_v57 = vpack.c.b16 %v2139_v11, %v2138_v54  ;;  %v3311_v16 = vshrl.u32 %v3220_v59, 16  ;;  %v3314_v24 = vshll.u32 %v3220_v59, 16 }
 0x1bb   : > { %v3308_v20 = vrot.slane %v3306_v31, 5 }
 0x1bc   : > { %v2233_v47 = vpop.f32.mrf.mxu1 }
 0x1bd   : > { %v7048_v37 = vadd.f32 %v2233_v47, %v6800_v4  ;;  %v1999_v4 = vrot.slane %v1997_v27, 4  ;;  %v2012_v47 = vrot.slane %v2010_v10, 4  ;;  %v3294_v10 = vrot.slane %v3293_v19, 4  ;;  %v1718_v19 = vld [vmem:[#allocation2 + $0x12c] sm:$0xf] }
 0x1be   : > { %v1638_v44 = vpop.f32.mrf.mxu3  ;;  %v7070_v53 = vpop.f32.mrf.mxu0 }
 0x1bf   : > { %v7045_v14 = vadd.f32 %v1638_v44, %v6981_v58  ;;  %v1716_v58 = vld [vmem:[#allocation2 + $0x118] sm:$0x1]  ;;  %v2008_v44 = vrot.slane %v2006_v6, 5  ;;  %v2003_v27 = vor.u32 %v2002_v25, %v1999_v4  ;;  %v3221_v6 = vld [vmem:[#allocation2 + $0x54] sm:$0xf]  ;;  %v3299_v54 = vsel %vm6660_vm13, %v3294_v10, %v3298_v33  ;;  %8042 = vst [vmem:[#allocation15_spill] sm:$0xff] %v7070_v53 }
 0x1c0   : > { %v7051_v43 = vpop.f32.mrf.mxu2  ;;  %v2016_v50 = vshll.u32 %v1716_v58, 16  ;;  %v3324_v11 = vshrl.u32 %v3221_v6, 16  ;;  %v3650_v4 = vunpack.c.l.b16 %v3299_v54 }
 0x1c1   : > { %6009 = vmatmul.msk.bf16.vlgmr.msra.gmra.mxu0 %vm1351_vm8, %v6081_v15  ;;  %v3304_v15 = vrot.slane %v3303_v61, 4  ;;  %v2013_v7 = vor.u32 %v2012_v47, %v2008_v44  ;;  %v2004_v61 = vrot.slane %v2003_v27, 4  ;;  %v1717_v47 = vld [vmem:[#allocation2 + $0x128] sm:$0xf]  ;;  %v3222_v27 = vld [vmem:[#allocation2 + $0x58] sm:$0x1] }
 0x1c2   : > { %v2018_v58 = vrot.slane %v2016_v50, 5  ;;  %v3326_v0 = vrot.slane %v3324_v11, 4  ;;  %v2024_v10 = vshll.u32 %v1717_v47, 16 }
 0x1c3   : > { %5895 = vmatmul.msk.bf16.vlgmr.msra.gmra.mxu3 %vm1351_vm8, %v3680_v41  ;;  %v2014_v31 = vrot.slane %v2013_v7, 4  ;;  %v6082_v7 = vld [vmem:[#allocation2 + $0x50] sm:$0xff] }
 0x1c4   : > { %v2236_v60 = vpop.f32.mrf.mxu1 }
 0x1c5   : > { %v7060_v36 = vadd.f32 %v2236_v60, %v6817_v51  ;;  %5880 = vmatmul.msk.bf16.gmra.mxu2 %vm1351_vm8, %v6067_v48  ;;  %v3320_v51 = vshll.u32 %v3221_v6, 16  ;;  %v3313_v60 = vrot.slane %v3311_v16, 4  ;;  %v2019_v50 = vsel %vm6660_vm13, %v2014_v31, %v2018_v58 }
 0x1c6   : > { %v1641_v34 = vpop.f32.mrf.mxu3  ;;  %v2021_v6 = vshrl.u32 %v1717_v47, 16  ;;  %v2030_v16 = vshll.u32 %v1718_v19, 16  ;;  %v2026_v31 = vrot.slane %v2024_v10, 5  ;;  %v1719_v47 = vld [vmem:[#allocation2 + $0x130] sm:$0x1]  ;;  %v7093_v10 = vpop.f32.mrf.mxu0 }
 0x1c7   : > { %v7057_v13 = vadd.f32 %v1641_v34, %v7001_v21  ;;  %5774 = vmatmul.msk.bf16.gmra.mxu1 %vm1351_vm8, %v2160_v57  ;;  %v3309_v21 = vsel %vm6660_vm13, %v3304_v15, %v3308_v20  ;;  %v3316_v57 = vrot.slane %v3314_v24, 5  ;;  %v3322_v59 = vrot.slane %v3320_v51, 5  ;;  %8043 = vst [vmem:[#allocation16_spill] sm:$0xff] %v7093_v10 }
 0x1c8   : > { %v7064_v41 = vpop.f32.mrf.mxu2  ;;  %v3651_v25 = vunpack.c.l.b16 %v3309_v21  ;;  %v2009_v15 = vsel %vm6660_vm13, %v2004_v61, %v2008_v44  ;;  %v2034_v24 = vshrl.u32 %v1718_v19, 16  ;;  %v2141_v44 = vunpack.c.l.b16 %v2019_v50 }
 0x1c9   : > { %v3327_v21 = vor.u32 %v3326_v0, %v3322_v59  ;;  %v2140_v51 = vunpack.c.l.b16 %v2009_v15  ;;  %v3317_v11 = vor.u32 %v3316_v57, %v3313_v60  ;;  %v2023_v61 = vrot.slane %v2021_v6, 4  ;;  %v3223_v6 = vld [vmem:[#allocation2 + $0x68] sm:$0xf] }
 0x1ca   : > { %v3681_v54 = vpack.c.b16 %v3651_v25, %v3650_v4  ;;  %v2032_v58 = vrot.slane %v2030_v16, 5 }
 0x1cb   : > { %v3328_v4 = vrot.slane %v3327_v21, 4  ;;  %v2161_v60 = vpack.c.b16 %v2141_v44, %v2140_v51  ;;  %v3318_v57 = vrot.slane %v3317_v11, 4  ;;  %v2027_v15 = vor.u32 %v2026_v31, %v2023_v61  ;;  %v1721_v51 = vld [vmem:[#allocation2 + $0x144] sm:$0xf] }
 0x1cc   : > { %v2238_v34 = vpop.f32.mrf.mxu1  ;;  %v3338_v21 = vshll.u32 %v3223_v6, 16 }
 0x1cd   : > { %v7076_v20 = vadd.f32 %v2238_v34, %v6841_v3  ;;  %v3330_v3 = vshll.u32 %v3222_v27, 16  ;;  %v6068_v34 = vld [vmem:[#allocation2 + $0x68] sm:$0xff]  ;;  %v2040_v27 = vshll.u32 %v1719_v47, 16  ;;  %v2028_v44 = vrot.slane %v2027_v15, 4 }
 0x1ce   : > { %v1643_v48 = vpop.f32.mrf.mxu3 }
 0x1cf   : > { %v7073_v33 = vadd.f32 %v1643_v48, %v7021_v28  ;;  %v2036_v48 = vrot.slane %v2034_v24, 4  ;;  %v3332_v25 = vrot.slane %v3330_v3, 5  ;;  %v1720_v3 = vld [vmem:[#allocation2 + $0x140] sm:$0xf]  ;;  %v2042_v61 = vrot.slane %v2040_v27, 5  ;;  %v6083_v27 = vld [vmem:[#allocation2 + $0x68] sm:$0xff] }
 0x1d0   : > { %v7083_v28 = vpop.f32.mrf.mxu2  ;;  %v2045_v10 = vshrl.u32 %v1720_v3, 16  ;;  %v2048_v46 = vshll.u32 %v1720_v3, 16 }
 0x1d1   : > { %6010 = vmatmul.msk.bf16.gmra.mxu0 %vm1351_vm8, %v6082_v7  ;;  %v3224_v7 = vld [vmem:[#allocation2 + $0x6c] sm:$0xf]  ;;  %v2037_v50 = vor.u32 %v2036_v48, %v2032_v58 }
 0x1d2   : > { %v3344_v16 = vshll.u32 %v3224_v7, 16  ;;  %v3348_v24 = vshrl.u32 %v3224_v7, 16 }
 0x1d3   : > { %5896 = vmatmul.msk.bf16.gmra.mxu3 %vm1351_vm8, %v3681_v54  ;;  %v2038_v11 = vrot.slane %v2037_v50, 4  ;;  %v3340_v50 = vrot.slane %v3338_v21, 5 }
 0x1d4   : > { %v2241_v19 = vpop.f32.mrf.mxu1  ;;  %v3350_v47 = vrot.slane %v3348_v24, 4 }
 0x1d5   : > { %v7090_v0 = vadd.f32 %v2241_v19, %v6853_v52  ;;  %5881 = vmatmul.msk.bf16.gmra.mxu2 %vm1351_vm8, %v6068_v34  ;;  %v3323_v52 = vsel %vm6660_vm13, %v3318_v57, %v3322_v59  ;;  %v3346_v34 = vrot.slane %v3344_v16, 5  ;;  %v2054_v59 = vshll.u32 %v1721_v51, 16 }
 0x1d6   : > { %v1646_v53 = vpop.f32.mrf.mxu3  ;;  %v3652_v31 = vunpack.c.l.b16 %v3323_v52  ;;  %v2058_v57 = vshrl.u32 %v1721_v51, 16  ;;  %v2043_v16 = vsel %vm6660_vm13, %v2038_v11, %v2042_v61  ;;  %v2050_v51 = vrot.slane %v2048_v46, 5  ;;  %v6069_v11 = vld [vmem:[#allocation2 + $0x80] sm:$0xff] }
 0x1d7   : > { %v7087_v56 = vadd.f32 %v1646_v53, %v7034_v22  ;;  %5775 = vmatmul.msk.bf16.gmra.mxu1 %vm1351_vm8, %v2161_v60  ;;  %v3333_v53 = vsel %vm6660_vm13, %v3328_v4, %v3332_v25  ;;  %v3335_v22 = vshrl.u32 %v3223_v6, 16  ;;  %v3225_v60 = vld [vmem:[#allocation2 + $0x70] sm:$0x1]  ;;  %v2033_v6 = vsel %vm6660_vm13, %v2028_v44, %v2032_v58 }
 0x1d8   : > { %v7096_v54 = vpop.f32.mrf.mxu2  ;;  %v3653_v48 = vunpack.c.l.b16 %v3333_v53  ;;  %v3351_v52 = vor.u32 %v3350_v47, %v3346_v34  ;;  %v3354_v53 = vshll.u32 %v3225_v60, 16  ;;  %v2142_v21 = vunpack.c.l.b16 %v2033_v6  ;;  %v3226_v6 = vld [vmem:[#allocation2 + $0x80] sm:$0xf] }
 0x1d9   : > { %v3337_v15 = vrot.slane %v3335_v22, 4  ;;  %v7115_v22 = vpop.f32.mrf.mxu0  ;;  %v2143_v58 = vunpack.c.l.b16 %v2043_v16 }
 0x1da   : > { %v3682_v24 = vpack.c.b16 %v3653_v48, %v3652_v31  ;;  %8044 = vst [vmem:[#allocation17_spill] sm:$0xff] %v7115_v22  ;;  %v3356_v61 = vrot.slane %v3354_v53, 5  ;;  %v3352_v47 = vrot.slane %v3351_v52, 4 }
 0x1db   : > { %v3341_v44 = vor.u32 %v3340_v50, %v3337_v15 }
 0x1dc   : > { %v2243_v7 = vpop.f32.mrf.mxu1 }
 0x1dd   : > { %v7106_v25 = vadd.f32 %v2243_v7, %v6876_v40  ;;  %v2056_v40 = vrot.slane %v2054_v59, 5  ;;  %v1722_v7 = vld [vmem:[#allocation2 + $0x148] sm:$0x1]  ;;  %v3342_v15 = vrot.slane %v3341_v44, 4 }
 0x1de   : > { %v1648_v19 = vpop.f32.mrf.mxu3  ;;  %v2064_v39 = vshll.u32 %v1722_v7, 16 }
 0x1df   : > { %v7103_v4 = vadd.f32 %v1648_v19, %v7051_v43  ;;  %v2047_v43 = vrot.slane %v2045_v10, 4  ;;  %v2060_v19 = vrot.slane %v2058_v57, 4  ;;  %v3227_v10 = vld [vmem:[#allocation2 + $0x84] sm:$0xf]  ;;  %v2162_v57 = vpack.c.b16 %v2143_v58, %v2142_v21  ;;  %v1724_v58 = vld [vmem:[#allocation2 + $0x15c] sm:$0xf] }
 0x1e0   : > { %v7113_v3 = vpop.f32.mrf.mxu2  ;;  %v3347_v50 = vsel %vm6660_vm13, %v3342_v15, %v3346_v34  ;;  %v3368_v16 = vshll.u32 %v3227_v10, 16  ;;  %v3362_v21 = vshll.u32 %v3226_v6, 16  ;;  %v3228_v15 = vld [vmem:[#allocation2 + $0x88] sm:$0x1] }
 0x1e1   : > { %6011 = vmatmul.msk.bf16.gmra.mxu0 %vm1351_vm8, %v6083_v27  ;;  %v2051_v60 = vor.u32 %v2050_v51, %v2047_v43  ;;  %v2061_v27 = vor.u32 %v2060_v19, %v2056_v40  ;;  %v2066_v43 = vrot.slane %v2064_v39, 5  ;;  %v1723_v51 = vld [vmem:[#allocation2 + $0x158] sm:$0xf]  ;;  %v3359_v19 = vshrl.u32 %v3226_v6, 16  ;;  %v7132_v44 = vpop.f32.mrf.mxu0 }
 0x1e2   : > { %8046 = vst [vmem:[#allocation19_spill] sm:$0xff] %v7132_v44  ;;  %v3654_v7 = vunpack.c.l.b16 %v3347_v50  ;;  %v3370_v34 = vrot.slane %v3368_v16, 5  ;;  %v2072_v39 = vshll.u32 %v1723_v51, 16  ;;  %v2078_v50 = vshll.u32 %v1724_v58, 16  ;;  %v6084_v16 = vld [vmem:[#allocation2 + $0x80] sm:$0xff] }
 0x1e3   : > { %5897 = vmatmul.msk.bf16.gmra.mxu3 %vm1351_vm8, %v3682_v24  ;;  %v3372_v24 = vshrl.u32 %v3227_v10, 16  ;;  %v2052_v53 = vrot.slane %v2051_v60, 4  ;;  %v2082_v6 = vshrl.u32 %v1724_v58, 16  ;;  %v3364_v44 = vrot.slane %v3362_v21, 5  ;;  %v6070_v58 = vld [vmem:[#allocation2 + $0x98] sm:$0xff] }
 0x1e4   : > { %v2246_v48 = vpop.f32.mrf.mxu1 }
 0x1e5   : > { %v7122_v59 = vadd.f32 %v2246_v48, %v6903_v29  ;;  %5882 = vmatmul.msk.bf16.gmra.mxu2 %vm1351_vm8, %v6069_v11  ;;  %v2062_v29 = vrot.slane %v2061_v27, 4  ;;  %v2084_v22 = vrot.slane %v2082_v6, 4  ;;  %v3229_v6 = vld [vmem:[#allocation2 + $0x98] sm:$0xf] }
 0x1e6   : > { %v1651_v31 = vpop.f32.mrf.mxu3 }
 0x1e7   : > { %v7119_v46 = vadd.f32 %v1651_v31, %v7064_v41  ;;  %8045 = vst [vmem:[#allocation18_spill] sm:$0xff] %v7122_v59  ;;  %5776 = vmatmul.msk.bf16.gmra.mxu1 %vm1351_vm8, %v2162_v57  ;;  %v3357_v41 = vsel %vm6660_vm13, %v3352_v47, %v3356_v61  ;;  %v3374_v31 = vrot.slane %v3372_v24, 4  ;;  %v2057_v57 = vsel %vm6660_vm13, %v2052_v53, %v2056_v40 }
 0x1e8   : > { %v7128_v52 = vpop.f32.mrf.mxu2  ;;  %v3655_v11 = vunpack.c.l.b16 %v3357_v41  ;;  %v2067_v61 = vsel %vm6660_vm13, %v2062_v29, %v2066_v43  ;;  %v2069_v47 = vshrl.u32 %v1723_v51, 16  ;;  %v3361_v41 = vrot.slane %v3359_v19, 4 }
 0x1e9   : > { %v2144_v53 = vunpack.c.l.b16 %v2057_v57  ;;  %v2145_v29 = vunpack.c.l.b16 %v2067_v61  ;;  %v3375_v43 = vor.u32 %v3374_v31, %v3370_v34  ;;  %v3378_v51 = vshll.u32 %v3228_v15, 16  ;;  %v7148_v59 = vpop.f32.mrf.mxu0 }
 0x1ea   : > { %v3683_v24 = vpack.c.b16 %v3655_v11, %v3654_v7  ;;  %8048 = vst [vmem:[#allocation21_spill] sm:$0xff] %v7148_v59 }
 0x1eb   : > { %v2163_v21 = vpack.c.b16 %v2145_v29, %v2144_v53  ;;  %v3376_v11 = vrot.slane %v3375_v43, 4 }
 0x1ec   : > { %v2248_v10 = vpop.f32.mrf.mxu1 }
 0x1ed   : > { %v7142_v27 = vadd.f32 %v2248_v10, %v6939_v30  ;;  %v2071_v30 = vrot.slane %v2069_v47, 4  ;;  %v2080_v10 = vrot.slane %v2078_v50, 5 }
 0x1ee   : > { %v1653_v48 = vpop.f32.mrf.mxu3 }
 0x1ef   : > { %v7139_v60 = vadd.f32 %v1653_v48, %v7083_v28  ;;  %8047 = vst [vmem:[#allocation20_spill] sm:$0xff] %v7142_v27  ;;  %v1725_v28 = vld [vmem:[#allocation2 + $0x160] sm:$0x1]  ;;  %v2074_v48 = vrot.slane %v2072_v39, 5  ;;  %v3365_v27 = vor.u32 %v3364_v44, %v3361_v41  ;;  %v2085_v47 = vor.u32 %v2084_v22, %v2080_v10  ;;  %v3230_v39 = vld [vmem:[#allocation2 + $0x9c] sm:$0xf] }
 0x1f0   : > { %v7145_v40 = vpop.f32.mrf.mxu2  ;;  %v2088_v12 = vshll.u32 %v1725_v28, 16  ;;  %v3383_v22 = vshrl.u32 %v3229_v6, 16  ;;  %v1727_v28 = vld [vmem:[#allocation2 + $0x174] sm:$0xf] }
 0x1f1   : > { %6012 = vmatmul.msk.bf16.gmra.mxu0 %vm1351_vm8, %v6084_v16  ;;  %v3380_v16 = vrot.slane %v3378_v51, 5  ;;  %v2075_v61 = vor.u32 %v2074_v48, %v2071_v30  ;;  %v3366_v44 = vrot.slane %v3365_v27, 4  ;;  %v2086_v53 = vrot.slane %v2085_v47, 4  ;;  %v1726_v51 = vld [vmem:[#allocation2 + $0x170] sm:$0xf] }
 0x1f2   : > { %v2090_v29 = vrot.slane %v2088_v12, 5  ;;  %v2093_v47 = vshrl.u32 %v1726_v51, 16 }
 0x1f3   : > { %5898 = vmatmul.msk.bf16.gmra.mxu3 %vm1351_vm8, %v3683_v24  ;;  %v3381_v50 = vsel %vm6660_vm13, %v3376_v11, %v3380_v16  ;;  %v3392_v24 = vshll.u32 %v3230_v39, 16  ;;  %v2076_v41 = vrot.slane %v2075_v61, 4  ;;  %v3231_v16 = vld [vmem:[#allocation2 + $0xa0] sm:$0x1]  ;;  %v6085_v61 = vld [vmem:[#allocation2 + $0x98] sm:$0xff] }
 0x1f4   : > { %v2251_v19 = vpop.f32.mrf.mxu1  ;;  %v3657_v43 = vunpack.c.l.b16 %v3381_v50  ;;  %v2106_v50 = vshrl.u32 %v1727_v28, 16 }
 0x1f5   : > { %v7154_v57 = vadd.f32 %v2251_v19, %v6954_v23  ;;  %5883 = vmatmul.msk.bf16.gmra.mxu2 %vm1351_vm8, %v6070_v58  ;;  %v3371_v23 = vsel %vm6660_vm13, %v3366_v44, %v3370_v34  ;;  %v3386_v58 = vshll.u32 %v3229_v6, 16  ;;  %v2081_v12 = vsel %vm6660_vm13, %v2076_v41, %v2080_v10  ;;  %v7176_v6 = vpop.f32.mrf.mxu0 }
 0x1f6   : > { %v1656_v7 = vpop.f32.mrf.mxu3  ;;  %v3656_v48 = vunpack.c.l.b16 %v3371_v23  ;;  %v2091_v34 = vsel %vm6660_vm13, %v2086_v53, %v2090_v29  ;;  %v2102_v44 = vshll.u32 %v1727_v28, 16  ;;  %8050 = vst [vmem:[#allocation23_spill] sm:$0xff] %v7176_v6  ;;  %v3402_v23 = vshll.u32 %v3231_v16, 16  ;;  %v1728_v6 = vld [vmem:[#allocation2 + $0x178] sm:$0x1] }
 0x1f7   : > { %v7151_v31 = vadd.f32 %v1656_v7, %v7096_v54  ;;  %5777 = vmatmul.msk.bf16.gmra.mxu1 %vm1351_vm8, %v2163_v21  ;;  %v3396_v54 = vshrl.u32 %v3230_v39, 16  ;;  %v7164_v7 = vrot.slane %v3392_v24, 5  ;;  %v2096_v39 = vshll.u32 %v1726_v51, 16 }
 0x1f8   : > { %v7158_v15 = vpop.f32.mrf.mxu2  ;;  %v3684_v24 = vpack.c.b16 %v3657_v43, %v3656_v48  ;;  %v2146_v41 = vunpack.c.l.b16 %v2081_v12  ;;  %v2147_v53 = vunpack.c.l.b16 %v2091_v34  ;;  %v2095_v29 = vrot.slane %v2093_v47, 4  ;;  %v3233_v12 = vld [vmem:[#allocation2 + $0xb4] sm:$0xf] }
 0x1f9   : > { %v3398_v19 = vrot.slane %v3396_v54, 4  ;;  %v3388_v54 = vrot.slane %v3386_v58, 5  ;;  %v2098_v51 = vrot.slane %v2096_v39, 5  ;;  %v2108_v28 = vrot.slane %v2106_v50, 4 }
 0x1fa   : > { %v2112_v47 = vshll.u32 %v1728_v6, 16 }
 0x1fb   : > { %v3399_v10 = vor.u32 %v3398_v19, %v7164_v7  ;;  %v2164_v19 = vpack.c.b16 %v2147_v53, %v2146_v41  ;;  %v2099_v34 = vor.u32 %v2098_v51, %v2095_v29 }
 0x1fc   : > { %v2253_v27 = vpop.f32.mrf.mxu1  ;;  %v2114_v6 = vrot.slane %v2112_v47, 5 }
 0x1fd   : > { %v7170_v11 = vadd.f32 %v2253_v27, %v6976_v18  ;;  %v3385_v18 = vrot.slane %v3383_v22, 4  ;;  %v6071_v27 = vld [vmem:[#allocation2 + $0xb0] sm:$0xff]  ;;  %v3400_v59 = vrot.slane %v3399_v10, 4  ;;  %v2100_v10 = vrot.slane %v2099_v34, 4 }
 0x1fe   : > { %v1658_v30 = vpop.f32.mrf.mxu3 }
 0x1ff   : > { %v7167_v21 = vadd.f32 %v1658_v30, %v7113_v3  ;;  %8049 = vst [vmem:[#allocation22_spill] sm:$0xff] %v7170_v11  ;;  %v2104_v30 = vrot.slane %v2102_v44, 5  ;;  %v3404_v11 = vrot.slane %v3402_v23, 5 }
 0x200   : > { %v7179_v3 = vpop.f32.mrf.mxu2 }
 0x201   : > { %6013 = vmatmul.msk.bf16.gmra.mxu0 %vm1351_vm8, %v6085_v61  ;;  %v3389_v61 = vor.u32 %v3388_v54, %v3385_v18  ;;  %v2109_v16 = vor.u32 %v2108_v28, %v2104_v30  ;;  %v3405_v50 = vsel %vm6660_vm13, %v3400_v59, %v3404_v11  ;;  %v7195_v18 = vpop.f32.mrf.mxu0 }
 0x202   : > { %8051 = vst [vmem:[#allocation24_spill] sm:$0xff] %v7195_v18  ;;  %v3659_v41 = vunpack.c.l.b16 %v3405_v50 }
 0x203   : > { %5899 = vmatmul.msk.bf16.gmra.mxu3 %vm1351_vm8, %v3684_v24  ;;  %v3390_v44 = vrot.slane %v3389_v61, 4  ;;  %v3420_v24 = vshrl.u32 %v3233_v12, 16  ;;  %v2110_v23 = vrot.slane %v2109_v16, 4  ;;  %v3234_v61 = vld [vmem:[#allocation2 + $0xb8] sm:$0x1] }
 0x204   : > { %v2256_v48 = vpop.f32.mrf.mxu1  ;;  %v3871_v16 = vld [vmem:[#allocation2 + $0x3c] sm:$0xf]  ;;  %v3426_v50 = vshll.u32 %v3234_v61, 16 }
 0x205   : > { %v7187_v58 = vadd.f32 %v2256_v48, %v6993_v35  ;;  %5884 = vmatmul.msk.bf16.gmra.mxu2 %vm1351_vm8, %v6071_v27  ;;  %v3232_v35 = vld [vmem:[#allocation2 + $0xb0] sm:$0xf]  ;;  %v3395_v54 = vsel %vm6660_vm13, %v3390_v44, %v7164_v7  ;;  %v3422_v59 = vrot.slane %v3420_v24, 4 }
 0x206   : > { %v1661_v43 = vpop.f32.mrf.mxu3  ;;  %v3407_v51 = vshrl.u32 %v3232_v35, 16  ;;  %v3410_v28 = vshll.u32 %v3232_v35, 16  ;;  %v3658_v48 = vunpack.c.l.b16 %v3395_v54  ;;  %v6086_v7 = vld [vmem:[#allocation2 + $0xb0] sm:$0xff] }
 0x207   : > { %v7184_v22 = vadd.f32 %v1661_v43, %v7128_v52  ;;  %5778 = vmatmul.msk.bf16.gmra.mxu1 %vm1351_vm8, %v2164_v19  ;;  %v3416_v52 = vshll.u32 %v3233_v12, 16  ;;  %v2105_v19 = vsel %vm6660_vm13, %v2100_v10, %v2104_v30  ;;  %v2115_v12 = vsel %vm6660_vm13, %v2110_v23, %v2114_v6  ;;  %v6072_v10 = vld [vmem:[#allocation2 + $0xc8] sm:$0xff] }
 0x208   : > { %v7191_v39 = vpop.f32.mrf.mxu2  ;;  %v3685_v34 = vpack.c.b16 %v3659_v41, %v3658_v48  ;;  %v3412_v44 = vrot.slane %v3410_v28, 5  ;;  %v2148_v24 = vunpack.c.l.b16 %v2105_v19  ;;  %v2149_v35 = vunpack.c.l.b16 %v2115_v12 }
 0x209   : > { %v7200_v27 = vrot.slane %v3416_v52, 5  ;;  %v3870_v52 = vld [vmem:[#allocation2 + $0x38] sm:$0xf]  ;;  %v3932_v30 = vshrl.u32 %v3871_v16, 16  ;;  %v7217_v54 = vpop.f32.mrf.mxu0  ;;  %v3428_v48 = vrot.slane %v3426_v50, 5 }
 0x20a   : > { %8052 = vst [vmem:[#allocation25_spill] sm:$0xff] %v7217_v54  ;;  %v3923_v23 = vshrl.u32 %v3870_v52, 16  ;;  %v2165_v61 = vpack.c.b16 %v2149_v35, %v2148_v24  ;;  %v3935_v54 = vshll.u32 %v3871_v16, 16 }
 0x20b   : > { %v3934_v19 = vrot.slane %v3932_v30, 7 }
 0x20c   : > { %v2258_v29 = vpop.f32.mrf.mxu1 }
 0x20d   : > { %v7206_v43 = vadd.f32 %v2258_v29, %v7008_v32  ;;  %v3423_v32 = vor.u32 %v3422_v59, %v7200_v27  ;;  %v3937_v35 = vor.u32 %v3935_v54, %v3934_v19  ;;  %v3237_v54 = vld [vmem:[#allocation2 + $0xd0] sm:$0x1]  ;;  %v6087_v19 = vld [vmem:[#allocation2 + $0xc8] sm:$0xff] }
 0x20e   : > { %v1663_v53 = vpop.f32.mrf.mxu3 }
 0x20f   : > { %v7203_v11 = vadd.f32 %v1663_v53, %v7145_v40  ;;  %v3409_v40 = vrot.slane %v3407_v51, 4  ;;  %v3424_v29 = vrot.slane %v3423_v32, 4  ;;  %v3869_v51 = vld [vmem:[#allocation2 + $0x34] sm:$0x8] }
 0x210   : > { %v7213_v47 = vpop.f32.mrf.mxu2  ;;  %v3918_v12 = vshrl.u32 %v3869_v51, 16 }
 0x211   : > { %6014 = vmatmul.msk.bf16.gmra.mxu0 %vm1351_vm8, %v6086_v7  ;;  %v3413_v53 = vor.u32 %v3412_v44, %v3409_v40  ;;  %v3236_v7 = vld [vmem:[#allocation2 + $0xcc] sm:$0xf] }
 0x212   : > { %v3440_v32 = vshll.u32 %v3236_v7, 16  ;;  %v3444_v50 = vshrl.u32 %v3236_v7, 16 }
 0x213   : > { %5900 = vmatmul.msk.bf16.gmra.mxu3 %vm1351_vm8, %v3685_v34  ;;  %v3925_v34 = vrot.slane %v3923_v23, 7  ;;  %v3414_v44 = vrot.slane %v3413_v53, 4 }
 0x214   : > { %v2261_v41 = vpop.f32.mrf.mxu1  ;;  %v7234_v18 = vrot.slane %v3440_v32, 5 }
 0x215   : > { %v7223_v59 = vadd.f32 %v2261_v41, %v7025_v8  ;;  %5885 = vmatmul.msk.bf16.gmra.mxu2 %vm1351_vm8, %v6072_v10  ;;  %v3926_v8 = vshll.u32 %v3870_v52, 16  ;;  %v3419_v24 = vsel %vm6660_vm13, %v3414_v44, %v7200_v27  ;;  %v5911_v10 = vrot.slane %v3918_v12, 11 }
 0x216   : > { %v1666_v6 = vpop.f32.mrf.mxu3  ;;  %v3930_v23 = vrot.slane %v3925_v34, 4  ;;  %v3660_v27 = vunpack.c.l.b16 %v3419_v24 }
 0x217   : > { %v7220_v28 = vadd.f32 %v1666_v6, %v7158_v15  ;;  %5779 = vmatmul.msk.bf16.gmra.mxu1 %vm1351_vm8, %v2165_v61  ;;  %v3429_v15 = vsel %vm6660_vm13, %v3424_v29, %v3428_v48  ;;  %v3235_v6 = vld [vmem:[#allocation2 + $0xc8] sm:$0xf]  ;;  %v3928_v41 = vor.u32 %v3926_v8, %v3925_v34  ;;  %v3446_v29 = vrot.slane %v3444_v50, 4  ;;  %v7236_v48 = vpop.f32.mrf.mxu0 }
 0x218   : > { %v7227_v40 = vpop.f32.mrf.mxu2  ;;  %v3661_v30 = vunpack.c.l.b16 %v3429_v15  ;;  %v3431_v61 = vshrl.u32 %v3235_v6, 16  ;;  %v3434_v53 = vshll.u32 %v3235_v6, 16  ;;  %8053 = vst [vmem:[#allocation26_spill] sm:$0xff] %v7236_v48  ;;  %v3938_v12 = vsel %vm6486_vm10, %v3930_v23, %v3937_v35  ;;  %v3874_v15 = vld [vmem:[#allocation2 + $0x54] sm:$0xf]  ;;  %v6073_v35 = vld [vmem:[#allocation2 + $0xe0] sm:$0xff] }
 0x219   : > { %v3929_v44 = vsel %vm6486_vm10, %v5911_v10, %v3928_v41  ;;  %v3450_v8 = vshll.u32 %v3237_v54, 16  ;;  %v3873_v6 = vld [vmem:[#allocation2 + $0x50] sm:$0xf]  ;;  %v4272_v24 = vunpack.c.l.b16 %v3938_v12  ;;  %v3872_v48 = vld [vmem:[#allocation2 + $0x4c] sm:$0x8] }
 0x21a   : > { %v3686_v34 = vpack.c.b16 %v3661_v30, %v3660_v27  ;;  %v3436_v50 = vrot.slane %v3434_v53, 5  ;;  %v4271_v30 = vunpack.c.l.b16 %v3929_v44  ;;  %v3945_v23 = vshrl.u32 %v3873_v6, 16  ;;  %v3239_v54 = vld [vmem:[#allocation2 + $0xe4] sm:$0xf] }
 0x21b   : > { %v2928_v44 = vadd.f32 %v6732_v9, %v6996_v45 }
 0x21c   : > { %v2263_v51 = vpop.f32.mrf.mxu1 }
 0x21d   : > { %v7242_v7 = vadd.f32 %v2263_v51, %v7045_v14  ;;  %v3447_v14 = vor.u32 %v3446_v29, %v7234_v18  ;;  %v4303_v29 = vpack.c.b16 %v4272_v24, %v4271_v30  ;;  %v3468_v24 = vshrl.u32 %v3239_v54, 16 }
 0x21e   : > { %v1668_v16 = vpop.f32.mrf.mxu3 }
 0x21f   : > { %v7239_v52 = vadd.f32 %v1668_v16, %v7179_v3  ;;  %v3433_v3 = vrot.slane %v3431_v61, 4  ;;  %v3954_v16 = vshrl.u32 %v3874_v15, 16  ;;  %v3448_v27 = vrot.slane %v3447_v14, 4 }
 0x220   : > { %v7249_v32 = vpop.f32.mrf.mxu2  ;;  %v3957_v14 = vshll.u32 %v3874_v15, 16 }
 0x221   : > { %6015 = vmatmul.msk.bf16.gmra.mxu0 %vm1351_vm8, %v6087_v19  ;;  %v3437_v41 = vor.u32 %v3436_v50, %v3433_v3  ;;  %v3452_v19 = vrot.slane %v3450_v8, 5  ;;  %v3956_v12 = vrot.slane %v3954_v16, 7  ;;  %v3940_v3 = vshrl.u32 %v3872_v48, 16 }
 0x222   : > { %v3947_v50 = vrot.slane %v3945_v23, 7 }
 0x223   : > { %5901 = vmatmul.msk.bf16.gmra.mxu3 %vm1351_vm8, %v3686_v34  ;;  %v7260_v34 = vpop.f32.mrf.mxu0  ;;  %v3438_v8 = vrot.slane %v3437_v41, 4  ;;  %v5912_v45 = vrot.slane %v3940_v3, 11 }
 0x224   : > { %v2266_v10 = vpop.f32.mrf.mxu1  ;;  %8055 = vst [vmem:[#allocation28_spill] sm:$0xff] %v7260_v34 }
 0x225   : > { %v7257_v53 = vadd.f32 %v2266_v10, %v7057_v13  ;;  %5886 = vmatmul.msk.bf16.gmra.mxu2 %vm1351_vm8, %v6073_v35  ;;  %v3453_v13 = vsel %vm6660_vm13, %v3448_v27, %v3452_v19  ;;  %v3464_v35 = vshll.u32 %v3239_v54, 16  ;;  %v3443_v16 = vsel %vm6660_vm13, %v3438_v8, %v7234_v18 }
 0x226   : > { %v1671_v51 = vpop.f32.mrf.mxu3  ;;  %v3948_v10 = vshll.u32 %v3873_v6, 16  ;;  %v3663_v9 = vunpack.c.l.b16 %v3453_v13  ;;  %v3470_v19 = vrot.slane %v3468_v24, 4  ;;  %v3662_v18 = vunpack.c.l.b16 %v3443_v16  ;;  %v3240_v6 = vld [vmem:[#allocation2 + $0xe8] sm:$0x1] }
 0x227   : > { %v7254_v61 = vadd.f32 %v1671_v51, %v7191_v39  ;;  %8054 = vst [vmem:[#allocation27_spill] sm:$0xff] %v7257_v53  ;;  %5928 = vmatmul.msk.bf16.vlgmr.msrb.gmra.mxu1 %vm1351_vm8, %v4303_v29  ;;  %v3238_v51 = vld [vmem:[#allocation2 + $0xe0] sm:$0xf]  ;;  %v3959_v29 = vor.u32 %v3957_v14, %v3956_v12  ;;  %v3952_v53 = vrot.slane %v3947_v50, 4  ;;  %v7272_v27 = vrot.slane %v3464_v35, 5 }
 0x228   : > { %v3102_v39 = vpop.f32.mrf.mxu2  ;;  %v3455_v48 = vshrl.u32 %v3238_v51, 16  ;;  %v3458_v15 = vshll.u32 %v3238_v51, 16  ;;  %v3950_v34 = vor.u32 %v3948_v10, %v3947_v50  ;;  %v6088_v12 = vld [vmem:[#allocation2 + $0xe0] sm:$0xff]  ;;  %v3687_v14 = vpack.c.b16 %v3663_v9, %v3662_v18  ;;  %v3876_v13 = vld [vmem:[#allocation2 + $0x68] sm:$0xf] }
 0x229   : > { %v7267_v30 = vadd.f32 %v3102_v39, %v2928_v44  ;;  %v3960_v3 = vsel %vm6486_vm10, %v3952_v53, %v3959_v29  ;;  %v2929_v39 = vadd.f32 %v6744_v49, %v7011_v2  ;;  %v3877_v51 = vld [vmem:[#allocation2 + $0x6c] sm:$0xf]  ;;  %v3471_v35 = vor.u32 %v3470_v19, %v7272_v27  ;;  %v6074_v29 = vld [vmem:[#allocation2 + $0xf8] sm:$0xff] }
 0x22a   : > { %v3457_v50 = vrot.slane %v3455_v48, 4  ;;  %v3460_v8 = vrot.slane %v3458_v15, 5  ;;  %v3474_v24 = vshll.u32 %v3240_v6, 16  ;;  %v4274_v49 = vunpack.c.l.b16 %v3960_v3  ;;  %v3875_v15 = vld [vmem:[#allocation2 + $0x64] sm:$0x8] }
 0x22b   : > { %v7288_v16 = vpop.f32.mrf.mxu0  ;;  %v3967_v2 = vshrl.u32 %v3876_v13, 16  ;;  %v3976_v10 = vshrl.u32 %v3877_v51, 16  ;;  %v3472_v18 = vrot.slane %v3471_v35, 4  ;;  %v3242_v3 = vld [vmem:[#allocation2 + $0xfc] sm:$0xf] }
 0x22c   : > { %v2268_v41 = vpop.f32.mrf.mxu1  ;;  %8056 = vst [vmem:[#allocation29_spill] sm:$0xff] %v7288_v16  ;;  %v3461_v48 = vor.u32 %v3460_v8, %v3457_v50  ;;  %v2930_v50 = vadd.f32 %v6768_v26, %v7028_v63 }
 0x22d   : > { %v7278_v44 = vadd.f32 %v2268_v41, %v7073_v33  ;;  %v3951_v33 = vsel %vm6486_vm10, %v5912_v45, %v3950_v34  ;;  %v3476_v34 = vrot.slane %v3474_v24, 5  ;;  %v3241_v45 = vld [vmem:[#allocation2 + $0xf8] sm:$0xf] }
 0x22e   : > { %v1673_v23 = vpop.f32.mrf.mxu3  ;;  %v4273_v9 = vunpack.c.l.b16 %v3951_v33  ;;  %v3462_v8 = vrot.slane %v3461_v48, 4  ;;  %v3979_v33 = vshll.u32 %v3877_v51, 16  ;;  %v3479_v35 = vshrl.u32 %v3241_v45, 16 }
 0x22f   : > { %v7275_v54 = vadd.f32 %v1673_v23, %v7213_v47  ;;  %v3482_v24 = vshll.u32 %v3241_v45, 16 }
 0x230   : > { %v3104_v47 = vpop.f32.mrf.mxu2 }
 0x231   : > { %6016 = vmatmul.msk.bf16.gmra.mxu0 %vm1351_vm8, %v6088_v12  ;;  %v7291_v53 = vadd.f32 %v3104_v47, %v2929_v39  ;;  %v4304_v12 = vpack.c.b16 %v4274_v49, %v4273_v9  ;;  %v3969_v39 = vrot.slane %v3967_v2, 7  ;;  %v3978_v47 = vrot.slane %v3976_v10, 7 }
 0x232   : > { %v3970_v9 = vshll.u32 %v3876_v13, 16  ;;  %v3467_v2 = vsel %vm6660_vm13, %v3462_v8, %v7272_v27  ;;  %v6089_v8 = vld [vmem:[#allocation2 + $0xf8] sm:$0xff] }
 0x233   : > { %5902 = vmatmul.msk.bf16.gmra.mxu3 %vm1351_vm8, %v3687_v14  ;;  %v3962_v14 = vshrl.u32 %v3875_v15, 16  ;;  %v3981_v10 = vor.u32 %v3979_v33, %v3978_v47  ;;  %v7310_v15 = vpop.f32.mrf.mxu0  ;;  %v3974_v48 = vrot.slane %v3969_v39, 4  ;;  %v3664_v27 = vunpack.c.l.b16 %v3467_v2  ;;  %v3243_v47 = vld [vmem:[#allocation2 + $0x100] sm:$0x1]  ;;  %v3880_v33 = vld [vmem:[#allocation2 + $0x84] sm:$0xf] }
 0x234   : > { %v2271_v41 = vpop.f32.mrf.mxu1  ;;  %8057 = vst [vmem:[#allocation30_spill] sm:$0xff] %v7310_v15  ;;  %v3972_v51 = vor.u32 %v3970_v9, %v3969_v39  ;;  %v3879_v9 = vld [vmem:[#allocation2 + $0x80] sm:$0xf]  ;;  %v3998_v2 = vshrl.u32 %v3880_v33, 16 }
 0x235   : > { %v7297_v6 = vadd.f32 %v2271_v41, %v7087_v56  ;;  %5887 = vmatmul.msk.bf16.gmra.mxu2 %vm1351_vm8, %v6074_v29  ;;  %v3477_v56 = vsel %vm6660_vm13, %v3472_v18, %v3476_v34  ;;  %v3492_v29 = vshrl.u32 %v3242_v3, 16  ;;  %v5913_v63 = vrot.slane %v3962_v14, 11 }
 0x236   : > { %v1676_v23 = vpop.f32.mrf.mxu3  ;;  %v3665_v26 = vunpack.c.l.b16 %v3477_v56  ;;  %v3481_v18 = vrot.slane %v3479_v35, 4  ;;  %v3484_v34 = vrot.slane %v3482_v24, 5  ;;  %v3982_v14 = vsel %vm6486_vm10, %v3974_v48, %v3981_v10  ;;  %v6075_v10 = vld [vmem:[#allocation2 + $0x110] sm:$0xff] }
 0x237   : > { %v7294_v19 = vadd.f32 %v1676_v23, %v7227_v40  ;;  %5929 = vmatmul.msk.bf16.gmra.mxu1 %vm1351_vm8, %v4304_v12  ;;  %v3488_v23 = vshll.u32 %v3242_v3, 16  ;;  %v3494_v3 = vrot.slane %v3492_v29, 4  ;;  %v2931_v35 = vadd.f32 %v6787_v62, %v7048_v37  ;;  %v3244_v48 = vld [vmem:[#allocation2 + $0x110] sm:$0xf]  ;;  %v3245_v62 = vld [vmem:[#allocation2 + $0x114] sm:$0xf] }
 0x238   : > { %v3107_v40 = vpop.f32.mrf.mxu2  ;;  %v3688_v39 = vpack.c.b16 %v3665_v26, %v3664_v27  ;;  %v3485_v56 = vor.u32 %v3484_v34, %v3481_v18  ;;  %v3498_v24 = vshll.u32 %v3243_v47, 16  ;;  %v4276_v29 = vunpack.c.l.b16 %v3982_v14  ;;  %v3878_v47 = vld [vmem:[#allocation2 + $0x7c] sm:$0x8] }
 0x239   : > { %v7305_v49 = vadd.f32 %v3107_v40, %v2930_v50  ;;  %v3490_v45 = vrot.slane %v3488_v23, 5  ;;  %v4000_v14 = vrot.slane %v3998_v2, 7 }
 0x23c   : > { %v2273_v12 = vpop.f32.mrf.mxu1 }
 0x23d   : > { %v7316_v13 = vadd.f32 %v2273_v12, %v7103_v4  ;;  %v3495_v4 = vor.u32 %v3494_v3, %v3490_v45  ;;  %v3486_v12 = vrot.slane %v3485_v56, 4  ;;  %v2932_v56 = vadd.f32 %v6802_v42, %v7060_v36  ;;  %v3246_v36 = vld [vmem:[#allocation2 + $0x118] sm:$0x1] }
 0x23e   : > { %v1678_v41 = vpop.f32.mrf.mxu3 }
 0x23f   : > { %v7313_v50 = vadd.f32 %v1678_v41, %v7249_v32  ;;  %v3973_v32 = vsel %vm6486_vm10, %v5913_v63, %v3972_v51  ;;  %v3496_v27 = vrot.slane %v3495_v4, 4  ;;  %v3989_v63 = vshrl.u32 %v3879_v9, 16  ;;  %v7328_v51 = vpop.f32.mrf.mxu0 }
 0x240   : > { %v3109_v40 = vpop.f32.mrf.mxu2  ;;  %v4275_v26 = vunpack.c.l.b16 %v3973_v32  ;;  %8058 = vst [vmem:[#allocation31_spill] sm:$0xff] %v7328_v51  ;;  %v3516_v32 = vshrl.u32 %v3245_v62, 16  ;;  %v4001_v4 = vshll.u32 %v3880_v33, 16 }
 0x241   : > { %6017 = vmatmul.msk.bf16.gmra.mxu0 %vm1351_vm8, %v6089_v8  ;;  %v7326_v23 = vadd.f32 %v3109_v40, %v2931_v35  ;;  %v3500_v8 = vrot.slane %v3498_v24, 5  ;;  %v3506_v35 = vshll.u32 %v3244_v48, 16  ;;  %v3512_v40 = vshll.u32 %v3245_v62, 16 }
 0x242   : > { %v4305_v3 = vpack.c.b16 %v4276_v29, %v4275_v26  ;;  %v3984_v29 = vshrl.u32 %v3878_v47, 16  ;;  %v3992_v26 = vshll.u32 %v3879_v9, 16  ;;  %v6090_v9 = vld [vmem:[#allocation2 + $0x110] sm:$0xff] }
 0x243   : > { %5903 = vmatmul.msk.bf16.gmra.mxu3 %vm1351_vm8, %v3688_v39  ;;  %v3503_v39 = vshrl.u32 %v3244_v48, 16  ;;  %v3501_v24 = vsel %vm6660_vm13, %v3496_v27, %v3500_v8  ;;  %v4003_v48 = vor.u32 %v4001_v4, %v4000_v14 }
 0x244   : > { %v2276_v41 = vpop.f32.mrf.mxu1  ;;  %v3667_v42 = vunpack.c.l.b16 %v3501_v24  ;;  %v5914_v16 = vrot.slane %v3984_v29, 11 }
 0x245   : > { %v7334_v34 = vadd.f32 %v2276_v41, %v7119_v46  ;;  %5888 = vmatmul.msk.bf16.gmra.mxu2 %vm1351_vm8, %v6075_v10  ;;  %v3491_v46 = vsel %vm6660_vm13, %v3486_v12, %v3490_v45  ;;  %v3991_v10 = vrot.slane %v3989_v63, 7  ;;  %v3505_v62 = vrot.slane %v3503_v39, 4 }
 0x246   : > { %v3756_v37 = vpop.f32.mrf.mxu3  ;;  %v3514_v41 = vrot.slane %v3512_v40, 5  ;;  %v3666_v51 = vunpack.c.l.b16 %v3491_v46  ;;  %v3522_v39 = vshll.u32 %v3246_v36, 16  ;;  %v3881_v36 = vld [vmem:[#allocation2 + $0x94] sm:$0x8] }
 0x247   : > { %v7331_v18 = vadd.f32 %v3756_v37, %v7267_v30  ;;  %5930 = vmatmul.msk.bf16.gmra.mxu1 %vm1351_vm8, %v4305_v3  ;;  %v3508_v37 = vrot.slane %v3506_v35, 5  ;;  %v3518_v3 = vrot.slane %v3516_v32, 4  ;;  %v3994_v45 = vor.u32 %v3992_v26, %v3991_v10  ;;  %v7354_v35 = vpop.f32.mrf.mxu0 }
 0x248   : > { %v3112_v30 = vpop.f32.mrf.mxu2  ;;  %v3996_v12 = vrot.slane %v3991_v10, 4  ;;  %v3689_v40 = vpack.c.b16 %v3667_v42, %v3666_v51  ;;  %v2933_v32 = vadd.f32 %v6819_v17, %v7076_v20  ;;  %v3524_v29 = vrot.slane %v3522_v39, 5  ;;  %v6076_v10 = vld [vmem:[#allocation2 + $0x128] sm:$0xff] }
 0x249   : > { %v7344_v2 = vadd.f32 %v3112_v30, %v2932_v56  ;;  %v3509_v47 = vor.u32 %v3508_v37, %v3505_v62  ;;  %v3519_v14 = vor.u32 %v3518_v3, %v3514_v41  ;;  %v3883_v56 = vld [vmem:[#allocation2 + $0x9c] sm:$0xf]  ;;  %v3882_v30 = vld [vmem:[#allocation2 + $0x98] sm:$0xf]  ;;  %v3247_v17 = vld [vmem:[#allocation2 + $0x128] sm:$0xf] }
 0x24a   : > { %v4004_v63 = vsel %vm6486_vm10, %v3996_v12, %v4003_v48  ;;  %v4020_v51 = vshrl.u32 %v3883_v56, 16  ;;  %v4011_v62 = vshrl.u32 %v3882_v30, 16  ;;  %v3248_v37 = vld [vmem:[#allocation2 + $0x12c] sm:$0xf]  ;;  %v4006_v39 = vshrl.u32 %v3881_v36, 16 }
 0x24b   : > { %v4278_v4 = vunpack.c.l.b16 %v4004_v63  ;;  %v3510_v46 = vrot.slane %v3509_v47, 4  ;;  %v3520_v24 = vrot.slane %v3519_v14, 4  ;;  %v3530_v63 = vshll.u32 %v3247_v17, 16 }
 0x24c   : > { %v2278_v15 = vpop.f32.mrf.mxu1  ;;  %v4022_v12 = vrot.slane %v4020_v51, 7  ;;  %v3540_v47 = vshrl.u32 %v3248_v37, 16 }
 0x24d   : > { %v7350_v8 = vadd.f32 %v2278_v15, %v7139_v60  ;;  %v3995_v60 = vsel %vm6486_vm10, %v5914_v16, %v3994_v45  ;;  %v3525_v45 = vsel %vm6660_vm13, %v3520_v24, %v3524_v29  ;;  %v3532_v51 = vrot.slane %v3530_v63, 5  ;;  %v3886_v63 = vld [vmem:[#allocation2 + $0xb4] sm:$0xf] }
 0x24e   : > { %v3758_v33 = vpop.f32.mrf.mxu3  ;;  %v4277_v26 = vunpack.c.l.b16 %v3995_v60 }
 0x24f   : > { %v7347_v27 = vadd.f32 %v3758_v33, %v7291_v53  ;;  %v3515_v33 = vsel %vm6660_vm13, %v3510_v46, %v3514_v41  ;;  %v4014_v46 = vshll.u32 %v3882_v30, 16 }
 0x250   : > { %v3114_v53 = vpop.f32.mrf.mxu2  ;;  %v4306_v42 = vpack.c.b16 %v4278_v4, %v4277_v26  ;;  %v3668_v60 = vunpack.c.l.b16 %v3515_v33  ;;  %v3669_v4 = vunpack.c.l.b16 %v3525_v45  ;;  %v3542_v26 = vrot.slane %v3540_v47, 4 }
 0x251   : > { %6018 = vmatmul.msk.bf16.gmra.mxu0 %vm1351_vm8, %v6090_v9  ;;  %v7362_v15 = vadd.f32 %v3114_v53, %v2933_v32  ;;  %v3527_v9 = vshrl.u32 %v3247_v17, 16  ;;  %v4023_v32 = vshll.u32 %v3883_v56, 16  ;;  %v7378_v53 = vpop.f32.mrf.mxu0  ;;  %v5915_v17 = vrot.slane %v4006_v39, 11 }
 0x252   : > { %v3690_v36 = vpack.c.b16 %v3669_v4, %v3668_v60  ;;  %v2935_v33 = vadd.f32 %v6855_v55, %v7106_v25  ;;  %v4042_v39 = vshrl.u32 %v3886_v63, 16  ;;  %v6077_v55 = vld [vmem:[#allocation2 + $0x140] sm:$0xff] }
 0x253   : > { %5904 = vmatmul.msk.bf16.gmra.mxu3 %vm1351_vm8, %v3689_v40  ;;  %v4013_v40 = vrot.slane %v4011_v62, 7  ;;  %v4025_v24 = vor.u32 %v4023_v32, %v4022_v12  ;;  %v3529_v29 = vrot.slane %v3527_v9, 4 }
 0x254   : > { %v2281_v48 = vpop.f32.mrf.mxu1 }
 0x255   : > { %v7368_v16 = vadd.f32 %v2281_v48, %v7151_v31  ;;  %5889 = vmatmul.msk.bf16.gmra.mxu2 %vm1351_vm8, %v6076_v10  ;;  %v3536_v31 = vshll.u32 %v3248_v37, 16  ;;  %v4018_v48 = vrot.slane %v4013_v40, 4  ;;  %v3249_v37 = vld [vmem:[#allocation2 + $0x130] sm:$0x1]  ;;  %v3533_v45 = vor.u32 %v3532_v51, %v3529_v29 }
 0x256   : > { %v3761_v20 = vpop.f32.mrf.mxu3  ;;  %v3546_v9 = vshll.u32 %v3249_v37, 16  ;;  %v4044_v37 = vrot.slane %v4042_v39, 7 }
 0x257   : > { %v7365_v3 = vadd.f32 %v3761_v20, %v7305_v49  ;;  %5931 = vmatmul.msk.bf16.gmra.mxu1 %vm1351_vm8, %v4306_v42  ;;  %v2934_v49 = vadd.f32 %v6843_v5, %v7090_v0  ;;  %v3538_v10 = vrot.slane %v3536_v31, 5  ;;  %v4016_v20 = vor.u32 %v4014_v46, %v4013_v40  ;;  %v6091_v42 = vld [vmem:[#allocation2 + $0x128] sm:$0xff] }
 0x258   : > { %v3117_v14 = vpop.f32.mrf.mxu2  ;;  %v4026_v30 = vsel %vm6486_vm10, %v4018_v48, %v4025_v24  ;;  %v3534_v32 = vrot.slane %v3533_v45, 4  ;;  %v3548_v4 = vrot.slane %v3546_v9, 5  ;;  %v3884_v46 = vld [vmem:[#allocation2 + $0xac] sm:$0x8] }
 0x259   : > { %v7380_v41 = vadd.f32 %v3117_v14, %v2934_v49  ;;  %v3543_v12 = vor.u32 %v3542_v26, %v3538_v10  ;;  %v3885_v49 = vld [vmem:[#allocation2 + $0xb0] sm:$0xf]  ;;  %v4280_v47 = vunpack.c.l.b16 %v4026_v30  ;;  %v7398_v40 = vpop.f32.mrf.mxu0 }
 0x25a   : > { %v4033_v14 = vshrl.u32 %v3885_v49, 16 }
 0x25b   : > { %v3544_v60 = vrot.slane %v3543_v12, 4 }
 0x25c   : > { %v2283_v0 = vpop.f32.mrf.mxu1  ;;  %v4035_v48 = vrot.slane %v4033_v14, 7  ;;  %v4036_v14 = vshll.u32 %v3885_v49, 16 }
 0x25d   : > { %v7386_v62 = vadd.f32 %v2283_v0, %v7167_v21  ;;  %v4017_v21 = vsel %vm6486_vm10, %v5915_v17, %v4016_v20  ;;  %v3250_v0 = vld [vmem:[#allocation2 + $0x140] sm:$0xf]  ;;  %v3251_v17 = vld [vmem:[#allocation2 + $0x144] sm:$0xf]  ;;  %v4028_v20 = vshrl.u32 %v3884_v46, 16 }
 0x25e   : > { %v3763_v5 = vpop.f32.mrf.mxu3  ;;  %v4279_v25 = vunpack.c.l.b16 %v4017_v21  ;;  %v3551_v12 = vshrl.u32 %v3250_v0, 16  ;;  %v3554_v9 = vshll.u32 %v3250_v0, 16  ;;  %v3564_v21 = vshrl.u32 %v3251_v17, 16 }
 0x25f   : > { %v7383_v56 = vadd.f32 %v3763_v5, %v7326_v23  ;;  %v5916_v39 = vrot.slane %v4028_v20, 11  ;;  %v6092_v20 = vld [vmem:[#allocation2 + $0x140] sm:$0xff] }
 0x260   : > { %v3119_v23 = vpop.f32.mrf.mxu2  ;;  %v4307_v5 = vpack.c.b16 %v4280_v47, %v4279_v25 }
 0x261   : > { %6019 = vmatmul.msk.bf16.gmra.mxu0 %vm1351_vm8, %v6091_v42  ;;  %v7396_v31 = vadd.f32 %v3119_v23, %v2935_v33  ;;  %v8059_v42 = vld [vmem:[#allocation18_spill] sm:$0xff]  ;;  %v4045_v33 = vshll.u32 %v3886_v63, 16  ;;  %v3560_v23 = vshll.u32 %v3251_v17, 16  ;;  %v3566_v63 = vrot.slane %v3564_v21, 4  ;;  %v3252_v17 = vld [vmem:[#allocation2 + $0x148] sm:$0x1]  ;;  %v7422_v49 = vpop.f32.mrf.mxu0 }
 0x262   : > { %v3888_v21 = vld [vmem:[#allocation2 + $0xc8] sm:$0xf] }
 0x263   : > { %5905 = vmatmul.msk.bf16.gmra.mxu3 %vm1351_vm8, %v3690_v36  ;;  %v8060_v36 = vld [vmem:[#allocation7_spill] sm:$0xff] }
 0x264   : > { %v2286_v29 = vpop.f32.mrf.mxu1  ;;  %v2936_v30 = vadd.f32 %v8060_v36, %v8059_v42  ;;  %v3556_v42 = vrot.slane %v3554_v9, 5  ;;  %8062 = vst [vmem:[#allocation7_spill] sm:$0xff] %v7422_v49 }
 0x265   : > { %v7404_v26 = vadd.f32 %v2286_v29, %v7184_v22  ;;  %5890 = vmatmul.msk.bf16.gmra.mxu2 %vm1351_vm8, %v6077_v55  ;;  %v3549_v22 = vsel %vm6660_vm13, %v3544_v60, %v3548_v4  ;;  %v4047_v55 = vor.u32 %v4045_v33, %v4044_v37  ;;  %v4040_v29 = vrot.slane %v4035_v48, 4 }
 0x266   : > { %v3766_v24 = vpop.f32.mrf.mxu3  ;;  %v3671_v46 = vunpack.c.l.b16 %v3549_v22  ;;  %v3562_v60 = vrot.slane %v3560_v23, 5 }
 0x267   : > { %v7401_v51 = vadd.f32 %v3766_v24, %v7344_v2  ;;  %5932 = vmatmul.msk.bf16.gmra.mxu1 %vm1351_vm8, %v4307_v5  ;;  %v3539_v2 = vsel %vm6660_vm13, %v3534_v32, %v3538_v10  ;;  %v4038_v24 = vor.u32 %v4036_v14, %v4035_v48  ;;  %v3553_v32 = vrot.slane %v3551_v12, 4  ;;  %v3889_v48 = vld [vmem:[#allocation2 + $0xcc] sm:$0xf] }
 0x268   : > { %v3122_v45 = vpop.f32.mrf.mxu2  ;;  %v3670_v25 = vunpack.c.l.b16 %v3539_v2  ;;  %v4048_v37 = vsel %vm6486_vm10, %v4040_v29, %v4047_v55  ;;  %v8064_v2 = vld [vmem:[#allocation8_spill] sm:$0xff]  ;;  %v3570_v12 = vshll.u32 %v3252_v17, 16  ;;  %v4064_v14 = vshrl.u32 %v3889_v48, 16  ;;  %v6078_v55 = vld [vmem:[#allocation2 + $0x158] sm:$0xff] }
 0x269   : > { %v7414_v47 = vadd.f32 %v3122_v45, %v2936_v30  ;;  %v8063_v30 = vld [vmem:[#allocation20_spill] sm:$0xff]  ;;  %v3567_v45 = vor.u32 %v3566_v63, %v3562_v60  ;;  %v4282_v23 = vunpack.c.l.b16 %v4048_v37  ;;  %v3254_v29 = vld [vmem:[#allocation2 + $0x15c] sm:$0xf] }
 0x26a   : > { %v3691_v36 = vpack.c.b16 %v3671_v46, %v3670_v25  ;;  %v2937_v22 = vadd.f32 %v8064_v2, %v8063_v30  ;;  %v3253_v46 = vld [vmem:[#allocation2 + $0x158] sm:$0xf]  ;;  %v3572_v2 = vrot.slane %v3570_v12, 5  ;;  %v3887_v63 = vld [vmem:[#allocation2 + $0xc4] sm:$0x8]  ;;  %v4066_v17 = vrot.slane %v4064_v14, 7 }
 0x26b   : > { %8061 = vst [vmem:[#allocation18_spill] sm:$0xff] %v7414_v47  ;;  %v3568_v30 = vrot.slane %v3567_v45, 4  ;;  %v3575_v37 = vshrl.u32 %v3253_v46, 16  ;;  %v4067_v45 = vshll.u32 %v3889_v48, 16  ;;  %v4050_v14 = vshrl.u32 %v3887_v63, 16 }
 0x26c   : > { %v2288_v10 = vpop.f32.mrf.mxu1 }
 0x26d   : > { %v7420_v0 = vadd.f32 %v2288_v10, %v7203_v11  ;;  %v3557_v11 = vor.u32 %v3556_v42, %v3553_v32  ;;  %v5917_v49 = vrot.slane %v4050_v14, 11 }
 0x26e   : > { %v3768_v5 = vpop.f32.mrf.mxu3 }
 0x26f   : > { %v7417_v4 = vadd.f32 %v3768_v5, %v7362_v15  ;;  %v4039_v15 = vsel %vm6486_vm10, %v5916_v39, %v4038_v24  ;;  %v4055_v39 = vshrl.u32 %v3888_v21, 16 }
 0x270   : > { %v3124_v33 = vpop.f32.mrf.mxu2  ;;  %v4281_v25 = vunpack.c.l.b16 %v4039_v15  ;;  %v8066_v15 = vld [vmem:[#allocation9_spill] sm:$0xff] }
 0x271   : > { %6020 = vmatmul.msk.bf16.gmra.mxu0 %vm1351_vm8, %v6092_v20  ;;  %v7432_v9 = vadd.f32 %v3124_v33, %v2937_v22  ;;  %v3558_v20 = vrot.slane %v3557_v11, 4  ;;  %v3584_v22 = vshll.u32 %v3254_v29, 16  ;;  %v3588_v33 = vshrl.u32 %v3254_v29, 16 }
 0x272   : > { %v4308_v42 = vpack.c.b16 %v4282_v23, %v4281_v25  ;;  %v2938_v11 = vadd.f32 %v8066_v15, %v7154_v57  ;;  %v3573_v23 = vsel %vm6660_vm13, %v3568_v30, %v3572_v2  ;;  %v4069_v29 = vor.u32 %v4067_v45, %v4066_v17  ;;  %v3892_v45 = vld [vmem:[#allocation2 + $0xe4] sm:$0xf] }
 0x273   : > { %5906 = vmatmul.msk.bf16.gmra.mxu3 %vm1351_vm8, %v3691_v36  ;;  %8065 = vst [vmem:[#allocation20_spill] sm:$0xff] %v7432_v9  ;;  %v3578_v36 = vshll.u32 %v3253_v46, 16  ;;  %v4058_v46 = vshll.u32 %v3888_v21, 16  ;;  %v3590_v57 = vrot.slane %v3588_v33, 4  ;;  %v3673_v15 = vunpack.c.l.b16 %v3573_v23  ;;  %v3255_v9 = vld [vmem:[#allocation2 + $0x160] sm:$0x1] }
 0x274   : > { %v2291_v10 = vpop.f32.mrf.mxu1  ;;  %v6093_v21 = vld [vmem:[#allocation2 + $0x158] sm:$0xff]  ;;  %v8070_v33 = vld [vmem:[#allocation10_spill] sm:$0xff] }
 0x275   : > { %v7438_v32 = vadd.f32 %v2291_v10, %v7220_v28  ;;  %5891 = vmatmul.msk.bf16.gmra.mxu2 %vm1351_vm8, %v6078_v55  ;;  %v3563_v28 = vsel %vm6660_vm13, %v3558_v20, %v3562_v60  ;;  %v4057_v55 = vrot.slane %v4055_v39, 7  ;;  %v3580_v10 = vrot.slane %v3578_v36, 5 }
 0x276   : > { %v3771_v5 = vpop.f32.mrf.mxu3  ;;  %v3672_v48 = vunpack.c.l.b16 %v3563_v28 }
 0x277   : > { %v7435_v24 = vadd.f32 %v3771_v5, %v7380_v41  ;;  %5933 = vmatmul.msk.bf16.gmra.mxu1 %vm1351_vm8, %v4308_v42  ;;  %v7444_v41 = vpop.f32.mrf.mxu0  ;;  %v3577_v5 = vrot.slane %v3575_v37, 4  ;;  %v3586_v42 = vrot.slane %v3584_v22, 5  ;;  %v4060_v60 = vor.u32 %v4058_v46, %v4057_v55  ;;  %v8069_v22 = vld [vmem:[#allocation22_spill] sm:$0xff] }
 0x278   : > { %8067 = vst [vmem:[#allocation8_spill] sm:$0xff] %v7444_v41  ;;  %v3127_v12 = vpop.f32.mrf.mxu2  ;;  %v4062_v20 = vrot.slane %v4057_v55, 4  ;;  %v3594_v37 = vshll.u32 %v3255_v9, 16  ;;  %v3692_v36 = vpack.c.b16 %v3673_v15, %v3672_v48  ;;  %v4086_v55 = vshrl.u32 %v3892_v45, 16  ;;  %v6079_v46 = vld [vmem:[#allocation2 + $0x170] sm:$0xff] }
 0x279   : > { %v7450_v25 = vadd.f32 %v3127_v12, %v2938_v11  ;;  %v3581_v63 = vor.u32 %v3580_v10, %v3577_v5  ;;  %v3591_v17 = vor.u32 %v3590_v57, %v3586_v42  ;;  %v2939_v11 = vadd.f32 %v8070_v33, %v8069_v22  ;;  %v3256_v5 = vld [vmem:[#allocation2 + $0x170] sm:$0xf]  ;;  %v3257_v48 = vld [vmem:[#allocation2 + $0x174] sm:$0xf] }
 0x27a   : > { %v4070_v39 = vsel %vm6486_vm10, %v4062_v20, %v4069_v29  ;;  %v3596_v14 = vrot.slane %v3594_v37, 5  ;;  %v4746_v37 = vld [vmem:[#allocation2 + $0x3c] sm:$0xf]  ;;  %v3602_v22 = vshll.u32 %v3256_v5, 16  ;;  %v3608_v33 = vshll.u32 %v3257_v48, 16 }
 0x27b   : > { %8068 = vst [vmem:[#allocation9_spill] sm:$0xff] %v7450_v25  ;;  %v3582_v9 = vrot.slane %v3581_v63, 4  ;;  %v3592_v23 = vrot.slane %v3591_v17, 4  ;;  %v3599_v63 = vshrl.u32 %v3256_v5, 16  ;;  %v4745_v17 = vld [vmem:[#allocation2 + $0x38] sm:$0xf] }
 0x27c   : > { %v2293_v41 = vpop.f32.mrf.mxu1  ;;  %v3604_v25 = vrot.slane %v3602_v22, 5  ;;  %v8076_v22 = vld [vmem:[#allocation12_spill] sm:$0xff] }
 0x27d   : > { %v7456_v2 = vadd.f32 %v2293_v41, %v7239_v52  ;;  %v3891_v41 = vld [vmem:[#allocation2 + $0xe0] sm:$0xf]  ;;  %v3587_v20 = vsel %vm6660_vm13, %v3582_v9, %v3586_v42  ;;  %v4794_v9 = vshrl.u32 %v4745_v17, 16 }
 0x27e   : > { %v3773_v47 = vpop.f32.mrf.mxu3  ;;  %v4077_v57 = vshrl.u32 %v3891_v41, 16 }
 0x27f   : > { %v7453_v30 = vadd.f32 %v3773_v47, %v7396_v31  ;;  %v4061_v31 = vsel %vm6486_vm10, %v5917_v49, %v4060_v60  ;;  %v4284_v47 = vunpack.c.l.b16 %v4070_v39  ;;  %v7468_v28 = vpop.f32.mrf.mxu0  ;;  %v3890_v60 = vld [vmem:[#allocation2 + $0xdc] sm:$0x8]  ;;  %v4088_v39 = vrot.slane %v4086_v55, 7 }
 0x280   : > { %v3129_v12 = vpop.f32.mrf.mxu2  ;;  %8072 = vst [vmem:[#allocation10_spill] sm:$0xff] %v7468_v28  ;;  %v4283_v29 = vunpack.c.l.b16 %v4061_v31  ;;  %v4072_v31 = vshrl.u32 %v3890_v60, 16  ;;  %v3674_v55 = vunpack.c.l.b16 %v3587_v20  ;;  %v7483_v28 = vrot.slane %v3608_v33, 5  ;;  %v6094_v20 = vld [vmem:[#allocation2 + $0x170] sm:$0xff] }
 0x281   : > { %6021 = vmatmul.msk.bf16.gmra.mxu0 %vm1351_vm8, %v6093_v21  ;;  %v7466_v52 = vadd.f32 %v3129_v12, %v2939_v11  ;;  %v3597_v21 = vsel %vm6660_vm13, %v3592_v23, %v3596_v14  ;;  %v3612_v11 = vshrl.u32 %v3257_v48, 16  ;;  %v4803_v23 = vshll.u32 %v4746_v37, 16 }
 0x282   : > { %v4309_v15 = vpack.c.b16 %v4284_v47, %v4283_v29  ;;  %v4079_v47 = vrot.slane %v4077_v57, 7  ;;  %v4807_v14 = vshrl.u32 %v4746_v37, 16  ;;  %v3675_v29 = vunpack.c.l.b16 %v3597_v21 }
 0x283   : > { %5907 = vmatmul.msk.bf16.gmra.mxu3 %vm1351_vm8, %v3692_v36  ;;  %8071 = vst [vmem:[#allocation22_spill] sm:$0xff] %v7466_v52  ;;  %v8073_v36 = vld [vmem:[#allocation11_spill] sm:$0xff]  ;;  %v5918_v60 = vrot.slane %v4072_v31, 11  ;;  %v2941_v33 = vadd.f32 %v8076_v22, %v7206_v43 }
 0x284   : > { %v2296_v10 = vpop.f32.mrf.mxu1  ;;  %v3693_v21 = vpack.c.b16 %v3675_v29, %v3674_v55  ;;  %v4809_v37 = vrot.slane %v4807_v14, 4 }
 0x285   : > { %v7471_v49 = vadd.f32 %v2296_v10, %v7254_v61  ;;  %5892 = vmatmul.msk.bf16.gmra.mxu2 %vm1351_vm8, %v6079_v46  ;;  %v2940_v61 = vadd.f32 %v8073_v36, %v7187_v58  ;;  %v4089_v46 = vshll.u32 %v3892_v45, 16  ;;  %v4080_v10 = vshll.u32 %v3891_v41, 16  ;;  %v3258_v36 = vld [vmem:[#allocation2 + $0x178] sm:$0x1] }
 0x286   : > { %v3614_v58 = vrot.slane %v3612_v11, 4  ;;  %v4084_v45 = vrot.slane %v4079_v47, 4 }
 0x287   : > { %5934 = vmatmul.msk.bf16.gmra.mxu1 %vm1351_vm8, %v4309_v15  ;;  %v4091_v52 = vor.u32 %v4089_v46, %v4088_v39  ;;  %v3601_v15 = vrot.slane %v3599_v63, 4  ;;  %v7485_v5 = vpop.f32.mrf.mxu0  ;;  %v4082_v57 = vor.u32 %v4080_v10, %v4079_v47  ;;  %v4747_v39 = vld [vmem:[#allocation2 + $0x40] sm:$0x1]  ;;  %v7492_v63 = vrot.slane %v4803_v23, 5  ;;  %v3895_v46 = vld [vmem:[#allocation2 + $0xfc] sm:$0xf] }
 0x288   : > { %v3132_v12 = vpop.f32.mrf.mxu2  ;;  %8075 = vst [vmem:[#allocation32_spill] sm:$0xff] %v7485_v5  ;;  %v3615_v31 = vor.u32 %v3614_v58, %v7483_v28  ;;  %v3618_v47 = vshll.u32 %v3258_v36, 16  ;;  %v4813_v43 = vshll.u32 %v4747_v39, 16  ;;  %v3893_v10 = vld [vmem:[#allocation2 + $0xf4] sm:$0x8]  ;;  %v4108_v58 = vshrl.u32 %v3895_v46, 16 }
 0x289   : > { %v7481_v42 = vadd.f32 %v3132_v12, %v2940_v61  ;;  %v4797_v61 = vshll.u32 %v4745_v17, 16  ;;  %v4092_v41 = vsel %vm6486_vm10, %v4084_v45, %v4091_v52  ;;  %v3605_v11 = vor.u32 %v3604_v25, %v3601_v15  ;;  %v3894_v17 = vld [vmem:[#allocation2 + $0xf8] sm:$0xf]  ;;  %v3260_v39 = vld [vmem:[#allocation2 + $0x18c] sm:$0xf] }
 0x28a   : > { %v4083_v55 = vsel %vm6486_vm10, %v5918_v60, %v4082_v57  ;;  %v4796_v52 = vrot.slane %v4794_v9, 4  ;;  %v4286_v14 = vunpack.c.l.b16 %v4092_v41  ;;  %v4810_v25 = vor.u32 %v4809_v37, %v7492_v63  ;;  %v3259_v41 = vld [vmem:[#allocation2 + $0x188] sm:$0xf] }
 0x28b   : > { %8074 = vst [vmem:[#allocation11_spill] sm:$0xff] %v7481_v42  ;;  %v4799_v29 = vrot.slane %v4797_v61, 5  ;;  %v4099_v15 = vshrl.u32 %v3894_v17, 16  ;;  %v4285_v45 = vunpack.c.l.b16 %v4083_v55  ;;  %v3606_v36 = vrot.slane %v3605_v11, 4 }
 0x28c   : > { %v2298_v48 = vpop.f32.mrf.mxu1  ;;  %v3620_v22 = vrot.slane %v3618_v47, 5  ;;  %v4815_v61 = vrot.slane %v4813_v43, 5  ;;  %v4110_v55 = vrot.slane %v4108_v58, 7  ;;  %v4111_v11 = vshll.u32 %v3895_v46, 16  ;;  %v8079_v47 = vld [vmem:[#allocation13_spill] sm:$0xff] }
 0x28d   : > { %v7488_v12 = vadd.f32 %v2298_v48, %v7275_v54  ;;  %v6080_v48 = vld [vmem:[#allocation2 + $0x188] sm:$0xff]  ;;  %v4800_v60 = vor.u32 %v4799_v29, %v4796_v52  ;;  %v4310_v57 = vpack.c.b16 %v4286_v14, %v4285_v45  ;;  %v4811_v29 = vrot.slane %v4810_v25, 4 }
 0x28e   : > { %v3623_v43 = vshrl.u32 %v3259_v41, 16 }
 0x28f   : > { %v7508_v37 = vpop.f32.mrf.mxu0  ;;  %v4801_v58 = vrot.slane %v4800_v60, 4 }
 0x290   : > { %v3134_v54 = vpop.f32.mrf.mxu2  ;;  %8078 = vst [vmem:[#allocation33_spill] sm:$0xff] %v7508_v37 }
 0x291   : > { %6022 = vmatmul.msk.bf16.gmra.mxu0 %vm1351_vm8, %v6094_v20  ;;  %v7501_v23 = vadd.f32 %v3134_v54, %v2941_v33  ;;  %v3616_v20 = vrot.slane %v3615_v31, 4  ;;  %v4101_v33 = vrot.slane %v4099_v15, 7  ;;  %v4102_v54 = vshll.u32 %v3894_v17, 16  ;;  %v4749_v31 = vld [vmem:[#allocation2 + $0x54] sm:$0xf] }
 0x292   : > { %v3632_v17 = vshll.u32 %v3260_v39, 16  ;;  %v3636_v15 = vshrl.u32 %v3260_v39, 16  ;;  %v4831_v25 = vshrl.u32 %v4749_v31, 16 }
 0x293   : > { %5908 = vmatmul.msk.bf16.gmra.mxu3 %vm1351_vm8, %v3693_v21  ;;  %8077 = vst [vmem:[#allocation12_spill] sm:$0xff] %v7501_v23  ;;  %v4094_v21 = vshrl.u32 %v3893_v10, 16  ;;  %v3621_v52 = vsel %vm6660_vm13, %v3616_v20, %v3620_v22  ;;  %v3626_v10 = vshll.u32 %v3259_v41, 16  ;;  %v4748_v23 = vld [vmem:[#allocation2 + $0x50] sm:$0xf]  ;;  %v3625_v22 = vrot.slane %v3623_v43, 4 }
 0x294   : > { %v2301_v42 = vpop.f32.mrf.mxu1  ;;  %v7522_v5 = vrot.slane %v3632_v17, 5  ;;  %v3638_v39 = vrot.slane %v3636_v15, 4  ;;  %v3898_v43 = vld [vmem:[#allocation2 + $0x114] sm:$0xf] }
 0x295   : > { %v7505_v9 = vadd.f32 %v2301_v42, %v7294_v19  ;;  %5893 = vmatmul.msk.bf16.gmra.mxu2 %vm1351_vm8, %v6080_v48  ;;  %v2942_v19 = vadd.f32 %v8079_v47, %v7223_v59  ;;  %v3611_v42 = vsel %vm6660_vm13, %v3606_v36, %v7483_v28  ;;  %v4827_v48 = vshll.u32 %v4749_v31, 16 }
 0x296   : > { %v5919_v45 = vrot.slane %v4094_v21, 11  ;;  %v4106_v59 = vrot.slane %v4101_v33, 4  ;;  %v4113_v47 = vor.u32 %v4111_v11, %v4110_v55  ;;  %v3676_v37 = vunpack.c.l.b16 %v3611_v42  ;;  %v3261_v21 = vld [vmem:[#allocation2 + $0x190] sm:$0x1] }
 0x297   : > { %5935 = vmatmul.msk.bf16.gmra.mxu1 %vm1351_vm8, %v4310_v57  ;;  %v4104_v57 = vor.u32 %v4102_v54, %v4101_v33  ;;  %v3677_v28 = vunpack.c.l.b16 %v3621_v52  ;;  %v4816_v36 = vsel %vm6660_vm13, %v4811_v29, %v4815_v61  ;;  %v3628_v41 = vrot.slane %v3626_v10, 5  ;;  %v6095_v33 = vld [vmem:[#allocation2 + $0x188] sm:$0xff]  ;;  %v8080_v42 = vld [vmem:[#allocation14_spill] sm:$0xff]  ;;  %v7538_v10 = vpop.f32.mrf.mxu0 }
 0x298   : > { %v3137_v14 = vpop.f32.mrf.mxu2  ;;  %v4818_v54 = vshrl.u32 %v4748_v23, 16  ;;  %v4806_v55 = vsel %vm6660_vm13, %v4801_v58, %v7492_v63  ;;  %v4114_v11 = vsel %vm6486_vm10, %v4106_v59, %v4113_v47  ;;  %v4821_v31 = vshll.u32 %v4748_v23, 16  ;;  %v3896_v59 = vld [vmem:[#allocation2 + $0x10c] sm:$0x8] }
 0x299   : > { %v7518_v46 = vadd.f32 %v3137_v14, %v2942_v19  ;;  %v4105_v61 = vsel %vm6486_vm10, %v5919_v45, %v4104_v57  ;;  %v3694_v19 = vpack.c.b16 %v3677_v28, %v3676_v37  ;;  %v2943_v52 = vadd.f32 %v8080_v42, %v7242_v7  ;;  %v3897_v14 = vld [vmem:[#allocation2 + $0x110] sm:$0xf]  ;;  %v4750_v45 = vld [vmem:[#allocation2 + $0x58] sm:$0x1] }
 0x29a   : > { %v7536_v29 = vrot.slane %v4827_v48, 5  ;;  %v3629_v17 = vor.u32 %v3628_v41, %v3625_v22  ;;  %v3639_v15 = vor.u32 %v3638_v39, %v7522_v5  ;;  %v3642_v58 = vshll.u32 %v3261_v21, 16 }
 0x29b   : > { %v4833_v23 = vrot.slane %v4831_v25, 4  ;;  %v5179_v7 = vunpack.c.l.b16 %v4806_v55  ;;  %v4287_v48 = vunpack.c.l.b16 %v4105_v61  ;;  %v4288_v57 = vunpack.c.l.b16 %v4114_v11 }
 0x29c   : > { %v2303_v20 = vpop.f32.mrf.mxu1  ;;  %v4121_v47 = vshrl.u32 %v3897_v14, 16  ;;  %v4130_v28 = vshrl.u32 %v3898_v43, 16  ;;  %v4837_v42 = vshll.u32 %v4750_v45, 16  ;;  %v3630_v41 = vrot.slane %v3629_v17, 4 }
 0x29d   : > { %v7525_v60 = vadd.f32 %v2303_v20, %v7313_v50  ;;  %v5180_v50 = vunpack.c.l.b16 %v4816_v36  ;;  %v4820_v20 = vrot.slane %v4818_v54, 4  ;;  %v3640_v39 = vrot.slane %v3639_v15, 4  ;;  %v8081_v54 = vld [vmem:[#allocation27_spill] sm:$0xff] }
 0x29e   : > { %v3644_v21 = vrot.slane %v3642_v58, 5  ;;  %v4834_v25 = vor.u32 %v4833_v23, %v7536_v29  ;;  %v4311_v55 = vpack.c.b16 %v4288_v57, %v4287_v48  ;;  %v4116_v61 = vshrl.u32 %v3896_v59, 16 }
 0x29f   : > { %v5211_v36 = vpack.c.b16 %v5180_v50, %v5179_v7  ;;  %v4123_v11 = vrot.slane %v4121_v47, 7  ;;  %v4133_v50 = vshll.u32 %v3898_v43, 16  ;;  %v4839_v7 = vrot.slane %v4837_v42, 5  ;;  %v4751_v42 = vld [vmem:[#allocation2 + $0x68] sm:$0xf] }
 0x2a0   : > { %v3139_v63 = vpop.f32.mrf.mxu2  ;;  %v3645_v45 = vsel %vm6660_vm13, %v3640_v39, %v3644_v21  ;;  %v4835_v23 = vrot.slane %v4834_v25, 4  ;;  %v5920_v43 = vrot.slane %v4116_v61, 11 }
 0x2a1   : > { %6023 = vmatmul.msk.bf16.gmra.mxu0 %vm1351_vm8, %v6095_v33  ;;  %v7543_v37 = vadd.f32 %v3139_v63, %v2943_v52  ;;  %v4823_v33 = vrot.slane %v4821_v31, 5  ;;  %v4124_v52 = vshll.u32 %v3897_v14, 16  ;;  %v4132_v63 = vrot.slane %v4130_v28, 7  ;;  %v8082_v31 = vld [vmem:[#allocation15_spill] sm:$0xff]  ;;  %v4752_v14 = vld [vmem:[#allocation2 + $0x6c] sm:$0xf] }
 0x2a2   : > { %v2944_v17 = vadd.f32 %v8082_v31, %v8081_v54  ;;  %v4128_v59 = vrot.slane %v4123_v11, 4  ;;  %v3901_v54 = vld [vmem:[#allocation2 + $0x12c] sm:$0xf]  ;;  %v4842_v31 = vshrl.u32 %v4751_v42, 16 }
 0x2a3   : > { %5909 = vmatmul.msk.bf16.gmra.mxu3 %vm1351_vm8, %v3694_v19  ;;  %v4824_v15 = vor.u32 %v4823_v33, %v4820_v20  ;;  %v4126_v57 = vor.u32 %v4124_v52, %v4123_v11  ;;  %v4135_v47 = vor.u32 %v4133_v50, %v4132_v63  ;;  %v8083_v11 = vld [vmem:[#allocation16_spill] sm:$0xff]  ;;  %v3900_v50 = vld [vmem:[#allocation2 + $0x128] sm:$0xf] }
 0x2a4   : > { %v4379_v22 = vpop.f32.mrf.mxu1  ;;  %v2945_v52 = vadd.f32 %v8083_v11, %v7278_v44 }
 0x2a5   : > { %v7547_v19 = vadd.f32 %v4379_v22, %v7331_v18  ;;  %6026 = vmatmul.msk.bf16.vlgmr.msra.gmra.mxu2 %vm1351_vm8, %v5211_v36  ;;  %v3635_v18 = vsel %vm6660_vm13, %v3630_v41, %v7522_v5  ;;  %v3679_v36 = vunpack.c.l.b16 %v3645_v45  ;;  %v4825_v33 = vrot.slane %v4824_v15, 4 }
 0x2a6   : > { %v3678_v28 = vunpack.c.l.b16 %v3635_v18  ;;  %v4840_v22 = vsel %vm6660_vm13, %v4835_v23, %v4839_v7  ;;  %v4851_v5 = vshll.u32 %v4752_v14, 16  ;;  %v4855_v41 = vshrl.u32 %v4752_v14, 16  ;;  %v4753_v7 = vld [vmem:[#allocation2 + $0x70] sm:$0x1]  ;;  %v3899_v14 = vld [vmem:[#allocation2 + $0x124] sm:$0x8] }
 0x2a7   : > { %5936 = vmatmul.msk.bf16.gmra.mxu1 %vm1351_vm8, %v4311_v55  ;;  %v4830_v21 = vsel %vm6660_vm13, %v4825_v33, %v7536_v29  ;;  %v4127_v25 = vsel %vm6486_vm10, %v5920_v43, %v4126_v57  ;;  %v4136_v55 = vsel %vm6486_vm10, %v4128_v59, %v4135_v47  ;;  %v5182_v63 = vunpack.c.l.b16 %v4840_v22 }
 0x2a8   : > { %v3142_v58 = vpop.f32.mrf.mxu2  ;;  %v3695_v61 = vpack.c.b16 %v3679_v36, %v3678_v28  ;;  %v4853_v15 = vrot.slane %v4851_v5, 5  ;;  %v5181_v18 = vunpack.c.l.b16 %v4830_v21  ;;  %v4289_v45 = vunpack.c.l.b16 %v4127_v25 }
 0x2a9   : > { %v7558_v48 = vadd.f32 %v3142_v58, %v2944_v17  ;;  %v4845_v17 = vshll.u32 %v4751_v42, 16  ;;  %v4857_v58 = vrot.slane %v4855_v41, 4  ;;  %v4290_v23 = vunpack.c.l.b16 %v4136_v55  ;;  %v8084_v55 = vld [vmem:[#allocation17_spill] sm:$0xff] }
 0x2aa   : > { %v4143_v43 = vshrl.u32 %v3900_v50, 16  ;;  %v4152_v57 = vshrl.u32 %v3901_v54, 16  ;;  %v5212_v44 = vpack.c.b16 %v5182_v63, %v5181_v18  ;;  %v4844_v47 = vrot.slane %v4842_v31, 4 }
 0x2ab   : > { %v4847_v28 = vrot.slane %v4845_v17, 5  ;;  %v4858_v36 = vor.u32 %v4857_v58, %v4853_v15  ;;  %v4312_v22 = vpack.c.b16 %v4290_v23, %v4289_v45  ;;  %v4138_v5 = vshrl.u32 %v3899_v14, 16 }
 0x2ac   : > { %v4381_v20 = vpop.f32.mrf.mxu1  ;;  %v4145_v41 = vrot.slane %v4143_v43, 7  ;;  %v4146_v42 = vshll.u32 %v3900_v50, 16  ;;  %v4154_v21 = vrot.slane %v4152_v57, 7  ;;  %v4155_v25 = vshll.u32 %v3901_v54, 16  ;;  %v4754_v43 = vld [vmem:[#allocation2 + $0x80] sm:$0xf] }
 0x2ad   : > { %v7563_v39 = vadd.f32 %v4381_v20, %v7347_v27  ;;  %v4861_v20 = vshll.u32 %v4753_v7, 16  ;;  %v4859_v63 = vrot.slane %v4858_v36, 4  ;;  %v5921_v17 = vrot.slane %v4138_v5, 11 }
 0x2ae   : > { %v4148_v58 = vor.u32 %v4146_v42, %v4145_v41  ;;  %v4150_v18 = vrot.slane %v4145_v41, 4  ;;  %v4157_v45 = vor.u32 %v4155_v25, %v4154_v21  ;;  %v4866_v41 = vshrl.u32 %v4754_v43, 16 }
 0x2b0   : > { %v3144_v27 = vpop.f32.mrf.mxu2 }
 0x2b1   : > { %v7575_v29 = vadd.f32 %v3144_v27, %v2945_v52  ;;  %v4848_v52 = vor.u32 %v4847_v28, %v4844_v47  ;;  %v4863_v27 = vrot.slane %v4861_v20, 5  ;;  %v8085_v47 = vld [vmem:[#allocation19_spill] sm:$0xff]  ;;  %v3903_v20 = vld [vmem:[#allocation2 + $0x140] sm:$0xf] }
 0x2b2   : > { %v2947_v28 = vadd.f32 %v8085_v47, %v7316_v13  ;;  %v4868_v13 = vrot.slane %v4866_v41, 4 }
 0x2b3   : > { %5910 = vmatmul.msk.bf16.gmra.mxu3 %vm1351_vm8, %v3695_v61  ;;  %v2946_v61 = vadd.f32 %v8084_v55, %v7297_v6  ;;  %v4849_v50 = vrot.slane %v4848_v52, 4  ;;  %v4864_v54 = vsel %vm6660_vm13, %v4859_v63, %v4863_v27  ;;  %v3902_v52 = vld [vmem:[#allocation2 + $0x13c] sm:$0x8]  ;;  %v4165_v63 = vshrl.u32 %v3903_v20, 16 }
 0x2b4   : > { %v4384_v59 = vpop.f32.mrf.mxu1  ;;  %v5184_v36 = vunpack.c.l.b16 %v4864_v54  ;;  %v4160_v54 = vshrl.u32 %v3902_v52, 16 }
 0x2b5   : > { %v7578_v33 = vadd.f32 %v4384_v59, %v7365_v3  ;;  %6027 = vmatmul.msk.bf16.gmra.mxu2 %vm1351_vm8, %v5212_v44  ;;  %v4755_v3 = vld [vmem:[#allocation2 + $0x84] sm:$0xf]  ;;  %v4854_v57 = vsel %vm6660_vm13, %v4849_v50, %v4853_v15  ;;  %v4149_v44 = vsel %vm6486_vm10, %v5921_v17, %v4148_v58  ;;  %v4158_v59 = vsel %vm6486_vm10, %v4150_v18, %v4157_v45 }
 0x2b6   : > { %v4875_v7 = vshll.u32 %v4755_v3, 16  ;;  %v4879_v14 = vshrl.u32 %v4755_v3, 16  ;;  %v5183_v15 = vunpack.c.l.b16 %v4854_v57  ;;  %v4291_v55 = vunpack.c.l.b16 %v4149_v44  ;;  %v8086_v44 = vld [vmem:[#allocation21_spill] sm:$0xff] }
 0x2b7   : > { %5937 = vmatmul.msk.bf16.gmra.mxu1 %vm1351_vm8, %v4312_v22  ;;  %v3904_v22 = vld [vmem:[#allocation2 + $0x144] sm:$0xf] }
 0x2b8   : > { %v3147_v11 = vpop.f32.mrf.mxu2  ;;  %v4877_v42 = vrot.slane %v4875_v7, 5  ;;  %v4881_v21 = vrot.slane %v4879_v14, 4  ;;  %v4174_v27 = vshrl.u32 %v3904_v22, 16  ;;  %v5213_v3 = vpack.c.b16 %v5184_v36, %v5183_v15 }
 0x2b9   : > { %v7584_v31 = vadd.f32 %v3147_v11, %v2946_v61  ;;  %v4292_v61 = vunpack.c.l.b16 %v4158_v59  ;;  %v4756_v11 = vld [vmem:[#allocation2 + $0x88] sm:$0x1]  ;;  %v4167_v7 = vrot.slane %v4165_v63, 7  ;;  %v4168_v14 = vshll.u32 %v3903_v20, 16  ;;  %v4757_v63 = vld [vmem:[#allocation2 + $0x98] sm:$0xf] }
 0x2ba   : > { %v4882_v18 = vor.u32 %v4881_v21, %v4877_v42  ;;  %v4885_v45 = vshll.u32 %v4756_v11, 16  ;;  %v4177_v57 = vshll.u32 %v3904_v22, 16  ;;  %v2948_v59 = vadd.f32 %v8086_v44, %v7334_v34 }
 0x2bb   : > { %v4313_v50 = vpack.c.b16 %v4292_v61, %v4291_v55  ;;  %v4170_v21 = vor.u32 %v4168_v14, %v4167_v7  ;;  %v4172_v15 = vrot.slane %v4167_v7, 4  ;;  %v4890_v7 = vshrl.u32 %v4757_v63, 16 }
 0x2bc   : > { %v4386_v23 = vpop.f32.mrf.mxu1  ;;  %v4883_v36 = vrot.slane %v4882_v18, 4 }
 0x2bd   : > { %v7589_v6 = vadd.f32 %v4386_v23, %v7383_v56  ;;  %v4869_v56 = vshll.u32 %v4754_v43, 16  ;;  %v4176_v43 = vrot.slane %v4174_v27, 7 }
 0x2bf   : > { %v4871_v58 = vrot.slane %v4869_v56, 5  ;;  %v5922_v56 = vrot.slane %v4160_v54, 11  ;;  %v4179_v55 = vor.u32 %v4177_v57, %v4176_v43 }
 0x2c0   : > { %v3149_v5 = vpop.f32.mrf.mxu2 }
 0x2c1   : > { %v7599_v25 = vadd.f32 %v3149_v5, %v2947_v28  ;;  %v4872_v28 = vor.u32 %v4871_v58, %v4868_v13  ;;  %v4887_v5 = vrot.slane %v4885_v45, 5  ;;  %v8087_v13 = vld [vmem:[#allocation23_spill] sm:$0xff] }
 0x2c2   : > { %v2949_v58 = vadd.f32 %v8087_v13, %v7350_v8  ;;  %v3906_v45 = vld [vmem:[#allocation2 + $0x158] sm:$0xf]  ;;  %v4892_v8 = vrot.slane %v4890_v7, 4 }
 0x2c3   : > { %v4873_v20 = vrot.slane %v4872_v28, 4  ;;  %v4888_v22 = vsel %vm6660_vm13, %v4883_v36, %v4887_v5  ;;  %v3905_v28 = vld [vmem:[#allocation2 + $0x154] sm:$0x8]  ;;  %v4187_v36 = vshrl.u32 %v3906_v45, 16 }
 0x2c4   : > { %v4389_v17 = vpop.f32.mrf.mxu1  ;;  %v5186_v18 = vunpack.c.l.b16 %v4888_v22  ;;  %v4182_v22 = vshrl.u32 %v3905_v28, 16 }
 0x2c5   : > { %v7602_v23 = vadd.f32 %v4389_v17, %v7401_v51  ;;  %6028 = vmatmul.msk.bf16.gmra.mxu2 %vm1351_vm8, %v5213_v3  ;;  %v4758_v51 = vld [vmem:[#allocation2 + $0x9c] sm:$0xf]  ;;  %v4878_v27 = vsel %vm6660_vm13, %v4873_v20, %v4877_v42  ;;  %v4171_v3 = vsel %vm6486_vm10, %v5922_v56, %v4170_v21  ;;  %v4180_v17 = vsel %vm6486_vm10, %v4172_v15, %v4179_v55 }
 0x2c6   : > { %v4899_v11 = vshll.u32 %v4758_v51, 16  ;;  %v4903_v52 = vshrl.u32 %v4758_v51, 16  ;;  %v5185_v42 = vunpack.c.l.b16 %v4878_v27  ;;  %v4293_v44 = vunpack.c.l.b16 %v4171_v3  ;;  %v8088_v3 = vld [vmem:[#allocation24_spill] sm:$0xff] }
 0x2c7   : > { %5938 = vmatmul.msk.bf16.gmra.mxu1 %vm1351_vm8, %v4313_v50  ;;  %v3907_v50 = vld [vmem:[#allocation2 + $0x15c] sm:$0xf] }
 0x2c8   : > { %v3152_v47 = vpop.f32.mrf.mxu2  ;;  %v4901_v14 = vrot.slane %v4899_v11, 5  ;;  %v4905_v43 = vrot.slane %v4903_v52, 4  ;;  %v4196_v5 = vshrl.u32 %v3907_v50, 16  ;;  %v5214_v51 = vpack.c.b16 %v5186_v18, %v5185_v42 }
 0x2c9   : > { %v7608_v41 = vadd.f32 %v3152_v47, %v2948_v59  ;;  %v4294_v59 = vunpack.c.l.b16 %v4180_v17  ;;  %v4759_v47 = vld [vmem:[#allocation2 + $0xa0] sm:$0x1]  ;;  %v4189_v11 = vrot.slane %v4187_v36, 7  ;;  %v4190_v52 = vshll.u32 %v3906_v45, 16  ;;  %v4760_v36 = vld [vmem:[#allocation2 + $0xb0] sm:$0xf] }
 0x2ca   : > { %v4906_v15 = vor.u32 %v4905_v43, %v4901_v14  ;;  %v4909_v55 = vshll.u32 %v4759_v47, 16  ;;  %v4199_v27 = vshll.u32 %v3907_v50, 16  ;;  %v2950_v17 = vadd.f32 %v8088_v3, %v7368_v16 }
 0x2cb   : > { %v4314_v20 = vpack.c.b16 %v4294_v59, %v4293_v44  ;;  %v4192_v43 = vor.u32 %v4190_v52, %v4189_v11  ;;  %v4194_v42 = vrot.slane %v4189_v11, 4  ;;  %v4914_v11 = vshrl.u32 %v4760_v36, 16 }
 0x2cc   : > { %v4391_v61 = vpop.f32.mrf.mxu1  ;;  %v4907_v18 = vrot.slane %v4906_v15, 4 }
 0x2cd   : > { %v7613_v34 = vadd.f32 %v4391_v61, %v7417_v4  ;;  %v4893_v4 = vshll.u32 %v4757_v63, 16  ;;  %v4198_v63 = vrot.slane %v4196_v5, 7 }
 0x2cf   : > { %v4895_v21 = vrot.slane %v4893_v4, 5  ;;  %v5923_v4 = vrot.slane %v4182_v22, 11  ;;  %v4201_v44 = vor.u32 %v4199_v27, %v4198_v63 }
 0x2d0   : > { %v3154_v54 = vpop.f32.mrf.mxu2 }
 0x2d1   : > { %v7623_v57 = vadd.f32 %v3154_v54, %v2949_v58  ;;  %v4896_v58 = vor.u32 %v4895_v21, %v4892_v8  ;;  %v4911_v54 = vrot.slane %v4909_v55, 5  ;;  %v8089_v8 = vld [vmem:[#allocation25_spill] sm:$0xff]  ;;  %v3909_v55 = vld [vmem:[#allocation2 + $0x170] sm:$0xf] }
 0x2d2   : > { %v2951_v21 = vadd.f32 %v8089_v8, %v7386_v62 }
 0x2d3   : > { %v4897_v45 = vrot.slane %v4896_v58, 4  ;;  %v4912_v50 = vsel %vm6660_vm13, %v4907_v18, %v4911_v54  ;;  %v3908_v58 = vld [vmem:[#allocation2 + $0x16c] sm:$0x8]  ;;  %v4209_v18 = vshrl.u32 %v3909_v55, 16 }
 0x2d4   : > { %v4394_v56 = vpop.f32.mrf.mxu1  ;;  %v5188_v15 = vunpack.c.l.b16 %v4912_v50  ;;  %v4212_v50 = vshll.u32 %v3909_v55, 16 }
 0x2d5   : > { %v7626_v61 = vadd.f32 %v4394_v56, %v7435_v24  ;;  %6029 = vmatmul.msk.bf16.gmra.mxu2 %vm1351_vm8, %v5214_v51  ;;  %v4761_v24 = vld [vmem:[#allocation2 + $0xb4] sm:$0xf]  ;;  %v4902_v5 = vsel %vm6660_vm13, %v4897_v45, %v4901_v14  ;;  %v4193_v51 = vsel %vm6486_vm10, %v5923_v4, %v4192_v43  ;;  %v4202_v56 = vsel %vm6486_vm10, %v4194_v42, %v4201_v44 }
 0x2d6   : > { %v4923_v47 = vshll.u32 %v4761_v24, 16  ;;  %v4927_v28 = vshrl.u32 %v4761_v24, 16  ;;  %v5187_v14 = vunpack.c.l.b16 %v4902_v5  ;;  %v4295_v3 = vunpack.c.l.b16 %v4193_v51 }
 0x2d7   : > { %5939 = vmatmul.msk.bf16.gmra.mxu1 %vm1351_vm8, %v4314_v20  ;;  %v3910_v20 = vld [vmem:[#allocation2 + $0x174] sm:$0xf]  ;;  %v4916_v4 = vrot.slane %v4914_v11, 4  ;;  %v4211_v45 = vrot.slane %v4209_v18, 7 }
 0x2d8   : > { %v3157_v13 = vpop.f32.mrf.mxu2  ;;  %v4925_v52 = vrot.slane %v4923_v47, 5  ;;  %v4929_v63 = vrot.slane %v4927_v28, 4  ;;  %v4218_v54 = vshrl.u32 %v3910_v20, 16  ;;  %v5215_v24 = vpack.c.b16 %v5188_v15, %v5187_v14 }
 0x2d9   : > { %v7632_v7 = vadd.f32 %v3157_v13, %v2950_v17  ;;  %v4296_v17 = vunpack.c.l.b16 %v4202_v56  ;;  %v4762_v13 = vld [vmem:[#allocation2 + $0xb8] sm:$0x1]  ;;  %v4221_v28 = vshll.u32 %v3910_v20, 16  ;;  %v4763_v20 = vld [vmem:[#allocation2 + $0xc8] sm:$0xf] }
 0x2da   : > { %v4930_v43 = vor.u32 %v4929_v63, %v4925_v52  ;;  %v4933_v42 = vshll.u32 %v4762_v13, 16  ;;  %v4220_v47 = vrot.slane %v4218_v54, 7  ;;  %v4216_v63 = vrot.slane %v4211_v45, 4  ;;  %v8091_v54 = vld [vmem:[#allocation28_spill] sm:$0xff] }
 0x2db   : > { %v4315_v44 = vpack.c.b16 %v4296_v17, %v4295_v3 }
 0x2dc   : > { %v4396_v59 = vpop.f32.mrf.mxu1  ;;  %v4931_v8 = vrot.slane %v4930_v43, 4  ;;  %v4223_v14 = vor.u32 %v4221_v28, %v4220_v47  ;;  %v4941_v43 = vshll.u32 %v4763_v20, 16  ;;  %v7665_v47 = vpop.f32.mrf.mxu0 }
 0x2dd   : > { %v7637_v16 = vadd.f32 %v4396_v59, %v7453_v30  ;;  %v4917_v30 = vshll.u32 %v4760_v36, 16  ;;  %v4204_v59 = vshrl.u32 %v3908_v58, 16  ;;  %v8090_v36 = vld [vmem:[#allocation26_spill] sm:$0xff] }
 0x2de   : > { %v2952_v5 = vadd.f32 %v8090_v36, %v7404_v26  ;;  %v4224_v18 = vsel %vm6486_vm10, %v4216_v63, %v4223_v14 }
 0x2df   : > { %v4919_v62 = vrot.slane %v4917_v30, 5  ;;  %v5924_v11 = vrot.slane %v4204_v59, 11  ;;  %v4214_v30 = vor.u32 %v4212_v50, %v4211_v45 }
 0x2e0   : > { %v3159_v22 = vpop.f32.mrf.mxu2 }
 0x2e1   : > { %v7647_v27 = vadd.f32 %v3159_v22, %v2951_v21  ;;  %v4920_v56 = vor.u32 %v4919_v62, %v4916_v4  ;;  %v4935_v21 = vrot.slane %v4933_v42, 5  ;;  %v4764_v22 = vld [vmem:[#allocation2 + $0xcc] sm:$0xf]  ;;  %v4215_v58 = vsel %vm6486_vm10, %v5924_v11, %v4214_v30  ;;  %v3912_v42 = vld [vmem:[#allocation2 + $0x188] sm:$0xf] }
 0x2e2   : > { %v4947_v17 = vshll.u32 %v4764_v22, 16  ;;  %v4951_v13 = vshrl.u32 %v4764_v22, 16  ;;  %v4938_v62 = vshrl.u32 %v4763_v20, 16  ;;  %v4297_v36 = vunpack.c.l.b16 %v4215_v58  ;;  %v779_v20 = vld [vmem:[#allocation2 + $0x19c] sm:$0x8] }
 0x2e3   : > { %v4921_v3 = vrot.slane %v4920_v56, 4  ;;  %v4936_v55 = vsel %vm6660_vm13, %v4931_v8, %v4935_v21  ;;  %v3911_v56 = vld [vmem:[#allocation2 + $0x184] sm:$0x8]  ;;  %v4231_v8 = vshrl.u32 %v3912_v42, 16  ;;  %v4943_v11 = vrot.slane %v4941_v43, 5 }
 0x2e4   : > { %v5190_v4 = vunpack.c.l.b16 %v4936_v55  ;;  %v4949_v45 = vrot.slane %v4947_v17, 5  ;;  %v4953_v50 = vrot.slane %v4951_v13, 4  ;;  %v4940_v22 = vrot.slane %v4938_v62, 4 }
 0x2e5   : > { %6030 = vmatmul.msk.bf16.gmra.mxu2 %vm1351_vm8, %v5215_v24  ;;  %v4926_v26 = vsel %vm6660_vm13, %v4921_v3, %v4925_v52  ;;  %v2953_v24 = vadd.f32 %v8091_v54, %v7420_v0  ;;  %v4226_v3 = vshrl.u32 %v3911_v56, 16  ;;  %v4234_v55 = vshll.u32 %v3912_v42, 16  ;;  %v8093_v54 = vld [vmem:[#allocation29_spill] sm:$0xff]  ;;  %v6096_v42 = vld [vmem:[#allocation2 + $0x1a0] sm:$0xff]  ;;  %v7677_v56 = vpop.f32.mrf.mxu0 }
 0x2e6   : > { %v5189_v28 = vunpack.c.l.b16 %v4926_v26  ;;  %v4954_v30 = vor.u32 %v4953_v50, %v4949_v45  ;;  %v4233_v17 = vrot.slane %v4231_v8, 7  ;;  %v4767_v50 = vld [vmem:[#allocation2 + $0xe4] sm:$0xf]  ;;  %6024 = vmatmul.msk.bf16.gmra.mxu0 %vm1351_vm8, %v6096_v42 }
 0x2e7   : > { %5940 = vmatmul.msk.bf16.gmra.mxu1 %vm1351_vm8, %v4315_v44  ;;  %v3913_v44 = vld [vmem:[#allocation2 + $0x18c] sm:$0xf] }
 0x2e8   : > { %v3162_v51 = vpop.f32.mrf.mxu2  ;;  %v4240_v21 = vshrl.u32 %v3913_v44, 16  ;;  %v5216_v0 = vpack.c.b16 %v5190_v4, %v5189_v28  ;;  %v4243_v26 = vshll.u32 %v3913_v44, 16  ;;  %v4944_v4 = vor.u32 %v4943_v11, %v4940_v22  ;;  %v3915_v11 = vld [vmem:[#allocation2 + $0x1a0] sm:$0xf] }
 0x2e9   : > { %v7653_v15 = vadd.f32 %v3162_v51, %v2952_v5  ;;  %v4298_v5 = vunpack.c.l.b16 %v4224_v18  ;;  %v4765_v51 = vld [vmem:[#allocation2 + $0xd0] sm:$0x1]  ;;  %v780_v18 = vsel %vm6460_vm6, 0, %v779_v20  ;;  %v4955_v43 = vrot.slane %v4954_v30, 4  ;;  %v3916_v30 = vld [vmem:[#allocation2 + $0x1a4] sm:$0xf] }
 0x2ea   : > { %v4957_v63 = vshll.u32 %v4765_v51, 16  ;;  %v4242_v13 = vrot.slane %v4240_v21, 7  ;;  %781 = vst [vmem:[#allocation2 + $0x19c] sm:$0x8] %v780_v18  ;;  %v4238_v44 = vrot.slane %v4233_v17, 4  ;;  %v4945_v8 = vrot.slane %v4944_v4, 4 }
 0x2eb   : > { %v4316_v14 = vpack.c.b16 %v4298_v5, %v4297_v36  ;;  %v5925_v36 = vrot.slane %v4226_v3, 11  ;;  %v4236_v5 = vor.u32 %v4234_v55, %v4233_v17  ;;  %v4766_v21 = vld [vmem:[#allocation2 + $0xe0] sm:$0xf]  ;;  %v8094_v17 = vld [vmem:[#allocation30_spill] sm:$0xff]  ;;  %v4253_v4 = vshrl.u32 %v3915_v11, 16 }
 0x2ec   : > { %v4245_v51 = vor.u32 %v4243_v26, %v4242_v13  ;;  %v4950_v22 = vsel %vm6660_vm13, %v4945_v8, %v4949_v45  ;;  %v4962_v55 = vshrl.u32 %v4766_v21, 16  ;;  %v4965_v20 = vshll.u32 %v4766_v21, 16 }
 0x2ed   : > { %v2955_v13 = vadd.f32 %v8094_v17, %v7456_v2  ;;  %v4262_v45 = vshrl.u32 %v3916_v30, 16  ;;  %v4256_v21 = vshll.u32 %v3915_v11, 16 }
 0x2ee   : > { %v4246_v3 = vsel %vm6486_vm10, %v4238_v44, %v4245_v51 }
 0x2f0   : > { %v3164_v59 = vpop.f32.mrf.mxu2 }
 0x2f1   : > { %v7667_v52 = vadd.f32 %v3164_v59, %v2953_v24  ;;  %v2954_v24 = vadd.f32 %v8093_v54, %v7438_v32  ;;  %v4959_v59 = vrot.slane %v4957_v63, 5  ;;  %v4237_v63 = vsel %vm6486_vm10, %v5925_v36, %v4236_v5  ;;  %v3914_v42 = vld [vmem:[#allocation2 + $0x19c] sm:$0x8] }
 0x2f2   : > { %v4964_v36 = vrot.slane %v4962_v55, 4  ;;  %v4967_v5 = vrot.slane %v4965_v20, 5  ;;  %v4248_v2 = vshrl.u32 %v3914_v42, 16 }
 0x2f3   : > { %v4960_v32 = vsel %vm6660_vm13, %v4955_v43, %v4959_v59  ;;  %v5191_v43 = vunpack.c.l.b16 %v4950_v22  ;;  %v4299_v59 = vunpack.c.l.b16 %v4237_v63  ;;  %v8095_v22 = vld [vmem:[#allocation31_spill] sm:$0xff] }
 0x2f4   : > { %v5192_v26 = vunpack.c.l.b16 %v4960_v32  ;;  %v4255_v32 = vrot.slane %v4253_v4, 7  ;;  %v2956_v63 = vadd.f32 %v8095_v22, %v7471_v49  ;;  %v4770_v4 = vld [vmem:[#allocation2 + $0xfc] sm:$0xf] }
 0x2f5   : > { %6031 = vmatmul.msk.bf16.gmra.mxu2 %vm1351_vm8, %v5216_v0  ;;  %v4971_v0 = vshll.u32 %v4767_v50, 16 }
 0x2f6   : > { %v5217_v44 = vpack.c.b16 %v5192_v26, %v5191_v43  ;;  %v5926_v26 = vrot.slane %v4248_v2, 11 }
 0x2f7   : > { %5941 = vmatmul.msk.bf16.gmra.mxu1 %vm1351_vm8, %v4316_v14  ;;  %v4975_v14 = vshrl.u32 %v4767_v50, 16  ;;  %v4973_v58 = vrot.slane %v4971_v0, 5  ;;  %v4300_v50 = vunpack.c.l.b16 %v4246_v3  ;;  %v4264_v0 = vrot.slane %v4262_v45, 7 }
 0x2f8   : > { %v3167_v62 = vpop.f32.mrf.mxu2  ;;  %v4968_v3 = vor.u32 %v4967_v5, %v4964_v36  ;;  %v4999_v5 = vshrl.u32 %v4770_v4, 16 }
 0x2f9   : > { %v7675_v28 = vadd.f32 %v3167_v62, %v2954_v24  ;;  %v4977_v18 = vrot.slane %v4975_v14, 4  ;;  %v4768_v24 = vld [vmem:[#allocation2 + $0xe8] sm:$0x1]  ;;  %v4265_v14 = vshll.u32 %v3916_v30, 16  ;;  %v4317_v17 = vpack.c.b16 %v4300_v50, %v4299_v59 }
 0x2fa   : > { %v4981_v8 = vshll.u32 %v4768_v24, 16  ;;  %v4769_v24 = vld [vmem:[#allocation2 + $0xf8] sm:$0xf]  ;;  %v4969_v30 = vrot.slane %v4968_v3, 4  ;;  %v4995_v50 = vshll.u32 %v4770_v4, 16  ;;  %v5001_v22 = vrot.slane %v4999_v5, 4 }
 0x2fb   : > { %v4978_v51 = vor.u32 %v4977_v18, %v4973_v58  ;;  %v4258_v18 = vor.u32 %v4256_v21, %v4255_v32  ;;  %v4267_v11 = vor.u32 %v4265_v14, %v4264_v0  ;;  %v4986_v43 = vshrl.u32 %v4769_v24, 16 }
 0x2fc   : > { %v4983_v55 = vrot.slane %v4981_v8, 5  ;;  %v4989_v59 = vshll.u32 %v4769_v24, 16 }
 0x2fd   : > { %v4259_v49 = vsel %vm6486_vm10, %v5926_v26, %v4258_v18  ;;  %v4988_v0 = vrot.slane %v4986_v43, 4 }
 0x2fe   : > { %v4301_v21 = vunpack.c.l.b16 %v4259_v49  ;;  %v4991_v14 = vrot.slane %v4989_v59, 5 }
 0x300   : > { %v3169_v54 = vpop.f32.mrf.mxu2 }
 0x301   : > { %v7690_v62 = vadd.f32 %v3169_v54, %v2955_v13  ;;  %v4979_v13 = vrot.slane %v4978_v51, 4  ;;  %v4260_v54 = vrot.slane %v4255_v32, 4  ;;  %v2957_v51 = vadd.f32 %v7354_v35, %v7488_v12  ;;  %v4772_v12 = vld [vmem:[#allocation2 + $0x110] sm:$0xf] }
 0x302   : > { %v2958_v35 = vadd.f32 %v7378_v53, %v7505_v9  ;;  %v5010_v43 = vshrl.u32 %v4772_v12, 16  ;;  %v5013_v59 = vshll.u32 %v4772_v12, 16  ;;  %v2959_v9 = vadd.f32 %v7398_v40, %v7525_v60  ;;  %v7731_v60 = vld [vmem:[%s8022_s5] ss:$0 sm:$0xff]  ;;  %v4776_v12 = vld [vmem:[#allocation2 + $0x12c] sm:$0xf] }
 0x303   : > { %v4984_v42 = vsel %vm6660_vm13, %v4979_v13, %v4983_v55  ;;  %v4268_v36 = vsel %vm6486_vm10, %v4260_v54, %v4267_v11 }
 0x304   : > { %v5194_v8 = vunpack.c.l.b16 %v4984_v42  ;;  %v4302_v2 = vunpack.c.l.b16 %v4268_v36  ;;  %v5012_v53 = vrot.slane %v5010_v43, 4  ;;  %v5047_v43 = vshrl.u32 %v4776_v12, 16 }
 0x305   : > { %6032 = vmatmul.msk.bf16.gmra.mxu2 %vm1351_vm8, %v5217_v44  ;;  %v4974_v44 = vsel %vm6660_vm13, %v4969_v30, %v4973_v58  ;;  %v5005_v58 = vshll.u32 %v4771_v1, 16  ;;  %v4773_v30 = vld [vmem:[#allocation2 + $0x114] sm:$0xf]  ;;  %v8096_v1 = vld [vmem:[#allocation7_spill] sm:$0xff] }
 0x306   : > { %v5193_v3 = vunpack.c.l.b16 %v4974_v44  ;;  %v4318_v55 = vpack.c.b16 %v4302_v2, %v4301_v21  ;;  %v5019_v49 = vshll.u32 %v4773_v30, 16  ;;  %v5023_v36 = vshrl.u32 %v4773_v30, 16 }
 0x307   : > { %5942 = vmatmul.msk.bf16.gmra.mxu1 %vm1351_vm8, %v4317_v17  ;;  %v4997_v17 = vrot.slane %v4995_v50, 5  ;;  %v5007_v24 = vrot.slane %v5005_v58, 5  ;;  %v4713_v40 = vadd.f32 %v8096_v1, %v7547_v19  ;;  %v4775_v58 = vld [vmem:[#allocation2 + $0x128] sm:$0xf]  ;;  %v5043_v30 = vshll.u32 %v4776_v12, 16 }
 0x308   : > { %v3172_v20 = vpop.f32.mrf.mxu2  ;;  %v5218_v13 = vpack.c.b16 %v5194_v8, %v5193_v3  ;;  %v5021_v21 = vrot.slane %v5019_v49, 5  ;;  %v5025_v2 = vrot.slane %v5023_v36, 4  ;;  %v5034_v19 = vshrl.u32 %v4775_v58, 16  ;;  %v4778_v12 = vld [vmem:[#allocation2 + $0x140] sm:$0xf] }
 0x309   : > { %v7696_v45 = vadd.f32 %v3172_v20, %v2956_v63  ;;  %v4992_v20 = vor.u32 %v4991_v14, %v4988_v0  ;;  %v5002_v26 = vor.u32 %v5001_v22, %v4997_v17  ;;  %v4774_v0 = vld [vmem:[#allocation2 + $0x118] sm:$0x1] }
 0x30a   : > { %v5026_v22 = vor.u32 %v5025_v2, %v5021_v21  ;;  %v5029_v3 = vshll.u32 %v4774_v0, 16  ;;  %v4777_v2 = vld [vmem:[#allocation2 + $0x130] sm:$0x1]  ;;  %v7748_v0 = vpop.f32.mrf.mxu1 }
 0x30b   : > { %v4993_v54 = vrot.slane %v4992_v20, 4  ;;  %v5003_v11 = vrot.slane %v5002_v26, 4  ;;  %v5053_v1 = vshll.u32 %v4777_v2, 16 }
 0x30c   : > { %v5027_v20 = vrot.slane %v5026_v22, 4  ;;  %v5031_v26 = vrot.slane %v5029_v3, 5 }
 0x30d   : > { %v4998_v50 = vsel %vm6660_vm13, %v4993_v54, %v4997_v17  ;;  %v5008_v42 = vsel %vm6660_vm13, %v5003_v11, %v5007_v24  ;;  %v5037_v11 = vshll.u32 %v4775_v58, 16 }
 0x30e   : > { %v5195_v5 = vunpack.c.l.b16 %v4998_v50  ;;  %v5196_v44 = vunpack.c.l.b16 %v5008_v42  ;;  %v5032_v24 = vsel %vm6660_vm13, %v5027_v20, %v5031_v26  ;;  %v8097_v42 = vld [vmem:[#allocation8_spill] sm:$0xff]  ;;  %v7756_v20 = vpop.f32.mrf.mxu0 }
 0x30f   : > { %v4714_v49 = vadd.f32 %v8097_v42, %v7563_v39  ;;  %v5198_v36 = vunpack.c.l.b16 %v5032_v24 }
 0x310   : > { %v3174_v32 = vpop.f32.mrf.mxu2  ;;  %v5219_v14 = vpack.c.b16 %v5196_v44, %v5195_v5  ;;  %v7746_v5 = vpop.f32.mrf.mxu3 }
 0x311   : > { %v7708_v63 = vadd.f32 %v3174_v32, %v2957_v51  ;;  %v5015_v51 = vrot.slane %v5013_v59, 5 }
 0x313   : > { %v5016_v17 = vor.u32 %v5015_v51, %v5012_v53  ;;  %v5036_v53 = vrot.slane %v5034_v19, 4  ;;  %v5045_v51 = vrot.slane %v5043_v30, 5  ;;  %v5058_v30 = vshrl.u32 %v4778_v12, 16 }
 0x315   : > { %6033 = vmatmul.msk.bf16.gmra.mxu2 %vm1351_vm8, %v5218_v13  ;;  %v5017_v13 = vrot.slane %v5016_v17, 4 }
 0x317   : > { %5943 = vmatmul.msk.bf16.gmra.mxu1 %vm1351_vm8, %v4318_v55  ;;  %v5022_v54 = vsel %vm6660_vm13, %v5017_v13, %v5021_v21 }
 0x318   : > { %v3177_v18 = vpop.f32.mrf.mxu2  ;;  %v5197_v50 = vunpack.c.l.b16 %v5022_v54  ;;  %v4779_v54 = vld [vmem:[#allocation2 + $0x144] sm:$0xf]  ;;  %v7758_v19 = vpop.f32.mrf.mxu3 }
 0x319   : > { %v7714_v4 = vadd.f32 %v3177_v18, %v2958_v35  ;;  %v5071_v42 = vshrl.u32 %v4779_v54, 16 }
 0x31a   : > { %v5220_v17 = vpack.c.b16 %v5198_v36, %v5197_v50  ;;  %v5067_v50 = vshll.u32 %v4779_v54, 16  ;;  %v4781_v54 = vld [vmem:[#allocation2 + $0x158] sm:$0xf] }
 0x31c   : > { %v5069_v2 = vrot.slane %v5067_v50, 5  ;;  %v5082_v50 = vshrl.u32 %v4781_v54, 16 }
 0x320   : > { %v3179_v8 = vpop.f32.mrf.mxu2 }
 0x321   : > { %v7722_v32 = vadd.f32 %v3179_v8, %v2959_v9  ;;  %v5039_v9 = vrot.slane %v5037_v11, 5  ;;  %v5049_v8 = vrot.slane %v5047_v43, 4  ;;  %v5061_v43 = vshll.u32 %v4778_v12, 16 }
 0x323   : > { %v5040_v22 = vor.u32 %v5039_v9, %v5036_v53  ;;  %v5050_v3 = vor.u32 %v5049_v8, %v5045_v51  ;;  %v8099_v53 = vld [vmem:[#allocation32_spill] sm:$0xff]  ;;  %v5060_v8 = vrot.slane %v5058_v30, 4 }
 0x324   : > { %v4716_v9 = vadd.f32 %v8099_v53, %v7589_v6 }
 0x325   : > { %6034 = vmatmul.msk.bf16.gmra.mxu2 %vm1351_vm8, %v5219_v14  ;;  %v5051_v58 = vrot.slane %v5050_v3, 4  ;;  %v7771_v3 = vpop.f32.mrf.mxu0 }
 0x328   : > { %v5287_v55 = vpop.f32.mrf.mxu2 }
 0x329   : > { %v5367_v35 = vadd.f32 %v5287_v55, %v4713_v40  ;;  %v8098_v40 = vld [vmem:[#allocation10_spill] sm:$0xff]  ;;  %v5041_v55 = vrot.slane %v5040_v22, 4  ;;  %v4780_v22 = vld [vmem:[#allocation2 + $0x148] sm:$0x1] }
 0x32a   : > { %v4715_v13 = vadd.f32 %v8098_v40, %v7578_v33  ;;  %v7763_v33 = vpop.f32.mrf.mxu1 }
 0x32b   : > { %v5403_v18 = vadd.f32 %v7731_v60, %v5367_v35  ;;  %v5055_v35 = vrot.slane %v5053_v1, 5  ;;  %v5046_v24 = vsel %vm6660_vm13, %v5041_v55, %v5045_v51 }
 0x32c   : > { %v5199_v36 = vunpack.c.l.b16 %v5046_v24 }
 0x32d   : > { %v5435_v59 = vmax.f32 %v5403_v18, 0.0 }
 0x32f   : > { %5468 = vst.msk [vmem:[%s7740_s20] sm:$0xff] %vm5467_vm14, %v5435_v59  ;;  %v5056_v59 = vsel %vm6660_vm13, %v5051_v58, %v5055_v35  ;;  %v8100_v35 = vld [vmem:[#allocation33_spill] sm:$0xff] }
 0x330   : > { %v5289_v44 = vpop.f32.mrf.mxu2  ;;  %v4717_v12 = vadd.f32 %v8100_v35, %v7602_v23 }
 0x331   : > { %v5368_v21 = vadd.f32 %v5289_v44, %v4714_v49  ;;  %v5200_v44 = vunpack.c.l.b16 %v5056_v59 }
 0x332   : > { %v7777_v58 = vpop.f32.mrf.mxu1 }
 0x333   : > { %v5404_v14 = vadd.f32 %v7731_v60, %v5368_v21  ;;  %v5063_v21 = vrot.slane %v5061_v43, 5  ;;  %v4782_v43 = vld [vmem:[#allocation2 + $0x15c] sm:$0xf] }
 0x334   : > { %v5091_v53 = vshll.u32 %v4782_v43, 16 }
 0x335   : > { %v5436_v39 = vmax.f32 %v5404_v14, 0.0  ;;  %6035 = vmatmul.msk.bf16.gmra.mxu2 %vm1351_vm8, %v5220_v17  ;;  %v5073_v14 = vrot.slane %v5071_v42, 4  ;;  %v5064_v40 = vor.u32 %v5063_v21, %v5060_v8  ;;  %v5085_v42 = vshll.u32 %v4781_v54, 16 }
 0x337   : > { %5469 = vst.msk [vmem:[%s7740_s20 + $0x8] sm:$0xff] %vm5467_vm14, %v5436_v39  ;;  %v5221_v39 = vpack.c.b16 %v5200_v44, %v5199_v36  ;;  %v5074_v55 = vor.u32 %v5073_v14, %v5069_v2  ;;  %v7786_v44 = vpop.f32.mrf.mxu0  ;;  %v5084_v14 = vrot.slane %v5082_v50, 4  ;;  %v4784_v50 = vld [vmem:[#allocation2 + $0x170] sm:$0xf] }
 0x338   : > { %v5292_v26 = vpop.f32.mrf.mxu2 }
 0x339   : > { %v5369_v18 = vadd.f32 %v5292_v26, %v4715_v13  ;;  %v7774_v13 = vpop.f32.mrf.mxu3  ;;  %v5077_v26 = vshll.u32 %v4780_v22, 16  ;;  %v5075_v24 = vrot.slane %v5074_v55, 4  ;;  %v4718_v22 = vadd.f32 %v7538_v10, %v7613_v34 }
 0x33a   : > { %v4719_v34 = vadd.f32 %v7665_v47, %v7626_v61 }
 0x33b   : > { %v5405_v11 = vadd.f32 %v7731_v60, %v5369_v18  ;;  %v5065_v18 = vrot.slane %v5064_v40, 4  ;;  %v5079_v30 = vrot.slane %v5077_v26, 5  ;;  %v7796_v40 = vpop.f32.mrf.mxu1  ;;  %v4783_v26 = vld [vmem:[#allocation2 + $0x160] sm:$0x1] }
 0x33d   : > { %v5437_v49 = vmax.f32 %v5405_v11, 0.0  ;;  %v5070_v36 = vsel %vm6660_vm13, %v5065_v18, %v5069_v2  ;;  %v5080_v23 = vsel %vm6660_vm13, %v5075_v24, %v5079_v30  ;;  %v5093_v2 = vrot.slane %v5091_v53, 5 }
 0x33f   : > { %5470 = vst.msk [vmem:[%s7740_s20 + $0x10] sm:$0xff] %vm5467_vm14, %v5437_v49  ;;  %v7800_v30 = vpop.f32.mrf.mxu0 }
 0x340   : > { %v5294_v51 = vpop.f32.mrf.mxu2 }
 0x341   : > { %v5370_v17 = vadd.f32 %v5294_v51, %v4716_v9  ;;  %v5095_v9 = vshrl.u32 %v4782_v43, 16  ;;  %v7790_v21 = vpop.f32.mrf.mxu3  ;;  %v5201_v51 = vunpack.c.l.b16 %v5070_v36  ;;  %v4785_v36 = vld [vmem:[#allocation2 + $0x174] sm:$0xf] }
 0x342   : > { %v5115_v47 = vshll.u32 %v4785_v36, 16 }
 0x343   : > { %v5406_v1 = vadd.f32 %v7731_v60, %v5370_v17  ;;  %v5087_v17 = vrot.slane %v5085_v42, 5 }
 0x345   : > { %v5438_v6 = vmax.f32 %v5406_v1, 0.0  ;;  %6036 = vmatmul.msk.bf16.gmra.mxu2 %vm1351_vm8, %v5221_v39  ;;  %v5202_v1 = vunpack.c.l.b16 %v5080_v23  ;;  %v5097_v39 = vrot.slane %v5095_v9, 4  ;;  %v5088_v35 = vor.u32 %v5087_v17, %v5084_v14  ;;  %v7808_v9 = vpop.f32.mrf.mxu1 }
 0x346   : > { %v5119_v17 = vshrl.u32 %v4785_v36, 16 }
 0x347   : > { %5471 = vst.msk [vmem:[%s7740_s20 + $0x18] sm:$0xff] %vm5467_vm14, %v5438_v6  ;;  %v5222_v18 = vpack.c.b16 %v5202_v1, %v5201_v51  ;;  %v5098_v54 = vor.u32 %v5097_v39, %v5093_v2  ;;  %v5089_v10 = vrot.slane %v5088_v35, 4  ;;  %v5109_v51 = vshll.u32 %v4784_v50, 16 }
 0x348   : > { %v5297_v11 = vpop.f32.mrf.mxu2  ;;  %v5121_v35 = vrot.slane %v5119_v17, 4  ;;  %v4787_v17 = vld [vmem:[#allocation2 + $0x188] sm:$0xf] }
 0x349   : > { %v5371_v59 = vadd.f32 %v5297_v11, %v4717_v12  ;;  %v5101_v11 = vshll.u32 %v4783_v26, 16  ;;  %v5099_v43 = vrot.slane %v5098_v54, 4  ;;  %v7806_v42 = vpop.f32.mrf.mxu3  ;;  %v5094_v23 = vsel %vm6660_vm13, %v5089_v10, %v5093_v2  ;;  %v4786_v54 = vld [vmem:[#allocation2 + $0x178] sm:$0x1] }
 0x34a   : > { %v5203_v1 = vunpack.c.l.b16 %v5094_v23  ;;  %v5111_v26 = vrot.slane %v5109_v51, 5  ;;  %v5117_v2 = vrot.slane %v5115_v47, 5 }
 0x34b   : > { %v5407_v49 = vadd.f32 %v7731_v60, %v5371_v59  ;;  %v5103_v59 = vrot.slane %v5101_v11, 5  ;;  %v8101_v11 = vld [vmem:[#allocation18_spill] sm:$0xff] }
 0x34d   : > { %v5439_v8 = vmax.f32 %v5407_v49, 0.0  ;;  %v5104_v61 = vsel %vm6660_vm13, %v5099_v43, %v5103_v59  ;;  %v7827_v36 = vpop.f32.mrf.mxu1 }
 0x34e   : > { %v5204_v39 = vunpack.c.l.b16 %v5104_v61  ;;  %v8102_v61 = vld [vmem:[#allocation20_spill] sm:$0xff] }
 0x34f   : > { %5472 = vst.msk [vmem:[%s7740_s20 + $0x20] sm:$0xff] %vm5467_vm14, %v5439_v8  ;;  %v5106_v8 = vshrl.u32 %v4784_v50, 16 }
 0x350   : > { %v5299_v55 = vpop.f32.mrf.mxu2  ;;  %v5223_v43 = vpack.c.b16 %v5204_v39, %v5203_v1 }
 0x351   : > { %v5372_v6 = vadd.f32 %v5299_v55, %v4718_v22  ;;  %v5108_v55 = vrot.slane %v5106_v8, 4 }
 0x353   : > { %v5408_v12 = vadd.f32 %v7731_v60, %v5372_v6  ;;  %v4720_v6 = vadd.f32 %v7677_v56, %v7637_v16  ;;  %v5112_v59 = vor.u32 %v5111_v26, %v5108_v55  ;;  %v5122_v16 = vor.u32 %v5121_v35, %v5117_v2 }
 0x354   : > { %v5125_v56 = vshll.u32 %v4786_v54, 16  ;;  %v5130_v35 = vshrl.u32 %v4787_v17, 16 }
 0x355   : > { %v5440_v24 = vmax.f32 %v5408_v12, 0.0  ;;  %6037 = vmatmul.msk.bf16.gmra.mxu2 %vm1351_vm8, %v5222_v18  ;;  %v7819_v12 = vpop.f32.mrf.mxu0  ;;  %v5113_v23 = vrot.slane %v5112_v59, 4  ;;  %v5123_v8 = vrot.slane %v5122_v16, 4 }
 0x356   : > { %v5127_v51 = vrot.slane %v5125_v56, 5  ;;  %v8103_v56 = vld [vmem:[#allocation9_spill] sm:$0xff] }
 0x357   : > { %5473 = vst.msk [vmem:[%s7740_s20 + $0x28] sm:$0xff] %vm5467_vm14, %v5440_v24  ;;  %v3844_v24 = vadd.f32 %v7746_v5, %v8101_v11 }
 0x358   : > { %v5302_v49 = vpop.f32.mrf.mxu2  ;;  %v5128_v26 = vsel %vm6660_vm13, %v5123_v8, %v5127_v51 }
 0x359   : > { %v5373_v53 = vadd.f32 %v5302_v49, %v4719_v34  ;;  %v7823_v34 = vpop.f32.mrf.mxu3  ;;  %v4467_v50 = vadd.f32 %v7748_v0, %v3844_v24  ;;  %v3845_v0 = vadd.f32 %v7758_v19, %v8102_v61  ;;  %v5133_v19 = vshll.u32 %v4787_v17, 16  ;;  %v7845_v24 = vpop.f32.mrf.mxu1 }
 0x35b   : > { %v5409_v14 = vadd.f32 %v7731_v60, %v5373_v53  ;;  %v4721_v5 = vadd.f32 %v7756_v20, %v4467_v50  ;;  %v4468_v39 = vadd.f32 %v7763_v33, %v3845_v0  ;;  %v5118_v20 = vsel %vm6660_vm13, %v5113_v23, %v5117_v2  ;;  %v4789_v23 = vld [vmem:[#allocation2 + $0x190] sm:$0x1] }
 0x35c   : > { %v5132_v2 = vrot.slane %v5130_v35, 4  ;;  %v5135_v50 = vrot.slane %v5133_v19, 5 }
 0x35d   : > { %v5441_v22 = vmax.f32 %v5409_v14, 0.0  ;;  %v7835_v1 = vpop.f32.mrf.mxu0  ;;  %v4722_v33 = vadd.f32 %v7771_v3, %v4468_v39  ;;  %v4790_v39 = vld [vmem:[#allocation2 + $0x1a0] sm:$0xf] }
 0x35e   : > { %v5136_v3 = vor.u32 %v5135_v50, %v5132_v2 }
 0x35f   : > { %5474 = vst.msk [vmem:[%s7740_s20 + $0x30] sm:$0xff] %vm5467_vm14, %v5441_v22  ;;  %v4788_v22 = vld [vmem:[#allocation2 + $0x18c] sm:$0xf] }
 0x360   : > { %v5304_v18 = vpop.f32.mrf.mxu2  ;;  %v5143_v54 = vshrl.u32 %v4788_v22, 16 }
 0x361   : > { %v5374_v10 = vadd.f32 %v5304_v18, %v4720_v6  ;;  %v7843_v6 = vpop.f32.mrf.mxu3  ;;  %v5139_v18 = vshll.u32 %v4788_v22, 16 }
 0x362   : > { %v5145_v16 = vrot.slane %v5143_v54, 4 }
 0x363   : > { %v5410_v49 = vadd.f32 %v7731_v60, %v5374_v10  ;;  %v5205_v10 = vunpack.c.l.b16 %v5118_v20 }
 0x365   : > { %v5442_v53 = vmax.f32 %v5410_v49, 0.0  ;;  %6038 = vmatmul.msk.bf16.gmra.mxu2 %vm1351_vm8, %v5223_v43  ;;  %v5206_v43 = vunpack.c.l.b16 %v5128_v26  ;;  %v5141_v49 = vrot.slane %v5139_v18, 5  ;;  %v7854_v61 = vpop.f32.mrf.mxu0  ;;  %v5137_v26 = vrot.slane %v5136_v3, 4  ;;  %v8104_v18 = vld [vmem:[#allocation22_spill] sm:$0xff]  ;;  %v4792_v3 = vld [vmem:[#allocation2 + $0x1a8] sm:$0x1] }
 0x366   : > { %v3847_v54 = vadd.f32 %v7790_v21, %v8104_v18 }
 0x367   : > { %5475 = vst.msk [vmem:[%s7740_s20 + $0x38] sm:$0xff] %vm5467_vm14, %v5442_v53  ;;  %v3846_v53 = vadd.f32 %v7774_v13, %v8103_v56  ;;  %v5146_v0 = vor.u32 %v5145_v16, %v5141_v49  ;;  %v5142_v50 = vsel %vm6660_vm13, %v5137_v26, %v5141_v49  ;;  %v5173_v26 = vshll.u32 %v4792_v3, 16 }
 0x368   : > { %v5307_v14 = vpop.f32.mrf.mxu2  ;;  %v4470_v2 = vadd.f32 %v7796_v40, %v3847_v54  ;;  %v5207_v40 = vunpack.c.l.b16 %v5142_v50 }
 0x369   : > { %v5375_v47 = vadd.f32 %v5307_v14, %v4721_v5  ;;  %v4469_v8 = vadd.f32 %v7777_v58, %v3846_v53  ;;  %v5224_v14 = vpack.c.b16 %v5206_v43, %v5205_v10  ;;  %v7857_v22 = vpop.f32.mrf.mxu3  ;;  %v7862_v58 = vpop.f32.mrf.mxu1  ;;  %v5147_v35 = vrot.slane %v5146_v0, 4 }
 0x36a   : > { %v5157_v10 = vshll.u32 %v4790_v39, 16 }
 0x36b   : > { %v5411_v55 = vadd.f32 %v7731_v60, %v5375_v47  ;;  %v5149_v47 = vshll.u32 %v4789_v23, 16  ;;  %v4723_v13 = vadd.f32 %v7786_v44, %v4469_v8 }
 0x36d   : > { %v5443_v11 = vmax.f32 %v5411_v55, 0.0  ;;  %v4791_v55 = vld [vmem:[#allocation2 + $0x1a4] sm:$0xf]  ;;  %v5151_v19 = vrot.slane %v5149_v47, 5  ;;  %v7872_v53 = vpop.f32.mrf.mxu0  ;;  %v8105_v47 = vld [vmem:[#allocation11_spill] sm:$0xff] }
 0x36e   : > { %v5163_v43 = vshll.u32 %v4791_v55, 16 }
 0x36f   : > { %5476 = vst.msk [vmem:[%s7740_s20 + $0x40] sm:$0xff] %vm5467_vm14, %v5443_v11  ;;  %v5152_v16 = vsel %vm6660_vm13, %v5147_v35, %v5151_v19 }
 0x370   : > { %v5309_v59 = vpop.f32.mrf.mxu2  ;;  %v5165_v23 = vrot.slane %v5163_v43, 5 }
 0x371   : > { %v5376_v5 = vadd.f32 %v5309_v59, %v4722_v33  ;;  %v5154_v33 = vshrl.u32 %v4790_v39, 16  ;;  %v5167_v59 = vshrl.u32 %v4791_v55, 16  ;;  %v3796_v0 = vpop.f32.mrf.mxu3  ;;  %v4419_v39 = vpop.f32.mrf.mxu1 }
 0x373   : > { %v5412_v51 = vadd.f32 %v7731_v60, %v5376_v5  ;;  %v5156_v21 = vrot.slane %v5154_v33, 4  ;;  %v5159_v5 = vrot.slane %v5157_v10, 5  ;;  %v5169_v8 = vrot.slane %v5167_v59, 4  ;;  %v8106_v59 = vld [vmem:[#allocation12_spill] sm:$0xff] }
 0x374   : > { %v5175_v33 = vrot.slane %v5173_v26, 5 }
 0x375   : > { %v5444_v17 = vmax.f32 %v5412_v51, 0.0  ;;  %6039 = vmatmul.msk.bf16.gmra.mxu2 %vm1351_vm8, %v5224_v14  ;;  %v4724_v51 = vadd.f32 %v7800_v30, %v4470_v2  ;;  %v5208_v14 = vunpack.c.l.b16 %v5152_v16  ;;  %v5160_v55 = vor.u32 %v5159_v5, %v5156_v21  ;;  %v4673_v10 = vpop.f32.mrf.mxu0 }
 0x376   : > { %v3849_v2 = vadd.f32 %v7823_v34, %v8106_v59 }
 0x377   : > { %5477 = vst.msk [vmem:[%s7740_s20 + $0x48] sm:$0xff] %vm5467_vm14, %v5444_v17  ;;  %v3848_v17 = vadd.f32 %v7806_v42, %v8105_v47  ;;  %v5225_v18 = vpack.c.b16 %v5208_v14, %v5207_v40  ;;  %v5161_v54 = vrot.slane %v5160_v55, 4 }
 0x378   : > { %v5312_v20 = vpop.f32.mrf.mxu2 }
 0x379   : > { %v5377_v11 = vadd.f32 %v5312_v20, %v4723_v13  ;;  %v5170_v20 = vor.u32 %v5169_v8, %v5165_v23  ;;  %v4471_v35 = vadd.f32 %v7808_v9, %v3848_v17  ;;  %v5166_v50 = vsel %vm6660_vm13, %v5161_v54, %v5165_v23  ;;  %v4421_v5 = vpop.f32.mrf.mxu1 }
 0x37a   : > { %v3850_v23 = vadd.f32 %v7843_v6, %v7518_v46  ;;  %v3851_v46 = vadd.f32 %v7857_v22, %v7543_v37 }
 0x37b   : > { %v5413_v44 = vadd.f32 %v7731_v60, %v5377_v11  ;;  %v5171_v11 = vrot.slane %v5170_v20, 4  ;;  %v4725_v42 = vadd.f32 %v7819_v12, %v4471_v35  ;;  %v5209_v12 = vunpack.c.l.b16 %v5166_v50 }
 0x37d   : > { %v5445_v56 = vmax.f32 %v5413_v44, 0.0  ;;  %v3798_v44 = vpop.f32.mrf.mxu3  ;;  %v5176_v16 = vsel %vm6660_vm13, %v5171_v11, %v5175_v33  ;;  %v4675_v3 = vpop.f32.mrf.mxu0 }
 0x37f   : > { %5478 = vst.msk [vmem:[%s7740_s20 + $0x50] sm:$0xff] %vm5467_vm14, %v5445_v56  ;;  %v4472_v56 = vadd.f32 %v7827_v36, %v3849_v2  ;;  %v4473_v36 = vadd.f32 %v7845_v24, %v3850_v23  ;;  %v4474_v24 = vadd.f32 %v7862_v58, %v3851_v46  ;;  %v3853_v2 = vadd.f32 %v3798_v44, %v7575_v29 }
 0x380   : > { %v5314_v49 = vpop.f32.mrf.mxu2 }
 0x381   : > { %v5378_v13 = vadd.f32 %v5314_v49, %v4724_v51  ;;  %v5210_v51 = vunpack.c.l.b16 %v5176_v16  ;;  %v4726_v34 = vadd.f32 %v7835_v1, %v4472_v56  ;;  %v4727_v1 = vadd.f32 %v7854_v61, %v4473_v36 }
 0x382   : > { %v3852_v61 = vadd.f32 %v3796_v0, %v7558_v48  ;;  %v4476_v50 = vadd.f32 %v4421_v5, %v3853_v2 }
 0x383   : > { %v5414_v19 = vadd.f32 %v7731_v60, %v5378_v13  ;;  %v5226_v38 = vpack.c.b16 %v5210_v51, %v5209_v12  ;;  %v4424_v13 = vpop.f32.mrf.mxu1 }
 0x384   : > { %v4475_v37 = vadd.f32 %v4419_v39, %v3852_v61  ;;  %v4730_v39 = vadd.f32 %v4675_v3, %v4476_v50 }
 0x385   : > { %v5446_v30 = vmax.f32 %v5414_v19, 0.0  ;;  %6040 = vmatmul.msk.bf16.gmra.mxu2 %vm1351_vm8, %v5225_v18  ;;  %v3801_v47 = vpop.f32.mrf.mxu3  ;;  %v4678_v26 = vpop.f32.mrf.mxu0  ;;  %v4728_v18 = vadd.f32 %v7872_v53, %v4474_v24 }
 0x387   : > { %5479 = vst.msk [vmem:[%s7740_s20 + $0x58] sm:$0xff] %vm5467_vm14, %v5446_v30 }
 0x388   : > { %v5317_v43 = vpop.f32.mrf.mxu2 }
 0x389   : > { %v5379_v9 = vadd.f32 %v5317_v43, %v4725_v42  ;;  %v4729_v42 = vadd.f32 %v4673_v10, %v4475_v37 }
 0x38b   : > { %v5415_v21 = vadd.f32 %v7731_v60, %v5379_v9  ;;  %v4426_v30 = vpop.f32.mrf.mxu1 }
 0x38d   : > { %v5447_v8 = vmax.f32 %v5415_v21, 0.0  ;;  %v3803_v19 = vpop.f32.mrf.mxu3  ;;  %v4680_v58 = vpop.f32.mrf.mxu0  ;;  %v3854_v21 = vadd.f32 %v3801_v47, %v7584_v31 }
 0x38f   : > { %5480 = vst.msk [vmem:[%s7740_s20 + $0x60] sm:$0xff] %vm5467_vm14, %v5447_v8  ;;  %v4477_v12 = vadd.f32 %v4424_v13, %v3854_v21 }
 0x390   : > { %v5319_v40 = vpop.f32.mrf.mxu2 }
 0x391   : > { %v5380_v14 = vadd.f32 %v5319_v40, %v4726_v34  ;;  %v4731_v5 = vadd.f32 %v4678_v26, %v4477_v12  ;;  %v3855_v40 = vadd.f32 %v3803_v19, %v7599_v25 }
 0x393   : > { %v5416_v49 = vadd.f32 %v7731_v60, %v5380_v14  ;;  %v4429_v53 = vpop.f32.mrf.mxu1 }
 0x395   : > { %v5448_v17 = vmax.f32 %v5416_v49, 0.0  ;;  %6041 = vmatmul.msk.bf16.gmra.mxu2 %vm1351_vm8, %v5226_v38  ;;  %v3806_v43 = vpop.f32.mrf.mxu3  ;;  %v4683_v16 = vpop.f32.mrf.mxu0  ;;  %v4478_v38 = vadd.f32 %v4426_v30, %v3855_v40 }
 0x396   : > { %v3856_v13 = vadd.f32 %v3806_v43, %v7608_v41 }
 0x397   : > { %5481 = vst.msk [vmem:[%s7740_s20 + $0x68] sm:$0xff] %vm5467_vm14, %v5448_v17  ;;  %v4732_v47 = vadd.f32 %v4680_v58, %v4478_v38 }
 0x398   : > { %v5322_v55 = vpop.f32.mrf.mxu2 }
 0x399   : > { %v5381_v6 = vadd.f32 %v5322_v55, %v4727_v1  ;;  %v4479_v55 = vadd.f32 %v4429_v53, %v3856_v13 }
 0x39b   : > { %v5417_v20 = vadd.f32 %v7731_v60, %v5381_v6  ;;  %v4431_v44 = vpop.f32.mrf.mxu1 }
 0x39d   : > { %v5449_v35 = vmax.f32 %v5417_v20, 0.0  ;;  %v3808_v10 = vpop.f32.mrf.mxu3  ;;  %v4685_v14 = vpop.f32.mrf.mxu0  ;;  %v4733_v20 = vadd.f32 %v4683_v16, %v4479_v55 }
 0x39e   : > { %v3857_v19 = vadd.f32 %v3808_v10, %v7623_v57 }
 0x39f   : > { %5482 = vst.msk [vmem:[%s7740_s20 + $0x70] sm:$0xff] %vm5467_vm14, %v5449_v35 }
 0x3a0   : > { %v5324_v54 = vpop.f32.mrf.mxu2  ;;  %v4480_v30 = vadd.f32 %v4431_v44, %v3857_v19 }
 0x3a1   : > { %v5382_v11 = vadd.f32 %v5324_v54, %v4728_v18 }
 0x3a3   : > { %v5418_v22 = vadd.f32 %v7731_v60, %v5382_v11  ;;  %v4434_v49 = vpop.f32.mrf.mxu1  ;;  %v4734_v11 = vadd.f32 %v4685_v14, %v4480_v30 }
 0x3a5   : > { %v5450_v33 = vmax.f32 %v5418_v22, 0.0  ;;  %v3811_v3 = vpop.f32.mrf.mxu3  ;;  %v4688_v46 = vpop.f32.mrf.mxu0 }
 0x3a7   : > { %5483 = vst.msk [vmem:[%s7740_s20 + $0x78] sm:$0xff] %vm5467_vm14, %v5450_v33  ;;  %v3858_v33 = vadd.f32 %v3811_v3, %v7632_v7 }
 0x3a8   : > { %v5327_v59 = vpop.f32.mrf.mxu2 }
 0x3a9   : > { %v5383_v9 = vadd.f32 %v5327_v59, %v4729_v42  ;;  %v4481_v43 = vadd.f32 %v4434_v49, %v3858_v33 }
 0x3ab   : > { %v5419_v48 = vadd.f32 %v7731_v60, %v5383_v9  ;;  %v4436_v26 = vpop.f32.mrf.mxu1  ;;  %v4735_v2 = vadd.f32 %v4688_v46, %v4481_v43 }
 0x3ad   : > { %v5451_v0 = vmax.f32 %v5419_v48, 0.0  ;;  %v3813_v24 = vpop.f32.mrf.mxu3  ;;  %v4690_v61 = vpop.f32.mrf.mxu0 }
 0x3ae   : > { %v3859_v50 = vadd.f32 %v3813_v24, %v7647_v27 }
 0x3af   : > { %5484 = vst.msk [vmem:[%s7740_s20 + $0x80] sm:$0xff] %vm5467_vm14, %v5451_v0 }
 0x3b0   : > { %v5329_v56 = vpop.f32.mrf.mxu2 }
 0x3b1   : > { %v5384_v8 = vadd.f32 %v5329_v56, %v4730_v39  ;;  %v4482_v39 = vadd.f32 %v4436_v26, %v3859_v50 }
 0x3b3   : > { %v5420_v29 = vadd.f32 %v7731_v60, %v5384_v8  ;;  %v4439_v42 = vpop.f32.mrf.mxu1  ;;  %v4736_v21 = vadd.f32 %v4690_v61, %v4482_v39 }
 0x3b5   : > { %v5452_v51 = vmax.f32 %v5420_v29, 0.0  ;;  %v3816_v37 = vpop.f32.mrf.mxu3  ;;  %v4693_v9 = vpop.f32.mrf.mxu0 }
 0x3b6   : > { %v3860_v10 = vadd.f32 %v3816_v37, %v7653_v15 }
 0x3b7   : > { %5485 = vst.msk [vmem:[%s7740_s20 + $0x88] sm:$0xff] %vm5467_vm14, %v5452_v51 }
 0x3b8   : > { %v5332_v34 = vpop.f32.mrf.mxu2  ;;  %v4483_v44 = vadd.f32 %v4439_v42, %v3860_v10 }
 0x3b9   : > { %v5385_v23 = vadd.f32 %v5332_v34, %v4731_v5 }
 0x3ba   : > { %v4737_v40 = vadd.f32 %v4693_v9, %v4483_v44 }
 0x3bb   : > { %v5421_v31 = vadd.f32 %v7731_v60, %v5385_v23  ;;  %v4441_v16 = vpop.f32.mrf.mxu1 }
 0x3bd   : > { %v5453_v36 = vmax.f32 %v5421_v31, 0.0  ;;  %v3818_v0 = vpop.f32.mrf.mxu3  ;;  %v4695_v29 = vpop.f32.mrf.mxu0 }
 0x3be   : > { %v3861_v14 = vadd.f32 %v3818_v0, %v7667_v52 }
 0x3bf   : > { %5486 = vst.msk [vmem:[%s7740_s20 + $0x90] sm:$0xff] %vm5467_vm14, %v5453_v36 }
 0x3c0   : > { %v5334_v17 = vpop.f32.mrf.mxu2  ;;  %v4484_v31 = vadd.f32 %v4441_v16, %v3861_v14 }
 0x3c1   : > { %v5386_v1 = vadd.f32 %v5334_v17, %v4732_v47 }
 0x3c2   : > { %v4738_v47 = vadd.f32 %v4695_v29, %v4484_v31 }
 0x3c3   : > { %v5422_v25 = vadd.f32 %v7731_v60, %v5386_v1  ;;  %v4444_v34 = vpop.f32.mrf.mxu1 }
 0x3c5   : > { %v5454_v6 = vmax.f32 %v5422_v25, 0.0  ;;  %v3821_v51 = vpop.f32.mrf.mxu3  ;;  %v4698_v3 = vpop.f32.mrf.mxu0 }
 0x3c6   : > { %v3862_v1 = vadd.f32 %v3821_v51, %v7675_v28 }
 0x3c7   : > { %5487 = vst.msk [vmem:[%s7740_s20 + $0x98] sm:$0xff] %vm5467_vm14, %v5454_v6 }
 0x3c8   : > { %v5337_v35 = vpop.f32.mrf.mxu2  ;;  %v4485_v25 = vadd.f32 %v4444_v34, %v3862_v1 }
 0x3c9   : > { %v5387_v18 = vadd.f32 %v5337_v35, %v4733_v20 }
 0x3ca   : > { %v4739_v24 = vadd.f32 %v4698_v3, %v4485_v25 }
 0x3cb   : > { %v5423_v41 = vadd.f32 %v7731_v60, %v5387_v18  ;;  %v4446_v17 = vpop.f32.mrf.mxu1 }
 0x3cd   : > { %v5455_v54 = vmax.f32 %v5423_v41, 0.0  ;;  %v3823_v49 = vpop.f32.mrf.mxu3  ;;  %v4700_v6 = vpop.f32.mrf.mxu0 }
 0x3ce   : > { %v3863_v35 = vadd.f32 %v3823_v49, %v7690_v62 }
 0x3cf   : > { %5488 = vst.msk [vmem:[%s7740_s20 + $0xa0] sm:$0xff] %vm5467_vm14, %v5455_v54 }
 0x3d0   : > { %v5339_v22 = vpop.f32.mrf.mxu2  ;;  %v4486_v30 = vadd.f32 %v4446_v17, %v3863_v35 }
 0x3d1   : > { %v5388_v58 = vadd.f32 %v5339_v22, %v4734_v11 }
 0x3d2   : > { %v4740_v54 = vadd.f32 %v4700_v6, %v4486_v30 }
 0x3d3   : > { %v5424_v57 = vadd.f32 %v7731_v60, %v5388_v58  ;;  %v4449_v18 = vpop.f32.mrf.mxu1 }
 0x3d5   : > { %v5456_v59 = vmax.f32 %v5424_v57, 0.0  ;;  %v3826_v20 = vpop.f32.mrf.mxu3  ;;  %v4703_v61 = vpop.f32.mrf.mxu0 }
 0x3d6   : > { %v3864_v37 = vadd.f32 %v3826_v20, %v7696_v45 }
 0x3d7   : > { %5489 = vst.msk [vmem:[%s7740_s20 + $0xa8] sm:$0xff] %vm5467_vm14, %v5456_v59 }
 0x3d8   : > { %v5342_v53 = vpop.f32.mrf.mxu2  ;;  %v4487_v58 = vadd.f32 %v4449_v18, %v3864_v37 }
 0x3d9   : > { %v5389_v48 = vadd.f32 %v5342_v53, %v4735_v2 }
 0x3da   : > { %v4741_v57 = vadd.f32 %v4703_v61, %v4487_v58 }
 0x3db   : > { %v5425_v7 = vadd.f32 %v7731_v60, %v5389_v48  ;;  %v4451_v42 = vpop.f32.mrf.mxu1 }
 0x3dd   : > { %v5457_v56 = vmax.f32 %v5425_v7, 0.0  ;;  %v3828_v33 = vpop.f32.mrf.mxu3  ;;  %v4705_v53 = vpop.f32.mrf.mxu0 }
 0x3de   : > { %v3865_v2 = vadd.f32 %v3828_v33, %v7708_v63 }
 0x3df   : > { %5490 = vst.msk [vmem:[%s7740_s20 + $0xb0] sm:$0xff] %vm5467_vm14, %v5457_v56 }
 0x3e0   : > { %v5344_v8 = vpop.f32.mrf.mxu2  ;;  %v4488_v50 = vadd.f32 %v4451_v42, %v3865_v2 }
 0x3e1   : > { %v5390_v12 = vadd.f32 %v5344_v8, %v4736_v21 }
 0x3e2   : > { %v4742_v7 = vadd.f32 %v4705_v53, %v4488_v50 }
 0x3e3   : > { %v5426_v27 = vadd.f32 %v7731_v60, %v5390_v12  ;;  %v4454_v39 = vpop.f32.mrf.mxu1 }
 0x3e5   : > { %v5458_v5 = vmax.f32 %v5426_v27, 0.0  ;;  %v3831_v48 = vpop.f32.mrf.mxu3  ;;  %v4708_v8 = vpop.f32.mrf.mxu0 }
 0x3e6   : > { %v3866_v56 = vadd.f32 %v3831_v48, %v7714_v4 }
 0x3e7   : > { %5491 = vst.msk [vmem:[%s7740_s20 + $0xb8] sm:$0xff] %vm5467_vm14, %v5458_v5 }
 0x3e8   : > { %v5347_v23 = vpop.f32.mrf.mxu2  ;;  %v4489_v10 = vadd.f32 %v4454_v39, %v3866_v56 }
 0x3e9   : > { %v5391_v38 = vadd.f32 %v5347_v23, %v4737_v40 }
 0x3ea   : > { %v4743_v44 = vadd.f32 %v4708_v8, %v4489_v10 }
 0x3eb   : > { %v5427_v15 = vadd.f32 %v7731_v60, %v5391_v38  ;;  %v4456_v27 = vpop.f32.mrf.mxu1 }
 0x3ed   : > { %v5459_v36 = vmax.f32 %v5427_v15, 0.0  ;;  %v3833_v29 = vpop.f32.mrf.mxu3  ;;  %v4710_v23 = vpop.f32.mrf.mxu0 }
 0x3ee   : > { %v3867_v5 = vadd.f32 %v3833_v29, %v7722_v32 }
 0x3ef   : > { %5492 = vst.msk [vmem:[%s7740_s20 + $0xc0] sm:$0xff] %vm5467_vm14, %v5459_v36 }
 0x3f0   : > { %v5349_v13 = vpop.f32.mrf.mxu2  ;;  %v4490_v40 = vadd.f32 %v4456_v27, %v3867_v5 }
 0x3f1   : > { %v5392_v55 = vadd.f32 %v5349_v13, %v4738_v47 }
 0x3f2   : > { %v4744_v38 = vadd.f32 %v4710_v23, %v4490_v40 }
 0x3f3   : > { %v5428_v52 = vadd.f32 %v7731_v60, %v5392_v55 }
 0x3f5   : > { %v5460_v46 = vmax.f32 %v5428_v52, 0.0 }
 0x3f7   : > { %5493 = vst.msk [vmem:[%s7740_s20 + $0xc8] sm:$0xff] %vm5467_vm14, %v5460_v46 }
 0x3f8   : > { %v5352_v26 = vpop.f32.mrf.mxu2 }
 0x3f9   : > { %v5393_v19 = vadd.f32 %v5352_v26, %v4739_v24 }
 0x3fb   : > { %v5429_v28 = vadd.f32 %v7731_v60, %v5393_v19 }
 0x3fd   : > { %v5461_v41 = vmax.f32 %v5429_v28, 0.0 }
 0x3ff   : > { %5494 = vst.msk [vmem:[%s7740_s20 + $0xd0] sm:$0xff] %vm5467_vm14, %v5461_v41 }
 0x400   : > { %v5354_v11 = vpop.f32.mrf.mxu2 }
 0x401   : > { %v5394_v22 = vadd.f32 %v5354_v11, %v4740_v54 }
 0x403   : > { %v5430_v62 = vadd.f32 %v7731_v60, %v5394_v22 }
 0x405   : > { %v5462_v43 = vmax.f32 %v5430_v62, 0.0 }
 0x407   : > { %5495 = vst.msk [vmem:[%s7740_s20 + $0xd8] sm:$0xff] %vm5467_vm14, %v5462_v43 }
 0x408   : > { %v5357_v59 = vpop.f32.mrf.mxu2 }
 0x409   : > { %v5395_v9 = vadd.f32 %v5357_v59, %v4741_v57 }
 0x40b   : > { %v5431_v45 = vadd.f32 %v7731_v60, %v5395_v9 }
 0x40d   : > { %v5463_v0 = vmax.f32 %v5431_v45, 0.0 }
 0x40f   : > { %5496 = vst.msk [vmem:[%s7740_s20 + $0xe0] sm:$0xff] %vm5467_vm14, %v5463_v0 }
 0x410   : > { %v5359_v16 = vpop.f32.mrf.mxu2 }
 0x411   : > { %v5396_v21 = vadd.f32 %v5359_v16, %v4742_v7 }
 0x413   : > { %v5432_v63 = vadd.f32 %v7731_v60, %v5396_v21 }
 0x415   : > { %v5464_v12 = vmax.f32 %v5432_v63, 0.0 }
 0x417   : > { %5497 = vst.msk [vmem:[%s7740_s20 + $0xe8] sm:$0xff] %vm5467_vm14, %v5464_v12 }
 0x418   : > { %v5362_v51 = vpop.f32.mrf.mxu2 }
 0x419   : > { %v5397_v34 = vadd.f32 %v5362_v51, %v4743_v44 }
 0x41b   : > { %v5433_v4 = vadd.f32 %v7731_v60, %v5397_v34 }
 0x41d   : > { %v5465_v14 = vmax.f32 %v5433_v4, 0.0 }
 0x41f   : > { %5498 = vst.msk [vmem:[%s7740_s20 + $0xf0] sm:$0xff] %vm5467_vm14, %v5465_v14 }
 0x420   : > { %v5364_v31 = vpop.f32.mrf.mxu2 }
 0x421   : > { %v5398_v15 = vadd.f32 %v5364_v31, %v4744_v38 }
 0x423   : > { %v5434_v32 = vadd.f32 %v7731_v60, %v5398_v15 }
 0x425   : > { %v5466_v3 = vmax.f32 %v5434_v32, 0.0 }
 0x427   : > { %5499 = vst.msk [vmem:[%s7740_s20 + $0xf8] sm:$0xff] %vm5467_vm14, %v5466_v3 }
 0x428   : > { %6188 = shalt.err (!%p6185_p5)
}
 0x429   : > { %s6242_s16 = smov 128   ;;  %s6243_s20 = smov 8  }
 0x42a   : > { %6100 = dma.vmem_to_hbm [thread:$0]  (%p6319_p4), %s5517_s11, 4096, %s5519_s12, %s5501_s24, %s6242_s16, %s6242_s16, %s6243_s20  }
 0x42b PF: > { %p6106_p6 = scmp.ge.s32.totalorder %s6239_s26, 2  ;;  %s5533_s28 = sand.u32 1, %s6219_s21  }
 0x42c   : > { %s5534_s30 = scalar_lea.sflag [#allocation4], %s5533_s28 }
 0x42d   : > { %p6103_p7 = pnand %p6106_p6, %p6326_p8 }
 0x42f   : > { %p6104_p9 = pneg %p6103_p7 }
 0x431   : > { %6214 = dma.done.wait (%p6104_p9), %s5534_s30, 4096  }
 0x432   : > { %6216 = vsyncadd (%p6104_p9), %s5534_s30, 4294963200  ;;  %s19_s26 = sadd.s32 1, %s6239_s26   ;;  %s8107_s21 = smov %s6223_s22 }
 0x433   : > { %p16_p10 = scmp.ge.s32.totalorder %s19_s26, 4   ;;  %s8108_s22 = smov %s6227_s23 }
 0x434   : > { %s8109_s23 = smov %s6332_s10  ;;  %s8110_s24 = smov %s6235_s25 }
 0x435   : > { %s8111_s25 = smov %s8113_s29  ;;  %18 = sbr.rel (!%p16_p10) target bundleno = 4 (0x4), region = 97 }
 0x43a   :  { %5540 = vsyncpa [#allocation4], 1 }
 0x43b   :  { %5542 = vsyncpa [#allocation4 + $0x1], 1 }

</bundles_post_ra>
